<compile_context>
chip_gen: v6e
topology: v6e:2x2x1
jax: 0.10.0
libtpu: 0.0.40
codegen_flags: <defaults>
</compile_context>

<pallas_src>
import jax
import jax.numpy as jnp
import numpy as np
from jax import lax
from jax.experimental import pallas as pl
from jax.experimental.pallas import tpu as pltpu


def _round_up(x, m):
    return ((x + m - 1) // m) * m


def _lstm_decoder_kernel(x_ref,        # (Tc, Bb, Ep)   bf16
                         wih0_ref,     # (Ep, 4Hp)      bf16
                         whh0_ref,     # (Hp, 4Hp)      bf16
                         b0_ref,       # (1, 4Hp)       f32  (b_ih0 + b_hh0)
                         wih1_ref,     # (Hp, 4Hp)      bf16
                         whh1_ref,     # (Hp, 4Hp)      bf16
                         b1_ref,       # (1, 4Hp)       f32  (b_ih1 + b_hh1)
                         wfc_ref,      # (Hp, Cp)       bf16
                         bfc_ref,      # (1, Cp)        f32
                         out_ref,      # (Bb, Cp)       f32
                         xproj_ref,    # scratch (Tc, Bb, 4Hp) f32
                         h0_ref, c0_ref, h1_ref, c1_ref):  # scratch (Bb, Hp) f32
    t_idx = pl.program_id(1)
    Tc, B, E = x_ref.shape
    Hp = whh0_ref.shape[0]

    # New batch block starts: zero the persistent LSTM state.
    @pl.when(t_idx == 0)
    def _():
        z = jnp.zeros((B, Hp), jnp.float32)
        h0_ref[...] = z
        c0_ref[...] = z
        h1_ref[...] = z
        c1_ref[...] = z

    # Chunk prologue: layer-0 input projection for all Tc steps in ONE bf16
    # MXU matmul (off the serial path), accumulated in f32.
    x_all = x_ref[...].reshape(Tc * B, E)
    proj = jnp.dot(x_all, wih0_ref[...], preferred_element_type=jnp.float32)
    xproj_ref[...] = (proj + b0_ref[...]).reshape(Tc, B, 4 * Hp)

    # Hoist weight reads and the bias broadcast out of the recurrence.
    whh0 = whh0_ref[...]
    wih1 = wih1_ref[...]
    whh1 = whh1_ref[...]
    b1 = jnp.broadcast_to(b1_ref[...], (B, 4 * Hp))

    def gates_to_hc(gates, c):
        # PyTorch gate order: i, f, g, o.  Each slice is 128-lane aligned.
        i = jax.nn.sigmoid(gates[:, 0 * Hp:1 * Hp])
        f = jax.nn.sigmoid(gates[:, 1 * Hp:2 * Hp])
        g = jnp.tanh(gates[:, 2 * Hp:3 * Hp])
        o = jax.nn.sigmoid(gates[:, 3 * Hp:4 * Hp])
        c_new = f * c + i * g
        return o * jnp.tanh(c_new), c_new

    def step(t, carry):
        h0, c0, h1, c1 = carry
        # Layer-1 recurrent half: independent of the new h0, so the MXU push
        # can overlap layer-0's EUP/VPU gate work.
        g1_rec = jnp.dot(h1.astype(jnp.bfloat16), whh1,
                         preferred_element_type=jnp.float32)
        # Layer 0: only the recurrent matmul is left on the serial path.
        g0 = xproj_ref[t] + jnp.dot(h0.astype(jnp.bfloat16), whh0,
                                    preferred_element_type=jnp.float32)
        h0, c0 = gates_to_hc(g0, c0)
        # Layer 1: split ih/hh matmuls (no per-step concatenate).
        g1 = (g1_rec
              + jnp.dot(h0.astype(jnp.bfloat16), wih1,
                        preferred_element_type=jnp.float32)
              + b1)
        h1, c1 = gates_to_hc(g1, c1)
        return h0, c0, h1, c1

    carry0 = (h0_ref[...], c0_ref[...], h1_ref[...], c1_ref[...])
    h0, c0, h1, c1 = lax.fori_loop(0, Tc, step, carry0,
                                   unroll=min(Tc, 8))
    h0_ref[...] = h0
    c0_ref[...] = c0
    h1_ref[...] = h1
    c1_ref[...] = c1

    # Final chunk: fc on the last-timestep hidden of the top layer.
    @pl.when(t_idx == pl.num_programs(1) - 1)
    def _():
        out_ref[...] = (jnp.dot(h1.astype(jnp.bfloat16), wfc_ref[...],
                                preferred_element_type=jnp.float32)
                        + bfc_ref[...])


def prepare_kernel_params(raw, E, H, C):
    """Pad/transpose raw PyTorch-layout params to lane-dense kernel layout.

    Gate weights become (in_pad, 4*Hp) bf16 with each gate block zero-padded
    H->Hp; biases stay f32.  Padding is with zeros so padded hidden lanes stay
    exactly 0 throughout the recurrence (zero initial state).
    """
    (w_ih0, w_hh0, b_ih0, b_hh0,
     w_ih1, w_hh1, b_ih1, b_hh1, w_fc, b_fc) = raw
    Ep, Hp, Cp = _round_up(E, 128), _round_up(H, 128), _round_up(C, 128)

    def pad_gate_w(w, in_dim, in_pad):
        w4 = jnp.pad(w.reshape(4, H, in_dim),
                     ((0, 0), (0, Hp - H), (0, in_pad - in_dim)))
        return w4.reshape(4 * Hp, in_pad).T.astype(jnp.bfloat16)  # (in_pad, 4Hp)

    def pad_gate_b(b):
        b4 = jnp.pad(b.reshape(4, H), ((0, 0), (0, Hp - H)))
        return b4.reshape(1, 4 * Hp).astype(jnp.float32)

    return {
        "wih0": pad_gate_w(w_ih0, E, Ep),                    # (Ep, 4Hp) bf16
        "whh0": pad_gate_w(w_hh0, H, Hp),                    # (Hp, 4Hp) bf16
        "b0": pad_gate_b(b_ih0 + b_hh0),                     # (1, 4Hp) f32
        "wih1": pad_gate_w(w_ih1, H, Hp),                    # (Hp, 4Hp) bf16
        "whh1": pad_gate_w(w_hh1, H, Hp),                    # (Hp, 4Hp) bf16
        "b1": pad_gate_b(b_ih1 + b_hh1),                     # (1, 4Hp) f32
        "wfc": jnp.pad(w_fc, ((0, Cp - C), (0, Hp - H))).T.astype(jnp.bfloat16),
        "bfc": jnp.pad(b_fc, (0, Cp - C))[None, :].astype(jnp.float32),
        "dims": (E, H, C, Ep, Hp, Cp),
    }


def _choose_time_chunk(T, Bb, Ep, Hp, budget_bytes):
    """Largest divisor of T whose per-chunk buffers fit the budget."""
    def chunk_bytes(tc):
        return 2 * tc * Bb * Ep * 2 + tc * Bb * 4 * Hp * 4  # 2x bf16 x + f32 xproj
    best = 1
    for tc in range(1, T + 1):
        if T % tc == 0 and chunk_bytes(tc) <= budget_bytes:
            best = tc
    return best
    # TODO(synk): for very long prime T this degrades to Tc=1; a masked final
    # chunk (dynamic step count) would allow arbitrary Tc.


def _vmem_estimate(Tc, Bb, Ep, Hp, Cp):
    bf16, f32 = 2, 4
    weights = ((Ep + 3 * Hp) * 4 * Hp + Hp * Cp) * bf16
    biases = (8 * Hp + Cp) * f32
    x_bufs = 2 * Tc * Bb * Ep * bf16            # double-buffered input chunks
    xproj = Tc * Bb * 4 * Hp * f32              # scratch
    state = 4 * Bb * Hp * f32                   # h/c scratch
    out = 2 * Bb * Cp * f32
    return 2 * weights + 2 * biases + x_bufs + xproj + state + out


def decoder_rnn_forward(x_btE, kp, *, max_chunk_bytes=2 << 20):
    """x_btE: (B, T, E) float32 (batch_first, like the PyTorch module)."""
    B, T, E = x_btE.shape
    E0, H, C, Ep, Hp, Cp = kp["dims"]
    assert E == E0

    # Batch blocking: 2 blocks when the batch is big enough so v7x can shard
    # them across its two TensorCores (no effect on single-TC v5e/v6e).
    nb = 2 if B > 8 else 1
    Bp = _round_up(B, 8 * nb)
    Bb = Bp // nb

    Tc = _choose_time_chunk(T, Bb, Ep, Hp, max_chunk_bytes)
    nt = T // Tc

    # Fused transpose + bf16 cast + pad (one XLA fusion / one copy of x).
    x = jnp.pad(jnp.transpose(x_btE, (1, 0, 2)).astype(jnp.bfloat16),
                ((0, 0), (0, Bp - B), (0, Ep - E)))          # (T, Bp, Ep)

    vmem_limit = int(min(48 << 20,
                         max(8 << 20, 2 * _vmem_estimate(Tc, Bb, Ep, Hp, Cp))))

    full = lambda b, t: (0, 0)   # resident weights / biases
    grid_spec = pltpu.PrefetchScalarGridSpec(
        num_scalar_prefetch=0,
        grid=(nb, nt),
        in_specs=[
            pl.BlockSpec((Tc, Bb, Ep), lambda b, t: (t, b, 0)),   # x chunk
            pl.BlockSpec((Ep, 4 * Hp), full),                     # wih0
            pl.BlockSpec((Hp, 4 * Hp), full),                     # whh0
            pl.BlockSpec((1, 4 * Hp), full),                      # b0
            pl.BlockSpec((Hp, 4 * Hp), full),                     # wih1
            pl.BlockSpec((Hp, 4 * Hp), full),                     # whh1
            pl.BlockSpec((1, 4 * Hp), full),                      # b1
            pl.BlockSpec((Hp, Cp), full),                         # wfc
            pl.BlockSpec((1, Cp), full),                          # bfc
        ],
        out_specs=pl.BlockSpec((Bb, Cp), lambda b, t: (b, 0)),
        scratch_shapes=[pltpu.VMEM((Tc, Bb, 4 * Hp), jnp.float32)]  # xproj
                      + [pltpu.VMEM((Bb, Hp), jnp.float32)] * 4,    # h0 c0 h1 c1
    )

    out = pl.pallas_call(
        _lstm_decoder_kernel,
        out_shape=jax.ShapeDtypeStruct((Bp, Cp), jnp.float32),
        grid_spec=grid_spec,
        compiler_params=pltpu.CompilerParams(
            dimension_semantics=("parallel", "arbitrary"),
            vmem_limit_bytes=vmem_limit),
    )(x, kp["wih0"], kp["whh0"], kp["b0"],
      kp["wih1"], kp["whh1"], kp["b1"], kp["wfc"], kp["bfc"])
    return out[:B, :C]


def make_raw_params(key, E, H, C):
    """PyTorch-style LSTM/Linear init: uniform(-1/sqrt(H), 1/sqrt(H))."""
    ks = jax.random.split(key, 10)
    s = 1.0 / np.sqrt(H)
    u = lambda k, shape: jax.random.uniform(k, shape, jnp.float32, -s, s)
    w_ih0 = u(ks[0], (4 * H, E));  w_hh0 = u(ks[1], (4 * H, H))
    b_ih0 = u(ks[2], (4 * H,));    b_hh0 = u(ks[3], (4 * H,))
    w_ih1 = u(ks[4], (4 * H, H));  w_hh1 = u(ks[5], (4 * H, H))
    b_ih1 = u(ks[6], (4 * H,));    b_hh1 = u(ks[7], (4 * H,))
    w_fc = u(ks[8], (C, H));       b_fc = u(ks[9], (C,))
    return (w_ih0, w_hh0, b_ih0, b_hh0,
            w_ih1, w_hh1, b_ih1, b_hh1, w_fc, b_fc)


def reference_forward(x_btE, raw):
    """Pure-JAX f32 reference of the PyTorch DecoderRNN forward."""
    (w_ih0, w_hh0, b_ih0, b_hh0,
     w_ih1, w_hh1, b_ih1, b_hh1, w_fc, b_fc) = raw
    B, T, E = x_btE.shape
    H = w_hh0.shape[1]

    def cell(x_in, h, c, w_ih, w_hh, b_ih, b_hh):
        gates = x_in @ w_ih.T + b_ih + h @ w_hh.T + b_hh
        i = jax.nn.sigmoid(gates[:, 0 * H:1 * H])
        f = jax.nn.sigmoid(gates[:, 1 * H:2 * H])
        g = jnp.tanh(gates[:, 2 * H:3 * H])
        o = jax.nn.sigmoid(gates[:, 3 * H:4 * H])
        c_new = f * c + i * g
        return o * jnp.tanh(c_new), c_new

    h0 = c0 = h1 = c1 = jnp.zeros((B, H), jnp.float32)
    for t in range(T):
        x_t = x_btE[:, t, :]
        h0, c0 = cell(x_t, h0, c0, w_ih0, w_hh0, b_ih0, b_hh0)
        h1, c1 = cell(h0, h1, c1, w_ih1, w_hh1, b_ih1, b_hh1)
    return h1 @ w_fc.T + b_fc


if __name__ == "__main__":
    B, T, E, H, C = 4, 8, 32, 32, 16
    key = jax.random.PRNGKey(0)
    k_x, k_p = jax.random.split(key)
    x = jax.random.normal(k_x, (B, T, E), jnp.float32)

    raw = make_raw_params(k_p, E, H, C)
    kp = prepare_kernel_params(raw, E, H, C)

    out = decoder_rnn_forward(x, kp)
    out = jax.block_until_ready(out)

    ref = reference_forward(x, raw)
    # bf16 matmul operands (f32 accumulation) -> relaxed tolerance.
    np.testing.assert_allclose(np.asarray(out), np.asarray(ref),
                               rtol=3e-2, atol=3e-2)
    print("KERNEL_OK")
</pallas_src>

<mosaic_0001>
module attributes {stable_mosaic.version = 11 : i64} {
  func.func @_lstm_decoder_kernel(%arg0: i32, %arg1: i32, %arg2: memref<8x8x128xbf16, #tpu.memory_space<vmem>>, %arg3: memref<128x512xbf16, #tpu.memory_space<vmem>>, %arg4: memref<128x512xbf16, #tpu.memory_space<vmem>>, %arg5: memref<1x512xf32, #tpu.memory_space<vmem>>, %arg6: memref<128x512xbf16, #tpu.memory_space<vmem>>, %arg7: memref<128x512xbf16, #tpu.memory_space<vmem>>, %arg8: memref<1x512xf32, #tpu.memory_space<vmem>>, %arg9: memref<128x128xbf16, #tpu.memory_space<vmem>>, %arg10: memref<1x128xf32, #tpu.memory_space<vmem>>, %arg11: memref<8x128xf32, #tpu.memory_space<vmem>>, %arg12: memref<8x8x512xf32, #tpu.memory_space<vmem>>, %arg13: memref<8x128xf32, #tpu.memory_space<vmem>>, %arg14: memref<8x128xf32, #tpu.memory_space<vmem>>, %arg15: memref<8x128xf32, #tpu.memory_space<vmem>>, %arg16: memref<8x128xf32, #tpu.memory_space<vmem>>) attributes {dimension_semantics = [#tpu.dimension_semantics<parallel>, #tpu.dimension_semantics<arbitrary>], iteration_bounds = array<i64: 1, 1>, scalar_prefetch = 0 : i64, scratch_operands = 5 : i64, tpu.core_type = #tpu.core_type<tc>, window_params = [{transform_indices = @transform_0, window_bounds = array<i64: 8, 8, 128>}, {pipeline_mode = #tpu.pipeline_mode<synchronous>, transform_indices = @transform_1, window_bounds = array<i64: 128, 512>}, {pipeline_mode = #tpu.pipeline_mode<synchronous>, transform_indices = @transform_2, window_bounds = array<i64: 128, 512>}, {pipeline_mode = #tpu.pipeline_mode<synchronous>, transform_indices = @transform_3, window_bounds = array<i64: 1, 512>}, {pipeline_mode = #tpu.pipeline_mode<synchronous>, transform_indices = @transform_4, window_bounds = array<i64: 128, 512>}, {pipeline_mode = #tpu.pipeline_mode<synchronous>, transform_indices = @transform_5, window_bounds = array<i64: 128, 512>}, {pipeline_mode = #tpu.pipeline_mode<synchronous>, transform_indices = @transform_6, window_bounds = array<i64: 1, 512>}, {pipeline_mode = #tpu.pipeline_mode<synchronous>, transform_indices = @transform_7, window_bounds = array<i64: 128, 128>}, {pipeline_mode = #tpu.pipeline_mode<synchronous>, transform_indices = @transform_8, window_bounds = array<i64: 1, 128>}, {transform_indices = @transform_9, window_bounds = array<i64: 8, 128>}]} {
    %c0_i32 = arith.constant 0 : i32
    %0 = arith.cmpi eq, %arg1, %c0_i32 : i32
    %1 = arith.extui %0 : i1 to i32
    %c0_i32_0 = arith.constant 0 : i32
    %2 = arith.cmpi ne, %1, %c0_i32_0 : i32
    scf.if %2 {
      %cst_125 = arith.constant 0.000000e+00 : f32
      %525 = vector.broadcast %cst_125 : f32 to vector<8x128xf32>
      %c0_126 = arith.constant 0 : index
      %c0_127 = arith.constant 0 : index
      %526 = vector.load %arg13[%c0_126, %c0_127] : memref<8x128xf32, #tpu.memory_space<vmem>>, vector<8x128xf32>
      tpu.vector_store %arg13[%c0_126, %c0_127], %525 {strides = array<i32>} : memref<8x128xf32, #tpu.memory_space<vmem>>, vector<8x128xf32>,
      %c0_128 = arith.constant 0 : index
      %c0_129 = arith.constant 0 : index
      %527 = vector.load %arg14[%c0_128, %c0_129] : memref<8x128xf32, #tpu.memory_space<vmem>>, vector<8x128xf32>
      tpu.vector_store %arg14[%c0_128, %c0_129], %525 {strides = array<i32>} : memref<8x128xf32, #tpu.memory_space<vmem>>, vector<8x128xf32>,
      %c0_130 = arith.constant 0 : index
      %c0_131 = arith.constant 0 : index
      %528 = vector.load %arg15[%c0_130, %c0_131] : memref<8x128xf32, #tpu.memory_space<vmem>>, vector<8x128xf32>
      tpu.vector_store %arg15[%c0_130, %c0_131], %525 {strides = array<i32>} : memref<8x128xf32, #tpu.memory_space<vmem>>, vector<8x128xf32>,
      %c0_132 = arith.constant 0 : index
      %c0_133 = arith.constant 0 : index
      %529 = vector.load %arg16[%c0_132, %c0_133] : memref<8x128xf32, #tpu.memory_space<vmem>>, vector<8x128xf32>
      tpu.vector_store %arg16[%c0_132, %c0_133], %525 {strides = array<i32>} : memref<8x128xf32, #tpu.memory_space<vmem>>, vector<8x128xf32>,
    } else {
    }
    %c0 = arith.constant 0 : index
    %c0_1 = arith.constant 0 : index
    %c0_2 = arith.constant 0 : index
    %3 = vector.load %arg2[%c0, %c0_1, %c0_2] : memref<8x8x128xbf16, #tpu.memory_space<vmem>>, vector<8x8x128xbf16>
    %4 = vector.shape_cast %3 : vector<8x8x128xbf16> to vector<64x128xbf16>
    %c0_3 = arith.constant 0 : index
    %c0_4 = arith.constant 0 : index
    %5 = vector.load %arg3[%c0_3, %c0_4] : memref<128x512xbf16, #tpu.memory_space<vmem>>, vector<128x512xbf16>
    %cst = arith.constant dense<0.000000e+00> : vector<64x512xf32>
    %6 = tpu.matmul %4, %5, %cst {dimension_numbers = #tpu.dot_dimension_numbers<[1], [0], [0], [1], [0, 0, 1, 1], [], []>} : vector<64x128xbf16>, vector<128x512xbf16>, vector<64x512xf32> -> vector<64x512xf32>
    %c0_5 = arith.constant 0 : index
    %c0_6 = arith.constant 0 : index
    %7 = vector.load %arg5[%c0_5, %c0_6] : memref<1x512xf32, #tpu.memory_space<vmem>>, vector<1x512xf32>
    %8 = vector.broadcast %7 : vector<1x512xf32> to vector<64x512xf32>
    %9 = arith.addf %6, %8 : vector<64x512xf32>
    %10 = vector.shape_cast %9 : vector<64x512xf32> to vector<8x8x512xf32>
    %c0_7 = arith.constant 0 : index
    %c0_8 = arith.constant 0 : index
    %c0_9 = arith.constant 0 : index
    %11 = vector.load %arg12[%c0_7, %c0_8, %c0_9] : memref<8x8x512xf32, #tpu.memory_space<vmem>>, vector<8x8x512xf32>
    tpu.vector_store %arg12[%c0_7, %c0_8, %c0_9], %10 {strides = array<i32>} : memref<8x8x512xf32, #tpu.memory_space<vmem>>, vector<8x8x512xf32>,
    %c0_10 = arith.constant 0 : index
    %c0_11 = arith.constant 0 : index
    %12 = vector.load %arg4[%c0_10, %c0_11] : memref<128x512xbf16, #tpu.memory_space<vmem>>, vector<128x512xbf16>
    %c0_12 = arith.constant 0 : index
    %c0_13 = arith.constant 0 : index
    %13 = vector.load %arg6[%c0_12, %c0_13] : memref<128x512xbf16, #tpu.memory_space<vmem>>, vector<128x512xbf16>
    %c0_14 = arith.constant 0 : index
    %c0_15 = arith.constant 0 : index
    %14 = vector.load %arg7[%c0_14, %c0_15] : memref<128x512xbf16, #tpu.memory_space<vmem>>, vector<128x512xbf16>
    %c0_16 = arith.constant 0 : index
    %c0_17 = arith.constant 0 : index
    %15 = vector.load %arg8[%c0_16, %c0_17] : memref<1x512xf32, #tpu.memory_space<vmem>>, vector<1x512xf32>
    %16 = vector.shape_cast %15 : vector<1x512xf32> to vector<1x512xf32>
    %17 = vector.broadcast %16 : vector<1x512xf32> to vector<8x512xf32>
    %c0_18 = arith.constant 0 : index
    %c0_19 = arith.constant 0 : index
    %18 = vector.load %arg13[%c0_18, %c0_19] : memref<8x128xf32, #tpu.memory_space<vmem>>, vector<8x128xf32>
    %c0_20 = arith.constant 0 : index
    %c0_21 = arith.constant 0 : index
    %19 = vector.load %arg14[%c0_20, %c0_21] : memref<8x128xf32, #tpu.memory_space<vmem>>, vector<8x128xf32>
    %c0_22 = arith.constant 0 : index
    %c0_23 = arith.constant 0 : index
    %20 = vector.load %arg15[%c0_22, %c0_23] : memref<8x128xf32, #tpu.memory_space<vmem>>, vector<8x128xf32>
    %c0_24 = arith.constant 0 : index
    %c0_25 = arith.constant 0 : index
    %21 = vector.load %arg16[%c0_24, %c0_25] : memref<8x128xf32, #tpu.memory_space<vmem>>, vector<8x128xf32>
    %c0_i32_26 = arith.constant 0 : i32
    %22 = arith.truncf %20 : vector<8x128xf32> to vector<8x128xbf16>
    %cst_27 = arith.constant dense<0.000000e+00> : vector<8x512xf32>
    %23 = tpu.matmul %22, %14, %cst_27 {dimension_numbers = #tpu.dot_dimension_numbers<[1], [0], [0], [1], [0, 0, 1, 1], [], []>} : vector<8x128xbf16>, vector<128x512xbf16>, vector<8x512xf32> -> vector<8x512xf32>
    %24 = arith.index_cast %c0_i32_26 : i32 to index
    %c0_28 = arith.constant 0 : index
    %c0_29 = arith.constant 0 : index
    %25 = vector.load %arg12[%24, %c0_28, %c0_29] : memref<8x8x512xf32, #tpu.memory_space<vmem>>, vector<1x8x512xf32>
    %26 = vector.shape_cast %25 : vector<1x8x512xf32> to vector<8x512xf32>
    %27 = arith.truncf %18 : vector<8x128xf32> to vector<8x128xbf16>
    %cst_30 = arith.constant dense<0.000000e+00> : vector<8x512xf32>
    %28 = tpu.matmul %27, %12, %cst_30 {dimension_numbers = #tpu.dot_dimension_numbers<[1], [0], [0], [1], [0, 0, 1, 1], [], []>} : vector<8x128xbf16>, vector<128x512xbf16>, vector<8x512xf32> -> vector<8x512xf32>
    %29 = arith.addf %26, %28 : vector<8x512xf32>
    %30 = vector.extract_strided_slice %29 {offsets = [0, 0], sizes = [8, 128], strides = [1, 1]} : vector<8x512xf32> to vector<8x128xf32>
    %31 = arith.negf %30 : vector<8x128xf32>
    %32 = math.exp %31 : vector<8x128xf32>
    %cst_31 = arith.constant 1.000000e+00 : f32
    %33 = vector.broadcast %cst_31 : f32 to vector<8x128xf32>
    %34 = arith.addf %33, %32 : vector<8x128xf32>
    %35 = arith.divf %33, %34 : vector<8x128xf32>
    %36 = vector.extract_strided_slice %29 {offsets = [0, 128], sizes = [8, 128], strides = [1, 1]} : vector<8x512xf32> to vector<8x128xf32>
    %37 = arith.negf %36 : vector<8x128xf32>
    %38 = math.exp %37 : vector<8x128xf32>
    %cst_32 = arith.constant 1.000000e+00 : f32
    %39 = vector.broadcast %cst_32 : f32 to vector<8x128xf32>
    %40 = arith.addf %39, %38 : vector<8x128xf32>
    %41 = arith.divf %39, %40 : vector<8x128xf32>
    %42 = vector.extract_strided_slice %29 {offsets = [0, 256], sizes = [8, 128], strides = [1, 1]} : vector<8x512xf32> to vector<8x128xf32>
    %43 = math.tanh %42 : vector<8x128xf32>
    %44 = vector.extract_strided_slice %29 {offsets = [0, 384], sizes = [8, 128], strides = [1, 1]} : vector<8x512xf32> to vector<8x128xf32>
    %45 = arith.negf %44 : vector<8x128xf32>
    %46 = math.exp %45 : vector<8x128xf32>
    %cst_33 = arith.constant 1.000000e+00 : f32
    %47 = vector.broadcast %cst_33 : f32 to vector<8x128xf32>
    %48 = arith.addf %47, %46 : vector<8x128xf32>
    %49 = arith.divf %47, %48 : vector<8x128xf32>
    %50 = arith.mulf %41, %19 : vector<8x128xf32>
    %51 = arith.mulf %35, %43 : vector<8x128xf32>
    %52 = arith.addf %50, %51 : vector<8x128xf32>
    %53 = math.tanh %52 : vector<8x128xf32>
    %54 = arith.mulf %49, %53 : vector<8x128xf32>
    %55 = arith.truncf %54 : vector<8x128xf32> to vector<8x128xbf16>
    %cst_34 = arith.constant dense<0.000000e+00> : vector<8x512xf32>
    %56 = tpu.matmul %55, %13, %cst_34 {dimension_numbers = #tpu.dot_dimension_numbers<[1], [0], [0], [1], [0, 0, 1, 1], [], []>} : vector<8x128xbf16>, vector<128x512xbf16>, vector<8x512xf32> -> vector<8x512xf32>
    %57 = arith.addf %23, %56 : vector<8x512xf32>
    %58 = arith.addf %57, %17 : vector<8x512xf32>
    %59 = vector.extract_strided_slice %58 {offsets = [0, 0], sizes = [8, 128], strides = [1, 1]} : vector<8x512xf32> to vector<8x128xf32>
    %60 = arith.negf %59 : vector<8x128xf32>
    %61 = math.exp %60 : vector<8x128xf32>
    %cst_35 = arith.constant 1.000000e+00 : f32
    %62 = vector.broadcast %cst_35 : f32 to vector<8x128xf32>
    %63 = arith.addf %62, %61 : vector<8x128xf32>
    %64 = arith.divf %62, %63 : vector<8x128xf32>
    %65 = vector.extract_strided_slice %58 {offsets = [0, 128], sizes = [8, 128], strides = [1, 1]} : vector<8x512xf32> to vector<8x128xf32>
    %66 = arith.negf %65 : vector<8x128xf32>
    %67 = math.exp %66 : vector<8x128xf32>
    %cst_36 = arith.constant 1.000000e+00 : f32
    %68 = vector.broadcast %cst_36 : f32 to vector<8x128xf32>
    %69 = arith.addf %68, %67 : vector<8x128xf32>
    %70 = arith.divf %68, %69 : vector<8x128xf32>
    %71 = vector.extract_strided_slice %58 {offsets = [0, 256], sizes = [8, 128], strides = [1, 1]} : vector<8x512xf32> to vector<8x128xf32>
    %72 = math.tanh %71 : vector<8x128xf32>
    %73 = vector.extract_strided_slice %58 {offsets = [0, 384], sizes = [8, 128], strides = [1, 1]} : vector<8x512xf32> to vector<8x128xf32>
    %74 = arith.negf %73 : vector<8x128xf32>
    %75 = math.exp %74 : vector<8x128xf32>
    %cst_37 = arith.constant 1.000000e+00 : f32
    %76 = vector.broadcast %cst_37 : f32 to vector<8x128xf32>
    %77 = arith.addf %76, %75 : vector<8x128xf32>
    %78 = arith.divf %76, %77 : vector<8x128xf32>
    %79 = arith.mulf %70, %21 : vector<8x128xf32>
    %80 = arith.mulf %64, %72 : vector<8x128xf32>
    %81 = arith.addf %79, %80 : vector<8x128xf32>
    %82 = math.tanh %81 : vector<8x128xf32>
    %83 = arith.mulf %78, %82 : vector<8x128xf32>
    %c1_i32 = arith.constant 1 : i32
    %84 = arith.truncf %83 : vector<8x128xf32> to vector<8x128xbf16>
    %cst_38 = arith.constant dense<0.000000e+00> : vector<8x512xf32>
    %85 = tpu.matmul %84, %14, %cst_38 {dimension_numbers = #tpu.dot_dimension_numbers<[1], [0], [0], [1], [0, 0, 1, 1], [], []>} : vector<8x128xbf16>, vector<128x512xbf16>, vector<8x512xf32> -> vector<8x512xf32>
    %86 = arith.index_cast %c1_i32 : i32 to index
    %c0_39 = arith.constant 0 : index
    %c0_40 = arith.constant 0 : index
    %87 = vector.load %arg12[%86, %c0_39, %c0_40] : memref<8x8x512xf32, #tpu.memory_space<vmem>>, vector<1x8x512xf32>
    %88 = vector.shape_cast %87 : vector<1x8x512xf32> to vector<8x512xf32>
    %89 = arith.truncf %54 : vector<8x128xf32> to vector<8x128xbf16>
    %cst_41 = arith.constant dense<0.000000e+00> : vector<8x512xf32>
    %90 = tpu.matmul %89, %12, %cst_41 {dimension_numbers = #tpu.dot_dimension_numbers<[1], [0], [0], [1], [0, 0, 1, 1], [], []>} : vector<8x128xbf16>, vector<128x512xbf16>, vector<8x512xf32> -> vector<8x512xf32>
    %91 = arith.addf %88, %90 : vector<8x512xf32>
    %92 = vector.extract_strided_slice %91 {offsets = [0, 0], sizes = [8, 128], strides = [1, 1]} : vector<8x512xf32> to vector<8x128xf32>
    %93 = arith.negf %92 : vector<8x128xf32>
    %94 = math.exp %93 : vector<8x128xf32>
    %cst_42 = arith.constant 1.000000e+00 : f32
    %95 = vector.broadcast %cst_42 : f32 to vector<8x128xf32>
    %96 = arith.addf %95, %94 : vector<8x128xf32>
    %97 = arith.divf %95, %96 : vector<8x128xf32>
    %98 = vector.extract_strided_slice %91 {offsets = [0, 128], sizes = [8, 128], strides = [1, 1]} : vector<8x512xf32> to vector<8x128xf32>
    %99 = arith.negf %98 : vector<8x128xf32>
    %100 = math.exp %99 : vector<8x128xf32>
    %cst_43 = arith.constant 1.000000e+00 : f32
    %101 = vector.broadcast %cst_43 : f32 to vector<8x128xf32>
    %102 = arith.addf %101, %100 : vector<8x128xf32>
    %103 = arith.divf %101, %102 : vector<8x128xf32>
    %104 = vector.extract_strided_slice %91 {offsets = [0, 256], sizes = [8, 128], strides = [1, 1]} : vector<8x512xf32> to vector<8x128xf32>
    %105 = math.tanh %104 : vector<8x128xf32>
    %106 = vector.extract_strided_slice %91 {offsets = [0, 384], sizes = [8, 128], strides = [1, 1]} : vector<8x512xf32> to vector<8x128xf32>
    %107 = arith.negf %106 : vector<8x128xf32>
    %108 = math.exp %107 : vector<8x128xf32>
    %cst_44 = arith.constant 1.000000e+00 : f32
    %109 = vector.broadcast %cst_44 : f32 to vector<8x128xf32>
    %110 = arith.addf %109, %108 : vector<8x128xf32>
    %111 = arith.divf %109, %110 : vector<8x128xf32>
    %112 = arith.mulf %103, %52 : vector<8x128xf32>
    %113 = arith.mulf %97, %105 : vector<8x128xf32>
    %114 = arith.addf %112, %113 : vector<8x128xf32>
    %115 = math.tanh %114 : vector<8x128xf32>
    %116 = arith.mulf %111, %115 : vector<8x128xf32>
    %117 = arith.truncf %116 : vector<8x128xf32> to vector<8x128xbf16>
    %cst_45 = arith.constant dense<0.000000e+00> : vector<8x512xf32>
    %118 = tpu.matmul %117, %13, %cst_45 {dimension_numbers = #tpu.dot_dimension_numbers<[1], [0], [0], [1], [0, 0, 1, 1], [], []>} : vector<8x128xbf16>, vector<128x512xbf16>, vector<8x512xf32> -> vector<8x512xf32>
    %119 = arith.addf %85, %118 : vector<8x512xf32>
    %120 = arith.addf %119, %17 : vector<8x512xf32>
    %121 = vector.extract_strided_slice %120 {offsets = [0, 0], sizes = [8, 128], strides = [1, 1]} : vector<8x512xf32> to vector<8x128xf32>
    %122 = arith.negf %121 : vector<8x128xf32>
    %123 = math.exp %122 : vector<8x128xf32>
    %cst_46 = arith.constant 1.000000e+00 : f32
    %124 = vector.broadcast %cst_46 : f32 to vector<8x128xf32>
    %125 = arith.addf %124, %123 : vector<8x128xf32>
    %126 = arith.divf %124, %125 : vector<8x128xf32>
    %127 = vector.extract_strided_slice %120 {offsets = [0, 128], sizes = [8, 128], strides = [1, 1]} : vector<8x512xf32> to vector<8x128xf32>
    %128 = arith.negf %127 : vector<8x128xf32>
    %129 = math.exp %128 : vector<8x128xf32>
    %cst_47 = arith.constant 1.000000e+00 : f32
    %130 = vector.broadcast %cst_47 : f32 to vector<8x128xf32>
    %131 = arith.addf %130, %129 : vector<8x128xf32>
    %132 = arith.divf %130, %131 : vector<8x128xf32>
    %133 = vector.extract_strided_slice %120 {offsets = [0, 256], sizes = [8, 128], strides = [1, 1]} : vector<8x512xf32> to vector<8x128xf32>
    %134 = math.tanh %133 : vector<8x128xf32>
    %135 = vector.extract_strided_slice %120 {offsets = [0, 384], sizes = [8, 128], strides = [1, 1]} : vector<8x512xf32> to vector<8x128xf32>
    %136 = arith.negf %135 : vector<8x128xf32>
    %137 = math.exp %136 : vector<8x128xf32>
    %cst_48 = arith.constant 1.000000e+00 : f32
    %138 = vector.broadcast %cst_48 : f32 to vector<8x128xf32>
    %139 = arith.addf %138, %137 : vector<8x128xf32>
    %140 = arith.divf %138, %139 : vector<8x128xf32>
    %141 = arith.mulf %132, %81 : vector<8x128xf32>
    %142 = arith.mulf %126, %134 : vector<8x128xf32>
    %143 = arith.addf %141, %142 : vector<8x128xf32>
    %144 = math.tanh %143 : vector<8x128xf32>
    %145 = arith.mulf %140, %144 : vector<8x128xf32>
    %c2_i32 = arith.constant 2 : i32
    %146 = arith.truncf %145 : vector<8x128xf32> to vector<8x128xbf16>
    %cst_49 = arith.constant dense<0.000000e+00> : vector<8x512xf32>
    %147 = tpu.matmul %146, %14, %cst_49 {dimension_numbers = #tpu.dot_dimension_numbers<[1], [0], [0], [1], [0, 0, 1, 1], [], []>} : vector<8x128xbf16>, vector<128x512xbf16>, vector<8x512xf32> -> vector<8x512xf32>
    %148 = arith.index_cast %c2_i32 : i32 to index
    %c0_50 = arith.constant 0 : index
    %c0_51 = arith.constant 0 : index
    %149 = vector.load %arg12[%148, %c0_50, %c0_51] : memref<8x8x512xf32, #tpu.memory_space<vmem>>, vector<1x8x512xf32>
    %150 = vector.shape_cast %149 : vector<1x8x512xf32> to vector<8x512xf32>
    %151 = arith.truncf %116 : vector<8x128xf32> to vector<8x128xbf16>
    %cst_52 = arith.constant dense<0.000000e+00> : vector<8x512xf32>
    %152 = tpu.matmul %151, %12, %cst_52 {dimension_numbers = #tpu.dot_dimension_numbers<[1], [0], [0], [1], [0, 0, 1, 1], [], []>} : vector<8x128xbf16>, vector<128x512xbf16>, vector<8x512xf32> -> vector<8x512xf32>
    %153 = arith.addf %150, %152 : vector<8x512xf32>
    %154 = vector.extract_strided_slice %153 {offsets = [0, 0], sizes = [8, 128], strides = [1, 1]} : vector<8x512xf32> to vector<8x128xf32>
    %155 = arith.negf %154 : vector<8x128xf32>
    %156 = math.exp %155 : vector<8x128xf32>
    %cst_53 = arith.constant 1.000000e+00 : f32
    %157 = vector.broadcast %cst_53 : f32 to vector<8x128xf32>
    %158 = arith.addf %157, %156 : vector<8x128xf32>
    %159 = arith.divf %157, %158 : vector<8x128xf32>
    %160 = vector.extract_strided_slice %153 {offsets = [0, 128], sizes = [8, 128], strides = [1, 1]} : vector<8x512xf32> to vector<8x128xf32>
    %161 = arith.negf %160 : vector<8x128xf32>
    %162 = math.exp %161 : vector<8x128xf32>
    %cst_54 = arith.constant 1.000000e+00 : f32
    %163 = vector.broadcast %cst_54 : f32 to vector<8x128xf32>
    %164 = arith.addf %163, %162 : vector<8x128xf32>
    %165 = arith.divf %163, %164 : vector<8x128xf32>
    %166 = vector.extract_strided_slice %153 {offsets = [0, 256], sizes = [8, 128], strides = [1, 1]} : vector<8x512xf32> to vector<8x128xf32>
    %167 = math.tanh %166 : vector<8x128xf32>
    %168 = vector.extract_strided_slice %153 {offsets = [0, 384], sizes = [8, 128], strides = [1, 1]} : vector<8x512xf32> to vector<8x128xf32>
    %169 = arith.negf %168 : vector<8x128xf32>
    %170 = math.exp %169 : vector<8x128xf32>
    %cst_55 = arith.constant 1.000000e+00 : f32
    %171 = vector.broadcast %cst_55 : f32 to vector<8x128xf32>
    %172 = arith.addf %171, %170 : vector<8x128xf32>
    %173 = arith.divf %171, %172 : vector<8x128xf32>
    %174 = arith.mulf %165, %114 : vector<8x128xf32>
    %175 = arith.mulf %159, %167 : vector<8x128xf32>
    %176 = arith.addf %174, %175 : vector<8x128xf32>
    %177 = math.tanh %176 : vector<8x128xf32>
    %178 = arith.mulf %173, %177 : vector<8x128xf32>
    %179 = arith.truncf %178 : vector<8x128xf32> to vector<8x128xbf16>
    %cst_56 = arith.constant dense<0.000000e+00> : vector<8x512xf32>
    %180 = tpu.matmul %179, %13, %cst_56 {dimension_numbers = #tpu.dot_dimension_numbers<[1], [0], [0], [1], [0, 0, 1, 1], [], []>} : vector<8x128xbf16>, vector<128x512xbf16>, vector<8x512xf32> -> vector<8x512xf32>
    %181 = arith.addf %147, %180 : vector<8x512xf32>
    %182 = arith.addf %181, %17 : vector<8x512xf32>
    %183 = vector.extract_strided_slice %182 {offsets = [0, 0], sizes = [8, 128], strides = [1, 1]} : vector<8x512xf32> to vector<8x128xf32>
    %184 = arith.negf %183 : vector<8x128xf32>
    %185 = math.exp %184 : vector<8x128xf32>
    %cst_57 = arith.constant 1.000000e+00 : f32
    %186 = vector.broadcast %cst_57 : f32 to vector<8x128xf32>
    %187 = arith.addf %186, %185 : vector<8x128xf32>
    %188 = arith.divf %186, %187 : vector<8x128xf32>
    %189 = vector.extract_strided_slice %182 {offsets = [0, 128], sizes = [8, 128], strides = [1, 1]} : vector<8x512xf32> to vector<8x128xf32>
    %190 = arith.negf %189 : vector<8x128xf32>
    %191 = math.exp %190 : vector<8x128xf32>
    %cst_58 = arith.constant 1.000000e+00 : f32
    %192 = vector.broadcast %cst_58 : f32 to vector<8x128xf32>
    %193 = arith.addf %192, %191 : vector<8x128xf32>
    %194 = arith.divf %192, %193 : vector<8x128xf32>
    %195 = vector.extract_strided_slice %182 {offsets = [0, 256], sizes = [8, 128], strides = [1, 1]} : vector<8x512xf32> to vector<8x128xf32>
    %196 = math.tanh %195 : vector<8x128xf32>
    %197 = vector.extract_strided_slice %182 {offsets = [0, 384], sizes = [8, 128], strides = [1, 1]} : vector<8x512xf32> to vector<8x128xf32>
    %198 = arith.negf %197 : vector<8x128xf32>
    %199 = math.exp %198 : vector<8x128xf32>
    %cst_59 = arith.constant 1.000000e+00 : f32
    %200 = vector.broadcast %cst_59 : f32 to vector<8x128xf32>
    %201 = arith.addf %200, %199 : vector<8x128xf32>
    %202 = arith.divf %200, %201 : vector<8x128xf32>
    %203 = arith.mulf %194, %143 : vector<8x128xf32>
    %204 = arith.mulf %188, %196 : vector<8x128xf32>
    %205 = arith.addf %203, %204 : vector<8x128xf32>
    %206 = math.tanh %205 : vector<8x128xf32>
    %207 = arith.mulf %202, %206 : vector<8x128xf32>
    %c3_i32 = arith.constant 3 : i32
    %208 = arith.truncf %207 : vector<8x128xf32> to vector<8x128xbf16>
    %cst_60 = arith.constant dense<0.000000e+00> : vector<8x512xf32>
    %209 = tpu.matmul %208, %14, %cst_60 {dimension_numbers = #tpu.dot_dimension_numbers<[1], [0], [0], [1], [0, 0, 1, 1], [], []>} : vector<8x128xbf16>, vector<128x512xbf16>, vector<8x512xf32> -> vector<8x512xf32>
    %210 = arith.index_cast %c3_i32 : i32 to index
    %c0_61 = arith.constant 0 : index
    %c0_62 = arith.constant 0 : index
    %211 = vector.load %arg12[%210, %c0_61, %c0_62] : memref<8x8x512xf32, #tpu.memory_space<vmem>>, vector<1x8x512xf32>
    %212 = vector.shape_cast %211 : vector<1x8x512xf32> to vector<8x512xf32>
    %213 = arith.truncf %178 : vector<8x128xf32> to vector<8x128xbf16>
    %cst_63 = arith.constant dense<0.000000e+00> : vector<8x512xf32>
    %214 = tpu.matmul %213, %12, %cst_63 {dimension_numbers = #tpu.dot_dimension_numbers<[1], [0], [0], [1], [0, 0, 1, 1], [], []>} : vector<8x128xbf16>, vector<128x512xbf16>, vector<8x512xf32> -> vector<8x512xf32>
    %215 = arith.addf %212, %214 : vector<8x512xf32>
    %216 = vector.extract_strided_slice %215 {offsets = [0, 0], sizes = [8, 128], strides = [1, 1]} : vector<8x512xf32> to vector<8x128xf32>
    %217 = arith.negf %216 : vector<8x128xf32>
    %218 = math.exp %217 : vector<8x128xf32>
    %cst_64 = arith.constant 1.000000e+00 : f32
    %219 = vector.broadcast %cst_64 : f32 to vector<8x128xf32>
    %220 = arith.addf %219, %218 : vector<8x128xf32>
    %221 = arith.divf %219, %220 : vector<8x128xf32>
    %222 = vector.extract_strided_slice %215 {offsets = [0, 128], sizes = [8, 128], strides = [1, 1]} : vector<8x512xf32> to vector<8x128xf32>
    %223 = arith.negf %222 : vector<8x128xf32>
    %224 = math.exp %223 : vector<8x128xf32>
    %cst_65 = arith.constant 1.000000e+00 : f32
    %225 = vector.broadcast %cst_65 : f32 to vector<8x128xf32>
    %226 = arith.addf %225, %224 : vector<8x128xf32>
    %227 = arith.divf %225, %226 : vector<8x128xf32>
    %228 = vector.extract_strided_slice %215 {offsets = [0, 256], sizes = [8, 128], strides = [1, 1]} : vector<8x512xf32> to vector<8x128xf32>
    %229 = math.tanh %228 : vector<8x128xf32>
    %230 = vector.extract_strided_slice %215 {offsets = [0, 384], sizes = [8, 128], strides = [1, 1]} : vector<8x512xf32> to vector<8x128xf32>
    %231 = arith.negf %230 : vector<8x128xf32>
    %232 = math.exp %231 : vector<8x128xf32>
    %cst_66 = arith.constant 1.000000e+00 : f32
    %233 = vector.broadcast %cst_66 : f32 to vector<8x128xf32>
    %234 = arith.addf %233, %232 : vector<8x128xf32>
    %235 = arith.divf %233, %234 : vector<8x128xf32>
    %236 = arith.mulf %227, %176 : vector<8x128xf32>
    %237 = arith.mulf %221, %229 : vector<8x128xf32>
    %238 = arith.addf %236, %237 : vector<8x128xf32>
    %239 = math.tanh %238 : vector<8x128xf32>
    %240 = arith.mulf %235, %239 : vector<8x128xf32>
    %241 = arith.truncf %240 : vector<8x128xf32> to vector<8x128xbf16>
    %cst_67 = arith.constant dense<0.000000e+00> : vector<8x512xf32>
    %242 = tpu.matmul %241, %13, %cst_67 {dimension_numbers = #tpu.dot_dimension_numbers<[1], [0], [0], [1], [0, 0, 1, 1], [], []>} : vector<8x128xbf16>, vector<128x512xbf16>, vector<8x512xf32> -> vector<8x512xf32>
    %243 = arith.addf %209, %242 : vector<8x512xf32>
    %244 = arith.addf %243, %17 : vector<8x512xf32>
    %245 = vector.extract_strided_slice %244 {offsets = [0, 0], sizes = [8, 128], strides = [1, 1]} : vector<8x512xf32> to vector<8x128xf32>
    %246 = arith.negf %245 : vector<8x128xf32>
    %247 = math.exp %246 : vector<8x128xf32>
    %cst_68 = arith.constant 1.000000e+00 : f32
    %248 = vector.broadcast %cst_68 : f32 to vector<8x128xf32>
    %249 = arith.addf %248, %247 : vector<8x128xf32>
    %250 = arith.divf %248, %249 : vector<8x128xf32>
    %251 = vector.extract_strided_slice %244 {offsets = [0, 128], sizes = [8, 128], strides = [1, 1]} : vector<8x512xf32> to vector<8x128xf32>
    %252 = arith.negf %251 : vector<8x128xf32>
    %253 = math.exp %252 : vector<8x128xf32>
    %cst_69 = arith.constant 1.000000e+00 : f32
    %254 = vector.broadcast %cst_69 : f32 to vector<8x128xf32>
    %255 = arith.addf %254, %253 : vector<8x128xf32>
    %256 = arith.divf %254, %255 : vector<8x128xf32>
    %257 = vector.extract_strided_slice %244 {offsets = [0, 256], sizes = [8, 128], strides = [1, 1]} : vector<8x512xf32> to vector<8x128xf32>
    %258 = math.tanh %257 : vector<8x128xf32>
    %259 = vector.extract_strided_slice %244 {offsets = [0, 384], sizes = [8, 128], strides = [1, 1]} : vector<8x512xf32> to vector<8x128xf32>
    %260 = arith.negf %259 : vector<8x128xf32>
    %261 = math.exp %260 : vector<8x128xf32>
    %cst_70 = arith.constant 1.000000e+00 : f32
    %262 = vector.broadcast %cst_70 : f32 to vector<8x128xf32>
    %263 = arith.addf %262, %261 : vector<8x128xf32>
    %264 = arith.divf %262, %263 : vector<8x128xf32>
    %265 = arith.mulf %256, %205 : vector<8x128xf32>
    %266 = arith.mulf %250, %258 : vector<8x128xf32>
    %267 = arith.addf %265, %266 : vector<8x128xf32>
    %268 = math.tanh %267 : vector<8x128xf32>
    %269 = arith.mulf %264, %268 : vector<8x128xf32>
    %c4_i32 = arith.constant 4 : i32
    %270 = arith.truncf %269 : vector<8x128xf32> to vector<8x128xbf16>
    %cst_71 = arith.constant dense<0.000000e+00> : vector<8x512xf32>
    %271 = tpu.matmul %270, %14, %cst_71 {dimension_numbers = #tpu.dot_dimension_numbers<[1], [0], [0], [1], [0, 0, 1, 1], [], []>} : vector<8x128xbf16>, vector<128x512xbf16>, vector<8x512xf32> -> vector<8x512xf32>
    %272 = arith.index_cast %c4_i32 : i32 to index
    %c0_72 = arith.constant 0 : index
    %c0_73 = arith.constant 0 : index
    %273 = vector.load %arg12[%272, %c0_72, %c0_73] : memref<8x8x512xf32, #tpu.memory_space<vmem>>, vector<1x8x512xf32>
    %274 = vector.shape_cast %273 : vector<1x8x512xf32> to vector<8x512xf32>
    %275 = arith.truncf %240 : vector<8x128xf32> to vector<8x128xbf16>
    %cst_74 = arith.constant dense<0.000000e+00> : vector<8x512xf32>
    %276 = tpu.matmul %275, %12, %cst_74 {dimension_numbers = #tpu.dot_dimension_numbers<[1], [0], [0], [1], [0, 0, 1, 1], [], []>} : vector<8x128xbf16>, vector<128x512xbf16>, vector<8x512xf32> -> vector<8x512xf32>
    %277 = arith.addf %274, %276 : vector<8x512xf32>
    %278 = vector.extract_strided_slice %277 {offsets = [0, 0], sizes = [8, 128], strides = [1, 1]} : vector<8x512xf32> to vector<8x128xf32>
    %279 = arith.negf %278 : vector<8x128xf32>
    %280 = math.exp %279 : vector<8x128xf32>
    %cst_75 = arith.constant 1.000000e+00 : f32
    %281 = vector.broadcast %cst_75 : f32 to vector<8x128xf32>
    %282 = arith.addf %281, %280 : vector<8x128xf32>
    %283 = arith.divf %281, %282 : vector<8x128xf32>
    %284 = vector.extract_strided_slice %277 {offsets = [0, 128], sizes = [8, 128], strides = [1, 1]} : vector<8x512xf32> to vector<8x128xf32>
    %285 = arith.negf %284 : vector<8x128xf32>
    %286 = math.exp %285 : vector<8x128xf32>
    %cst_76 = arith.constant 1.000000e+00 : f32
    %287 = vector.broadcast %cst_76 : f32 to vector<8x128xf32>
    %288 = arith.addf %287, %286 : vector<8x128xf32>
    %289 = arith.divf %287, %288 : vector<8x128xf32>
    %290 = vector.extract_strided_slice %277 {offsets = [0, 256], sizes = [8, 128], strides = [1, 1]} : vector<8x512xf32> to vector<8x128xf32>
    %291 = math.tanh %290 : vector<8x128xf32>
    %292 = vector.extract_strided_slice %277 {offsets = [0, 384], sizes = [8, 128], strides = [1, 1]} : vector<8x512xf32> to vector<8x128xf32>
    %293 = arith.negf %292 : vector<8x128xf32>
    %294 = math.exp %293 : vector<8x128xf32>
    %cst_77 = arith.constant 1.000000e+00 : f32
    %295 = vector.broadcast %cst_77 : f32 to vector<8x128xf32>
    %296 = arith.addf %295, %294 : vector<8x128xf32>
    %297 = arith.divf %295, %296 : vector<8x128xf32>
    %298 = arith.mulf %289, %238 : vector<8x128xf32>
    %299 = arith.mulf %283, %291 : vector<8x128xf32>
    %300 = arith.addf %298, %299 : vector<8x128xf32>
    %301 = math.tanh %300 : vector<8x128xf32>
    %302 = arith.mulf %297, %301 : vector<8x128xf32>
    %303 = arith.truncf %302 : vector<8x128xf32> to vector<8x128xbf16>
    %cst_78 = arith.constant dense<0.000000e+00> : vector<8x512xf32>
    %304 = tpu.matmul %303, %13, %cst_78 {dimension_numbers = #tpu.dot_dimension_numbers<[1], [0], [0], [1], [0, 0, 1, 1], [], []>} : vector<8x128xbf16>, vector<128x512xbf16>, vector<8x512xf32> -> vector<8x512xf32>
    %305 = arith.addf %271, %304 : vector<8x512xf32>
    %306 = arith.addf %305, %17 : vector<8x512xf32>
    %307 = vector.extract_strided_slice %306 {offsets = [0, 0], sizes = [8, 128], strides = [1, 1]} : vector<8x512xf32> to vector<8x128xf32>
    %308 = arith.negf %307 : vector<8x128xf32>
    %309 = math.exp %308 : vector<8x128xf32>
    %cst_79 = arith.constant 1.000000e+00 : f32
    %310 = vector.broadcast %cst_79 : f32 to vector<8x128xf32>
    %311 = arith.addf %310, %309 : vector<8x128xf32>
    %312 = arith.divf %310, %311 : vector<8x128xf32>
    %313 = vector.extract_strided_slice %306 {offsets = [0, 128], sizes = [8, 128], strides = [1, 1]} : vector<8x512xf32> to vector<8x128xf32>
    %314 = arith.negf %313 : vector<8x128xf32>
    %315 = math.exp %314 : vector<8x128xf32>
    %cst_80 = arith.constant 1.000000e+00 : f32
    %316 = vector.broadcast %cst_80 : f32 to vector<8x128xf32>
    %317 = arith.addf %316, %315 : vector<8x128xf32>
    %318 = arith.divf %316, %317 : vector<8x128xf32>
    %319 = vector.extract_strided_slice %306 {offsets = [0, 256], sizes = [8, 128], strides = [1, 1]} : vector<8x512xf32> to vector<8x128xf32>
    %320 = math.tanh %319 : vector<8x128xf32>
    %321 = vector.extract_strided_slice %306 {offsets = [0, 384], sizes = [8, 128], strides = [1, 1]} : vector<8x512xf32> to vector<8x128xf32>
    %322 = arith.negf %321 : vector<8x128xf32>
    %323 = math.exp %322 : vector<8x128xf32>
    %cst_81 = arith.constant 1.000000e+00 : f32
    %324 = vector.broadcast %cst_81 : f32 to vector<8x128xf32>
    %325 = arith.addf %324, %323 : vector<8x128xf32>
    %326 = arith.divf %324, %325 : vector<8x128xf32>
    %327 = arith.mulf %318, %267 : vector<8x128xf32>
    %328 = arith.mulf %312, %320 : vector<8x128xf32>
    %329 = arith.addf %327, %328 : vector<8x128xf32>
    %330 = math.tanh %329 : vector<8x128xf32>
    %331 = arith.mulf %326, %330 : vector<8x128xf32>
    %c5_i32 = arith.constant 5 : i32
    %332 = arith.truncf %331 : vector<8x128xf32> to vector<8x128xbf16>
    %cst_82 = arith.constant dense<0.000000e+00> : vector<8x512xf32>
    %333 = tpu.matmul %332, %14, %cst_82 {dimension_numbers = #tpu.dot_dimension_numbers<[1], [0], [0], [1], [0, 0, 1, 1], [], []>} : vector<8x128xbf16>, vector<128x512xbf16>, vector<8x512xf32> -> vector<8x512xf32>
    %334 = arith.index_cast %c5_i32 : i32 to index
    %c0_83 = arith.constant 0 : index
    %c0_84 = arith.constant 0 : index
    %335 = vector.load %arg12[%334, %c0_83, %c0_84] : memref<8x8x512xf32, #tpu.memory_space<vmem>>, vector<1x8x512xf32>
    %336 = vector.shape_cast %335 : vector<1x8x512xf32> to vector<8x512xf32>
    %337 = arith.truncf %302 : vector<8x128xf32> to vector<8x128xbf16>
    %cst_85 = arith.constant dense<0.000000e+00> : vector<8x512xf32>
    %338 = tpu.matmul %337, %12, %cst_85 {dimension_numbers = #tpu.dot_dimension_numbers<[1], [0], [0], [1], [0, 0, 1, 1], [], []>} : vector<8x128xbf16>, vector<128x512xbf16>, vector<8x512xf32> -> vector<8x512xf32>
    %339 = arith.addf %336, %338 : vector<8x512xf32>
    %340 = vector.extract_strided_slice %339 {offsets = [0, 0], sizes = [8, 128], strides = [1, 1]} : vector<8x512xf32> to vector<8x128xf32>
    %341 = arith.negf %340 : vector<8x128xf32>
    %342 = math.exp %341 : vector<8x128xf32>
    %cst_86 = arith.constant 1.000000e+00 : f32
    %343 = vector.broadcast %cst_86 : f32 to vector<8x128xf32>
    %344 = arith.addf %343, %342 : vector<8x128xf32>
    %345 = arith.divf %343, %344 : vector<8x128xf32>
    %346 = vector.extract_strided_slice %339 {offsets = [0, 128], sizes = [8, 128], strides = [1, 1]} : vector<8x512xf32> to vector<8x128xf32>
    %347 = arith.negf %346 : vector<8x128xf32>
    %348 = math.exp %347 : vector<8x128xf32>
    %cst_87 = arith.constant 1.000000e+00 : f32
    %349 = vector.broadcast %cst_87 : f32 to vector<8x128xf32>
    %350 = arith.addf %349, %348 : vector<8x128xf32>
    %351 = arith.divf %349, %350 : vector<8x128xf32>
    %352 = vector.extract_strided_slice %339 {offsets = [0, 256], sizes = [8, 128], strides = [1, 1]} : vector<8x512xf32> to vector<8x128xf32>
    %353 = math.tanh %352 : vector<8x128xf32>
    %354 = vector.extract_strided_slice %339 {offsets = [0, 384], sizes = [8, 128], strides = [1, 1]} : vector<8x512xf32> to vector<8x128xf32>
    %355 = arith.negf %354 : vector<8x128xf32>
    %356 = math.exp %355 : vector<8x128xf32>
    %cst_88 = arith.constant 1.000000e+00 : f32
    %357 = vector.broadcast %cst_88 : f32 to vector<8x128xf32>
    %358 = arith.addf %357, %356 : vector<8x128xf32>
    %359 = arith.divf %357, %358 : vector<8x128xf32>
    %360 = arith.mulf %351, %300 : vector<8x128xf32>
    %361 = arith.mulf %345, %353 : vector<8x128xf32>
    %362 = arith.addf %360, %361 : vector<8x128xf32>
    %363 = math.tanh %362 : vector<8x128xf32>
    %364 = arith.mulf %359, %363 : vector<8x128xf32>
    %365 = arith.truncf %364 : vector<8x128xf32> to vector<8x128xbf16>
    %cst_89 = arith.constant dense<0.000000e+00> : vector<8x512xf32>
    %366 = tpu.matmul %365, %13, %cst_89 {dimension_numbers = #tpu.dot_dimension_numbers<[1], [0], [0], [1], [0, 0, 1, 1], [], []>} : vector<8x128xbf16>, vector<128x512xbf16>, vector<8x512xf32> -> vector<8x512xf32>
    %367 = arith.addf %333, %366 : vector<8x512xf32>
    %368 = arith.addf %367, %17 : vector<8x512xf32>
    %369 = vector.extract_strided_slice %368 {offsets = [0, 0], sizes = [8, 128], strides = [1, 1]} : vector<8x512xf32> to vector<8x128xf32>
    %370 = arith.negf %369 : vector<8x128xf32>
    %371 = math.exp %370 : vector<8x128xf32>
    %cst_90 = arith.constant 1.000000e+00 : f32
    %372 = vector.broadcast %cst_90 : f32 to vector<8x128xf32>
    %373 = arith.addf %372, %371 : vector<8x128xf32>
    %374 = arith.divf %372, %373 : vector<8x128xf32>
    %375 = vector.extract_strided_slice %368 {offsets = [0, 128], sizes = [8, 128], strides = [1, 1]} : vector<8x512xf32> to vector<8x128xf32>
    %376 = arith.negf %375 : vector<8x128xf32>
    %377 = math.exp %376 : vector<8x128xf32>
    %cst_91 = arith.constant 1.000000e+00 : f32
    %378 = vector.broadcast %cst_91 : f32 to vector<8x128xf32>
    %379 = arith.addf %378, %377 : vector<8x128xf32>
    %380 = arith.divf %378, %379 : vector<8x128xf32>
    %381 = vector.extract_strided_slice %368 {offsets = [0, 256], sizes = [8, 128], strides = [1, 1]} : vector<8x512xf32> to vector<8x128xf32>
    %382 = math.tanh %381 : vector<8x128xf32>
    %383 = vector.extract_strided_slice %368 {offsets = [0, 384], sizes = [8, 128], strides = [1, 1]} : vector<8x512xf32> to vector<8x128xf32>
    %384 = arith.negf %383 : vector<8x128xf32>
    %385 = math.exp %384 : vector<8x128xf32>
    %cst_92 = arith.constant 1.000000e+00 : f32
    %386 = vector.broadcast %cst_92 : f32 to vector<8x128xf32>
    %387 = arith.addf %386, %385 : vector<8x128xf32>
    %388 = arith.divf %386, %387 : vector<8x128xf32>
    %389 = arith.mulf %380, %329 : vector<8x128xf32>
    %390 = arith.mulf %374, %382 : vector<8x128xf32>
    %391 = arith.addf %389, %390 : vector<8x128xf32>
    %392 = math.tanh %391 : vector<8x128xf32>
    %393 = arith.mulf %388, %392 : vector<8x128xf32>
    %c6_i32 = arith.constant 6 : i32
    %394 = arith.truncf %393 : vector<8x128xf32> to vector<8x128xbf16>
    %cst_93 = arith.constant dense<0.000000e+00> : vector<8x512xf32>
    %395 = tpu.matmul %394, %14, %cst_93 {dimension_numbers = #tpu.dot_dimension_numbers<[1], [0], [0], [1], [0, 0, 1, 1], [], []>} : vector<8x128xbf16>, vector<128x512xbf16>, vector<8x512xf32> -> vector<8x512xf32>
    %396 = arith.index_cast %c6_i32 : i32 to index
    %c0_94 = arith.constant 0 : index
    %c0_95 = arith.constant 0 : index
    %397 = vector.load %arg12[%396, %c0_94, %c0_95] : memref<8x8x512xf32, #tpu.memory_space<vmem>>, vector<1x8x512xf32>
    %398 = vector.shape_cast %397 : vector<1x8x512xf32> to vector<8x512xf32>
    %399 = arith.truncf %364 : vector<8x128xf32> to vector<8x128xbf16>
    %cst_96 = arith.constant dense<0.000000e+00> : vector<8x512xf32>
    %400 = tpu.matmul %399, %12, %cst_96 {dimension_numbers = #tpu.dot_dimension_numbers<[1], [0], [0], [1], [0, 0, 1, 1], [], []>} : vector<8x128xbf16>, vector<128x512xbf16>, vector<8x512xf32> -> vector<8x512xf32>
    %401 = arith.addf %398, %400 : vector<8x512xf32>
    %402 = vector.extract_strided_slice %401 {offsets = [0, 0], sizes = [8, 128], strides = [1, 1]} : vector<8x512xf32> to vector<8x128xf32>
    %403 = arith.negf %402 : vector<8x128xf32>
    %404 = math.exp %403 : vector<8x128xf32>
    %cst_97 = arith.constant 1.000000e+00 : f32
    %405 = vector.broadcast %cst_97 : f32 to vector<8x128xf32>
    %406 = arith.addf %405, %404 : vector<8x128xf32>
    %407 = arith.divf %405, %406 : vector<8x128xf32>
    %408 = vector.extract_strided_slice %401 {offsets = [0, 128], sizes = [8, 128], strides = [1, 1]} : vector<8x512xf32> to vector<8x128xf32>
    %409 = arith.negf %408 : vector<8x128xf32>
    %410 = math.exp %409 : vector<8x128xf32>
    %cst_98 = arith.constant 1.000000e+00 : f32
    %411 = vector.broadcast %cst_98 : f32 to vector<8x128xf32>
    %412 = arith.addf %411, %410 : vector<8x128xf32>
    %413 = arith.divf %411, %412 : vector<8x128xf32>
    %414 = vector.extract_strided_slice %401 {offsets = [0, 256], sizes = [8, 128], strides = [1, 1]} : vector<8x512xf32> to vector<8x128xf32>
    %415 = math.tanh %414 : vector<8x128xf32>
    %416 = vector.extract_strided_slice %401 {offsets = [0, 384], sizes = [8, 128], strides = [1, 1]} : vector<8x512xf32> to vector<8x128xf32>
    %417 = arith.negf %416 : vector<8x128xf32>
    %418 = math.exp %417 : vector<8x128xf32>
    %cst_99 = arith.constant 1.000000e+00 : f32
    %419 = vector.broadcast %cst_99 : f32 to vector<8x128xf32>
    %420 = arith.addf %419, %418 : vector<8x128xf32>
    %421 = arith.divf %419, %420 : vector<8x128xf32>
    %422 = arith.mulf %413, %362 : vector<8x128xf32>
    %423 = arith.mulf %407, %415 : vector<8x128xf32>
    %424 = arith.addf %422, %423 : vector<8x128xf32>
    %425 = math.tanh %424 : vector<8x128xf32>
    %426 = arith.mulf %421, %425 : vector<8x128xf32>
    %427 = arith.truncf %426 : vector<8x128xf32> to vector<8x128xbf16>
    %cst_100 = arith.constant dense<0.000000e+00> : vector<8x512xf32>
    %428 = tpu.matmul %427, %13, %cst_100 {dimension_numbers = #tpu.dot_dimension_numbers<[1], [0], [0], [1], [0, 0, 1, 1], [], []>} : vector<8x128xbf16>, vector<128x512xbf16>, vector<8x512xf32> -> vector<8x512xf32>
    %429 = arith.addf %395, %428 : vector<8x512xf32>
    %430 = arith.addf %429, %17 : vector<8x512xf32>
    %431 = vector.extract_strided_slice %430 {offsets = [0, 0], sizes = [8, 128], strides = [1, 1]} : vector<8x512xf32> to vector<8x128xf32>
    %432 = arith.negf %431 : vector<8x128xf32>
    %433 = math.exp %432 : vector<8x128xf32>
    %cst_101 = arith.constant 1.000000e+00 : f32
    %434 = vector.broadcast %cst_101 : f32 to vector<8x128xf32>
    %435 = arith.addf %434, %433 : vector<8x128xf32>
    %436 = arith.divf %434, %435 : vector<8x128xf32>
    %437 = vector.extract_strided_slice %430 {offsets = [0, 128], sizes = [8, 128], strides = [1, 1]} : vector<8x512xf32> to vector<8x128xf32>
    %438 = arith.negf %437 : vector<8x128xf32>
    %439 = math.exp %438 : vector<8x128xf32>
    %cst_102 = arith.constant 1.000000e+00 : f32
    %440 = vector.broadcast %cst_102 : f32 to vector<8x128xf32>
    %441 = arith.addf %440, %439 : vector<8x128xf32>
    %442 = arith.divf %440, %441 : vector<8x128xf32>
    %443 = vector.extract_strided_slice %430 {offsets = [0, 256], sizes = [8, 128], strides = [1, 1]} : vector<8x512xf32> to vector<8x128xf32>
    %444 = math.tanh %443 : vector<8x128xf32>
    %445 = vector.extract_strided_slice %430 {offsets = [0, 384], sizes = [8, 128], strides = [1, 1]} : vector<8x512xf32> to vector<8x128xf32>
    %446 = arith.negf %445 : vector<8x128xf32>
    %447 = math.exp %446 : vector<8x128xf32>
    %cst_103 = arith.constant 1.000000e+00 : f32
    %448 = vector.broadcast %cst_103 : f32 to vector<8x128xf32>
    %449 = arith.addf %448, %447 : vector<8x128xf32>
    %450 = arith.divf %448, %449 : vector<8x128xf32>
    %451 = arith.mulf %442, %391 : vector<8x128xf32>
    %452 = arith.mulf %436, %444 : vector<8x128xf32>
    %453 = arith.addf %451, %452 : vector<8x128xf32>
    %454 = math.tanh %453 : vector<8x128xf32>
    %455 = arith.mulf %450, %454 : vector<8x128xf32>
    %c7_i32 = arith.constant 7 : i32
    %456 = arith.truncf %455 : vector<8x128xf32> to vector<8x128xbf16>
    %cst_104 = arith.constant dense<0.000000e+00> : vector<8x512xf32>
    %457 = tpu.matmul %456, %14, %cst_104 {dimension_numbers = #tpu.dot_dimension_numbers<[1], [0], [0], [1], [0, 0, 1, 1], [], []>} : vector<8x128xbf16>, vector<128x512xbf16>, vector<8x512xf32> -> vector<8x512xf32>
    %458 = arith.index_cast %c7_i32 : i32 to index
    %c0_105 = arith.constant 0 : index
    %c0_106 = arith.constant 0 : index
    %459 = vector.load %arg12[%458, %c0_105, %c0_106] : memref<8x8x512xf32, #tpu.memory_space<vmem>>, vector<1x8x512xf32>
    %460 = vector.shape_cast %459 : vector<1x8x512xf32> to vector<8x512xf32>
    %461 = arith.truncf %426 : vector<8x128xf32> to vector<8x128xbf16>
    %cst_107 = arith.constant dense<0.000000e+00> : vector<8x512xf32>
    %462 = tpu.matmul %461, %12, %cst_107 {dimension_numbers = #tpu.dot_dimension_numbers<[1], [0], [0], [1], [0, 0, 1, 1], [], []>} : vector<8x128xbf16>, vector<128x512xbf16>, vector<8x512xf32> -> vector<8x512xf32>
    %463 = arith.addf %460, %462 : vector<8x512xf32>
    %464 = vector.extract_strided_slice %463 {offsets = [0, 0], sizes = [8, 128], strides = [1, 1]} : vector<8x512xf32> to vector<8x128xf32>
    %465 = arith.negf %464 : vector<8x128xf32>
    %466 = math.exp %465 : vector<8x128xf32>
    %cst_108 = arith.constant 1.000000e+00 : f32
    %467 = vector.broadcast %cst_108 : f32 to vector<8x128xf32>
    %468 = arith.addf %467, %466 : vector<8x128xf32>
    %469 = arith.divf %467, %468 : vector<8x128xf32>
    %470 = vector.extract_strided_slice %463 {offsets = [0, 128], sizes = [8, 128], strides = [1, 1]} : vector<8x512xf32> to vector<8x128xf32>
    %471 = arith.negf %470 : vector<8x128xf32>
    %472 = math.exp %471 : vector<8x128xf32>
    %cst_109 = arith.constant 1.000000e+00 : f32
    %473 = vector.broadcast %cst_109 : f32 to vector<8x128xf32>
    %474 = arith.addf %473, %472 : vector<8x128xf32>
    %475 = arith.divf %473, %474 : vector<8x128xf32>
    %476 = vector.extract_strided_slice %463 {offsets = [0, 256], sizes = [8, 128], strides = [1, 1]} : vector<8x512xf32> to vector<8x128xf32>
    %477 = math.tanh %476 : vector<8x128xf32>
    %478 = vector.extract_strided_slice %463 {offsets = [0, 384], sizes = [8, 128], strides = [1, 1]} : vector<8x512xf32> to vector<8x128xf32>
    %479 = arith.negf %478 : vector<8x128xf32>
    %480 = math.exp %479 : vector<8x128xf32>
    %cst_110 = arith.constant 1.000000e+00 : f32
    %481 = vector.broadcast %cst_110 : f32 to vector<8x128xf32>
    %482 = arith.addf %481, %480 : vector<8x128xf32>
    %483 = arith.divf %481, %482 : vector<8x128xf32>
    %484 = arith.mulf %475, %424 : vector<8x128xf32>
    %485 = arith.mulf %469, %477 : vector<8x128xf32>
    %486 = arith.addf %484, %485 : vector<8x128xf32>
    %487 = math.tanh %486 : vector<8x128xf32>
    %488 = arith.mulf %483, %487 : vector<8x128xf32>
    %489 = arith.truncf %488 : vector<8x128xf32> to vector<8x128xbf16>
    %cst_111 = arith.constant dense<0.000000e+00> : vector<8x512xf32>
    %490 = tpu.matmul %489, %13, %cst_111 {dimension_numbers = #tpu.dot_dimension_numbers<[1], [0], [0], [1], [0, 0, 1, 1], [], []>} : vector<8x128xbf16>, vector<128x512xbf16>, vector<8x512xf32> -> vector<8x512xf32>
    %491 = arith.addf %457, %490 : vector<8x512xf32>
    %492 = arith.addf %491, %17 : vector<8x512xf32>
    %493 = vector.extract_strided_slice %492 {offsets = [0, 0], sizes = [8, 128], strides = [1, 1]} : vector<8x512xf32> to vector<8x128xf32>
    %494 = arith.negf %493 : vector<8x128xf32>
    %495 = math.exp %494 : vector<8x128xf32>
    %cst_112 = arith.constant 1.000000e+00 : f32
    %496 = vector.broadcast %cst_112 : f32 to vector<8x128xf32>
    %497 = arith.addf %496, %495 : vector<8x128xf32>
    %498 = arith.divf %496, %497 : vector<8x128xf32>
    %499 = vector.extract_strided_slice %492 {offsets = [0, 128], sizes = [8, 128], strides = [1, 1]} : vector<8x512xf32> to vector<8x128xf32>
    %500 = arith.negf %499 : vector<8x128xf32>
    %501 = math.exp %500 : vector<8x128xf32>
    %cst_113 = arith.constant 1.000000e+00 : f32
    %502 = vector.broadcast %cst_113 : f32 to vector<8x128xf32>
    %503 = arith.addf %502, %501 : vector<8x128xf32>
    %504 = arith.divf %502, %503 : vector<8x128xf32>
    %505 = vector.extract_strided_slice %492 {offsets = [0, 256], sizes = [8, 128], strides = [1, 1]} : vector<8x512xf32> to vector<8x128xf32>
    %506 = math.tanh %505 : vector<8x128xf32>
    %507 = vector.extract_strided_slice %492 {offsets = [0, 384], sizes = [8, 128], strides = [1, 1]} : vector<8x512xf32> to vector<8x128xf32>
    %508 = arith.negf %507 : vector<8x128xf32>
    %509 = math.exp %508 : vector<8x128xf32>
    %cst_114 = arith.constant 1.000000e+00 : f32
    %510 = vector.broadcast %cst_114 : f32 to vector<8x128xf32>
    %511 = arith.addf %510, %509 : vector<8x128xf32>
    %512 = arith.divf %510, %511 : vector<8x128xf32>
    %513 = arith.mulf %504, %453 : vector<8x128xf32>
    %514 = arith.mulf %498, %506 : vector<8x128xf32>
    %515 = arith.addf %513, %514 : vector<8x128xf32>
    %516 = math.tanh %515 : vector<8x128xf32>
    %517 = arith.mulf %512, %516 : vector<8x128xf32>
    %c8_i32 = arith.constant 8 : i32
    %c0_115 = arith.constant 0 : index
    %c0_116 = arith.constant 0 : index
    %518 = vector.load %arg13[%c0_115, %c0_116] : memref<8x128xf32, #tpu.memory_space<vmem>>, vector<8x128xf32>
    tpu.vector_store %arg13[%c0_115, %c0_116], %488 {strides = array<i32>} : memref<8x128xf32, #tpu.memory_space<vmem>>, vector<8x128xf32>,
    %c0_117 = arith.constant 0 : index
    %c0_118 = arith.constant 0 : index
    %519 = vector.load %arg14[%c0_117, %c0_118] : memref<8x128xf32, #tpu.memory_space<vmem>>, vector<8x128xf32>
    tpu.vector_store %arg14[%c0_117, %c0_118], %486 {strides = array<i32>} : memref<8x128xf32, #tpu.memory_space<vmem>>, vector<8x128xf32>,
    %c0_119 = arith.constant 0 : index
    %c0_120 = arith.constant 0 : index
    %520 = vector.load %arg15[%c0_119, %c0_120] : memref<8x128xf32, #tpu.memory_space<vmem>>, vector<8x128xf32>
    tpu.vector_store %arg15[%c0_119, %c0_120], %517 {strides = array<i32>} : memref<8x128xf32, #tpu.memory_space<vmem>>, vector<8x128xf32>,
    %c0_121 = arith.constant 0 : index
    %c0_122 = arith.constant 0 : index
    %521 = vector.load %arg16[%c0_121, %c0_122] : memref<8x128xf32, #tpu.memory_space<vmem>>, vector<8x128xf32>
    tpu.vector_store %arg16[%c0_121, %c0_122], %515 {strides = array<i32>} : memref<8x128xf32, #tpu.memory_space<vmem>>, vector<8x128xf32>,
    %c0_i32_123 = arith.constant 0 : i32
    %522 = arith.cmpi eq, %arg1, %c0_i32_123 : i32
    %523 = arith.extui %522 : i1 to i32
    %c0_i32_124 = arith.constant 0 : i32
    %524 = arith.cmpi ne, %523, %c0_i32_124 : i32
    scf.if %524 {
      %525 = arith.truncf %517 : vector<8x128xf32> to vector<8x128xbf16>
      %c0_125 = arith.constant 0 : index
      %c0_126 = arith.constant 0 : index
      %526 = vector.load %arg9[%c0_125, %c0_126] : memref<128x128xbf16, #tpu.memory_space<vmem>>, vector<128x128xbf16>
      %cst_127 = arith.constant dense<0.000000e+00> : vector<8x128xf32>
      %527 = tpu.matmul %525, %526, %cst_127 {dimension_numbers = #tpu.dot_dimension_numbers<[1], [0], [0], [1], [0, 0, 1, 1], [], []>} : vector<8x128xbf16>, vector<128x128xbf16>, vector<8x128xf32> -> vector<8x128xf32>
      %c0_128 = arith.constant 0 : index
      %c0_129 = arith.constant 0 : index
      %528 = vector.load %arg10[%c0_128, %c0_129] : memref<1x128xf32, #tpu.memory_space<vmem>>, vector<1x128xf32>
      %529 = vector.broadcast %528 : vector<1x128xf32> to vector<8x128xf32>
      %530 = arith.addf %527, %529 : vector<8x128xf32>
      %c0_130 = arith.constant 0 : index
      %c0_131 = arith.constant 0 : index
      %531 = vector.load %arg11[%c0_130, %c0_131] : memref<8x128xf32, #tpu.memory_space<vmem>>, vector<8x128xf32>
      tpu.vector_store %arg11[%c0_130, %c0_131], %530 {strides = array<i32>} : memref<8x128xf32, #tpu.memory_space<vmem>>, vector<8x128xf32>,
    } else {
    }
    return
  }
  func.func @transform_0(%arg0: i32, %arg1: i32) -> (i32, i32, i32) {
    %c0_i32 = arith.constant 0 : i32
    %c0_i32_0 = arith.constant 0 : i32
    return %arg1, %arg0, %c0_i32 : i32, i32, i32
  }
  func.func @transform_1(%arg0: i32, %arg1: i32) -> (i32, i32) {
    %c0_i32 = arith.constant 0 : i32
    %c0_i32_0 = arith.constant 0 : i32
    %c0_i32_1 = arith.constant 0 : i32
    return %c0_i32, %c0_i32_0 : i32, i32
  }
  func.func @transform_2(%arg0: i32, %arg1: i32) -> (i32, i32) {
    %c0_i32 = arith.constant 0 : i32
    %c0_i32_0 = arith.constant 0 : i32
    %c0_i32_1 = arith.constant 0 : i32
    return %c0_i32, %c0_i32_0 : i32, i32
  }
  func.func @transform_3(%arg0: i32, %arg1: i32) -> (i32, i32) {
    %c0_i32 = arith.constant 0 : i32
    %c0_i32_0 = arith.constant 0 : i32
    %c0_i32_1 = arith.constant 0 : i32
    return %c0_i32, %c0_i32_0 : i32, i32
  }
  func.func @transform_4(%arg0: i32, %arg1: i32) -> (i32, i32) {
    %c0_i32 = arith.constant 0 : i32
    %c0_i32_0 = arith.constant 0 : i32
    %c0_i32_1 = arith.constant 0 : i32
    return %c0_i32, %c0_i32_0 : i32, i32
  }
  func.func @transform_5(%arg0: i32, %arg1: i32) -> (i32, i32) {
    %c0_i32 = arith.constant 0 : i32
    %c0_i32_0 = arith.constant 0 : i32
    %c0_i32_1 = arith.constant 0 : i32
    return %c0_i32, %c0_i32_0 : i32, i32
  }
  func.func @transform_6(%arg0: i32, %arg1: i32) -> (i32, i32) {
    %c0_i32 = arith.constant 0 : i32
    %c0_i32_0 = arith.constant 0 : i32
    %c0_i32_1 = arith.constant 0 : i32
    return %c0_i32, %c0_i32_0 : i32, i32
  }
  func.func @transform_7(%arg0: i32, %arg1: i32) -> (i32, i32) {
    %c0_i32 = arith.constant 0 : i32
    %c0_i32_0 = arith.constant 0 : i32
    %c0_i32_1 = arith.constant 0 : i32
    return %c0_i32, %c0_i32_0 : i32, i32
  }
  func.func @transform_8(%arg0: i32, %arg1: i32) -> (i32, i32) {
    %c0_i32 = arith.constant 0 : i32
    %c0_i32_0 = arith.constant 0 : i32
    %c0_i32_1 = arith.constant 0 : i32
    return %c0_i32, %c0_i32_0 : i32, i32
  }
  func.func @transform_9(%arg0: i32, %arg1: i32) -> (i32, i32) {
    %c0_i32 = arith.constant 0 : i32
    %c0_i32_0 = arith.constant 0 : i32
    return %arg0, %c0_i32 : i32, i32
  }
}

</mosaic_0001>

<bundles_post_ra>
// kernel: tpu_custom_call.1
= control target key start
LH: loop header
LB: loop body
LE: loop exit
PB: predicated region body
PF: predicated region fallthrough
CT: control target
= control target key end

     0   :  { %14 = vsyncpa [#allocation8], 0  ;;  %s6601_s0 = inlined_call_operand.hbm [shape: bf16[8,8,128], index: 0, kind: input, shape index: {}]   ;;  %s6602_s1 = inlined_call_operand.hbm [shape: bf16[128,512], index: 1, kind: input, shape index: {}]   ;;  %s6603_s2 = inlined_call_operand.hbm [shape: bf16[128,512], index: 2, kind: input, shape index: {}]   ;;  %s6604_s3 = inlined_call_operand.vmem [shape: f32[1,512], index: 3, kind: input, shape index: {}]   ;;  %s6605_s4 = inlined_call_operand.hbm [shape: bf16[128,512], index: 4, kind: input, shape index: {}]   ;;  %s6606_s5 = inlined_call_operand.hbm [shape: bf16[128,512], index: 5, kind: input, shape index: {}]   ;;  %s6607_s6 = inlined_call_operand.vmem [shape: f32[1,512], index: 6, kind: input, shape index: {}]   ;;  %s6608_s7 = inlined_call_operand.hbm [shape: bf16[128,128], index: 7, kind: input, shape index: {}]   ;;  %s6609_s8 = inlined_call_operand.vmem [shape: f32[1,128], index: 8, kind: input, shape index: {}]   ;;  %s6610_s9 = inlined_call_operand.hbm [shape: f32[8,128], index: 9, kind: output, shape index: {}]  }
   0x1   :  { %15 = vsyncpa [#allocation11], 0 }
   0x2   :  { %16 = vsyncpa [#allocation14], 0 }
   0x3   :  { %17 = vsyncpa [#allocation17], 0 }
   0x4   :  { %18 = vsyncpa [#allocation9], 0  ;;  %s4795_s30 = smov [#allocation10]  }
   0x5   :  { %s36_s10 = sshll.u32 %s4795_s30, 4  ;;  %s37_s10 = int_to_ptr.vmem [resolvable:$true] %s36_s10 }
   0x6   :  { %s4653_s11 = scalar_lea.vmem %s37_s10, 4096  ;;  %p4658_p1 = scmp.lt.s32.totalorder %s37_s10, %s37_s10 }
   0x7   :  { %p4654_p0 = scmp.ne.s32.totalorder %s37_s10, %s4653_s11  ;;  %p4659_p2 = scmp.lt.s32.totalorder %s4653_s11, %s4653_s11 }
   0x9   :  { %p4660_p3 = por %p4659_p2, %p4658_p1 }
   0xb   :  { %p4661_p4 = pnand %p4660_p3, %p4654_p0 }
   0xd   :  { %4664 = shalt.err (!%p4661_p4)
}
   0xe   :  { %s4796_s12 = smov 256   ;;  %s4797_s13 = smov 16  }
   0xf   :  { %42 = dma.hbm_to_vmem [thread:$0]  %s6602_s1, 4096, %s37_s10, [#allocation11], %s4796_s12, %s4796_s12, %s4797_s13  }
  0x10   :  { %s4798_s16 = smov [#allocation13]   ;;  %s4799_s18 = smov [#allocation7]  }
  0x11   :  { %s62_s17 = sshll.u32 %s4798_s16, 4  ;;  %s24_s19 = sshll.u32 %s4799_s18, 4  ;;  %s63_s17 = int_to_ptr.vmem [resolvable:$true] %s62_s17  ;;  %s25_s19 = int_to_ptr.vmem [resolvable:$true] %s24_s19 }
  0x12   :  { %s4673_s20 = scalar_lea.vmem %s63_s17, 4096  ;;  %p4678_p6 = scmp.lt.s32.totalorder %s63_s17, %s63_s17 }
  0x13   :  { %p4674_p5 = scmp.ne.s32.totalorder %s63_s17, %s4673_s20  ;;  %p4679_p7 = scmp.lt.s32.totalorder %s4673_s20, %s4673_s20 }
  0x15   :  { %p4680_p8 = por %p4679_p7, %p4678_p6 }
  0x17   :  { %p4681_p9 = pnand %p4680_p8, %p4674_p5 }
  0x19   :  { %4684 = shalt.err (!%p4681_p9)
}
  0x1a   :  { %68 = dma.hbm_to_vmem [thread:$0]  %s6605_s4, 4096, %s63_s17, [#allocation14], %s4796_s12, %s4796_s12, %s4797_s13  }
  0x1b   :  { %s4693_s1 = scalar_lea.vmem %s25_s19, 512  ;;  %p4698_p11 = scmp.lt.s32.totalorder %s25_s19, %s25_s19 }
  0x1c   :  { %p4694_p10 = scmp.ne.s32.totalorder %s25_s19, %s4693_s1  ;;  %p4699_p12 = scmp.lt.s32.totalorder %s4693_s1, %s4693_s1 }
  0x1e   :  { %p4700_p13 = por %p4699_p12, %p4698_p11 }
  0x20   :  { %p4701_p0 = pnand %p4700_p13, %p4694_p10 }
  0x22   :  { %4704 = shalt.err (!%p4701_p0)
}
  0x23   :  { %s4800_s23 = smov 64   ;;  %s4801_s24 = smov 4  }
  0x24   :  { %30 = dma.hbm_to_vmem [thread:$0]  %s6601_s0, 512, %s25_s19, [#allocation8], %s4800_s23, %s4800_s23, %s4801_s24  }
  0x25   :  { %s4802_s27 = smov [#allocation12]   ;;  %s4803_s4 = smov [#allocation15]  }
  0x26   :  { %s48_s28 = sshll.u32 %s4802_s27, 4  ;;  %s74_s29 = sshll.u32 %s4803_s4, 4  ;;  %s49_s28 = int_to_ptr.vmem [resolvable:$true] %s48_s28  ;;  %s75_s29 = int_to_ptr.vmem [resolvable:$true] %s74_s29 }
  0x27   :  { %s4713_s30 = scalar_lea.vmem %s49_s28, 4096  ;;  %p4718_p2 = scmp.lt.s32.totalorder %s49_s28, %s49_s28 }
  0x28   :  { %p4714_p1 = scmp.ne.s32.totalorder %s49_s28, %s4713_s30  ;;  %p4719_p3 = scmp.lt.s32.totalorder %s4713_s30, %s4713_s30 }
  0x2a   :  { %p4720_p4 = por %p4719_p3, %p4718_p2 }
  0x2c   :  { %p4721_p5 = pnand %p4720_p4, %p4714_p1 }
  0x2e   :  { %4724 = shalt.err (!%p4721_p5)
}
  0x2f   :  { %54 = dma.hbm_to_vmem [thread:$0]  %s6603_s2, 4096, %s49_s28, [#allocation11], %s4796_s12, %s4796_s12, %s4797_s13  }
  0x30   :  { %s4733_s0 = scalar_lea.vmem %s75_s29, 4096  ;;  %p4738_p7 = scmp.lt.s32.totalorder %s75_s29, %s75_s29 }
  0x31   :  { %p4734_p6 = scmp.ne.s32.totalorder %s75_s29, %s4733_s0  ;;  %p4739_p8 = scmp.lt.s32.totalorder %s4733_s0, %s4733_s0 }
  0x33   :  { %p4740_p9 = por %p4739_p8, %p4738_p7 }
  0x35   :  { %p4741_p10 = pnand %p4740_p9, %p4734_p6 }
  0x37   :  { %4744 = shalt.err (!%p4741_p10)
}
  0x38   :  { %80 = dma.hbm_to_vmem [thread:$0]  %s6606_s5, 4096, %s75_s29, [#allocation14], %s4796_s12, %s4796_s12, %s4797_s13  }
  0x39   :  { %s4804_s16 = smov [#allocation16]  }
  0x3a   :  { %s88_s17 = sshll.u32 %s4804_s16, 4  ;;  %s89_s17 = int_to_ptr.vmem [resolvable:$true] %s88_s17 }
  0x3b   :  { %s4753_s18 = scalar_lea.vmem %s89_s17, 1024  ;;  %p4758_p12 = scmp.lt.s32.totalorder %s89_s17, %s89_s17 }
  0x3c   :  { %p4754_p11 = scmp.ne.s32.totalorder %s89_s17, %s4753_s18  ;;  %p4759_p13 = scmp.lt.s32.totalorder %s4753_s18, %s4753_s18 }
  0x3e   :  { %p4760_p0 = por %p4759_p13, %p4758_p12 }
  0x40   :  { %p4761_p1 = pnand %p4760_p0, %p4754_p11 }
  0x42   :  { %4764 = shalt.err (!%p4761_p1)
}
  0x43   :  { %94 = dma.hbm_to_vmem [thread:$0]  %s6608_s7, 1024, %s89_s17, [#allocation17], %s4800_s23, %s4800_s23, %s4801_s24  }
  0x44   :  { %4785 = dma.done.wait [#allocation8], 512  }
  0x45   :  { %4786 = vsyncadd [#allocation8], 4294966784 }
  0x46   :  { %4787 = dma.done.wait [#allocation11], 8192  }
  0x47   :  { %4788 = vsyncadd [#allocation11], 4294959104 }
  0x48   :  { %4789 = dma.done.wait [#allocation14], 8192  }
  0x49   :  { %4790 = vsyncadd [#allocation14], 4294959104 }
  0x4a   :  { %4791 = dma.done.wait [#allocation17], 1024  }
  0x4b   :  { %4792 = vsyncadd [#allocation17], 4294966272  ;;  %v6613_v0 = vmov 0   ;;  %v3993_v1 = vld [vmem:[#allocation10 + $0xe4] ss:$16 sps:$4 sm:$0xff]   ;;  %v4054_v44 = vld [vmem:[#allocation7 + $0x8] sm:$0xff]  }
  0x4c   :  { %402 = vmatprep.mubr.bf16.mxu0 %v6613_v0  ;;  %475 = vmatprep.mubr.bf16.mxu1 %v6613_v0  ;;  %v3995_v2 = vld [vmem:[#allocation10 + $0xec] ss:$16 sps:$4 sm:$0xff]   ;;  %v3997_v3 = vld [vmem:[#allocation10 + $0xe0] ss:$16 sps:$4 sm:$0xff]   ;;  %v3998_v4 = vld [vmem:[#allocation10 + $0xe8] ss:$16 sps:$4 sm:$0xff]  }
  0x4d   :  { %370 = vmatprep.subr.bf16.mxu0 %v3993_v1  ;;  %443 = vmatprep.subr.bf16.mxu1 %v3995_v2  ;;  %v3999_v5 = vld [vmem:[#allocation10 + $0xc4] ss:$16 sps:$4 sm:$0xff]   ;;  %v4001_v6 = vld [vmem:[#allocation10 + $0xcc] ss:$16 sps:$4 sm:$0xff]   ;;  %v4003_v7 = vld [vmem:[#allocation10 + $0xc0] ss:$16 sps:$4 sm:$0xff]  }
  0x4e   :  { %371 = vmatpush1.bf16.msra.mxu0 %v3997_v3  ;;  %444 = vmatpush1.bf16.msra.mxu1 %v3998_v4  ;;  %v4004_v8 = vld [vmem:[#allocation10 + $0xc8] ss:$16 sps:$4 sm:$0xff]   ;;  %v4005_v9 = vld [vmem:[#allocation10 + $0xa4] ss:$16 sps:$4 sm:$0xff]   ;;  %v4007_v10 = vld [vmem:[#allocation10 + $0xac] ss:$16 sps:$4 sm:$0xff]  }
  0x4f   :  { %372 = vmatprep.subr.bf16.mxu0 %v3999_v5  ;;  %445 = vmatprep.subr.bf16.mxu1 %v4001_v6  ;;  %v4009_v11 = vld [vmem:[#allocation10 + $0xa0] ss:$16 sps:$4 sm:$0xff]   ;;  %v4010_v12 = vld [vmem:[#allocation10 + $0xa8] ss:$16 sps:$4 sm:$0xff]   ;;  %v4011_v13 = vld [vmem:[#allocation10 + $0x84] ss:$16 sps:$4 sm:$0xff]  }
  0x50   :  { %v4013_v14 = vld [vmem:[#allocation10 + $0x8c] ss:$16 sps:$4 sm:$0xff]   ;;  %v4015_v15 = vld [vmem:[#allocation10 + $0x80] ss:$16 sps:$4 sm:$0xff]   ;;  %v4016_v16 = vld [vmem:[#allocation10 + $0x88] ss:$16 sps:$4 sm:$0xff]  }
  0x51   :  { %v4017_v17 = vld [vmem:[#allocation10 + $0x64] ss:$16 sps:$4 sm:$0xff]   ;;  %v4019_v18 = vld [vmem:[#allocation10 + $0x6c] ss:$16 sps:$4 sm:$0xff]   ;;  %v4021_v19 = vld [vmem:[#allocation10 + $0x60] ss:$16 sps:$4 sm:$0xff]  }
  0x52   :  { %373 = vmatpush1.bf16.msra.mxu0 %v4003_v7  ;;  %446 = vmatpush1.bf16.msra.mxu1 %v4004_v8  ;;  %v4022_v20 = vld [vmem:[#allocation10 + $0x68] ss:$16 sps:$4 sm:$0xff]   ;;  %v4023_v21 = vld [vmem:[#allocation10 + $0x44] ss:$16 sps:$4 sm:$0xff]   ;;  %v4025_v22 = vld [vmem:[#allocation10 + $0x4c] ss:$16 sps:$4 sm:$0xff]  }
  0x53   :  { %374 = vmatprep.subr.bf16.mxu0 %v4005_v9  ;;  %447 = vmatprep.subr.bf16.mxu1 %v4007_v10  ;;  %v4027_v23 = vld [vmem:[#allocation10 + $0x40] ss:$16 sps:$4 sm:$0xff]   ;;  %v4028_v24 = vld [vmem:[#allocation10 + $0x48] ss:$16 sps:$4 sm:$0xff]   ;;  %v4029_v25 = vld [vmem:[#allocation10 + $0x24] ss:$16 sps:$4 sm:$0xff]  }
  0x54   :  { %v4031_v26 = vld [vmem:[#allocation10 + $0x2c] ss:$16 sps:$4 sm:$0xff]   ;;  %v4033_v27 = vld [vmem:[#allocation10 + $0x20] ss:$16 sps:$4 sm:$0xff]   ;;  %v4034_v28 = vld [vmem:[#allocation10 + $0x28] ss:$16 sps:$4 sm:$0xff]  }
  0x55   :  { %v4035_v29 = vld [vmem:[#allocation10 + $0x4] ss:$16 sps:$4 sm:$0xff]   ;;  %v4037_v30 = vld [vmem:[#allocation10 + $0xc] ss:$16 sps:$4 sm:$0xff]   ;;  %v4039_v31 = vld [vmem:[#allocation10] ss:$16 sps:$4 sm:$0xff]  }
  0x56   :  { %375 = vmatpush1.bf16.msra.mxu0 %v4009_v11  ;;  %448 = vmatpush1.bf16.msra.mxu1 %v4010_v12  ;;  %v4040_v32 = vld [vmem:[#allocation10 + $0x8] ss:$16 sps:$4 sm:$0xff]   ;;  %v4898_v33 = vld [vmem:[#allocation12 + $0xe4] ss:$16 sps:$4 sm:$0xff]   ;;  %v4900_v34 = vld [vmem:[#allocation12 + $0xec] ss:$16 sps:$4 sm:$0xff]  }
  0x57   :  { %376 = vmatprep.subr.bf16.mxu0 %v4011_v13  ;;  %449 = vmatprep.subr.bf16.mxu1 %v4013_v14  ;;  %v4041_v35 = vld [vmem:[#allocation7] sm:$0xff]   ;;  %v4904_v37 = vld [vmem:[#allocation12 + $0xe8] ss:$16 sps:$4 sm:$0xff]   ;;  %v4910_v39 = vld [vmem:[#allocation12 + $0xcc] ss:$16 sps:$4 sm:$0xff]   ;;  %v6611_v6 = vmov 0.0|0.0  }
  0x58   :  { %v4902_v36 = vld [vmem:[#allocation12 + $0xe0] ss:$16 sps:$4 sm:$0xff]   ;;  %v4908_v38 = vld [vmem:[#allocation12 + $0xc4] ss:$16 sps:$4 sm:$0xff]   ;;  %v4916_v41 = vld [vmem:[#allocation12 + $0xc8] ss:$16 sps:$4 sm:$0xff]  }
  0x59   :  { %v4912_v40 = vld [vmem:[#allocation12 + $0xc0] ss:$16 sps:$4 sm:$0xff]   ;;  %v4920_v42 = vld [vmem:[#allocation12 + $0xa4] ss:$16 sps:$4 sm:$0xff]   ;;  %v4922_v43 = vld [vmem:[#allocation12 + $0xac] ss:$16 sps:$4 sm:$0xff]  }
  0x5a   :  { %377 = vmatpush1.bf16.msra.mxu0 %v4015_v15  ;;  %450 = vmatpush1.bf16.msra.mxu1 %v4016_v16  ;;  %v4926_v45 = vld [vmem:[#allocation12 + $0xa0] ss:$16 sps:$4 sm:$0xff]   ;;  %v4928_v46 = vld [vmem:[#allocation12 + $0xa8] ss:$16 sps:$4 sm:$0xff]   ;;  %v4932_v47 = vld [vmem:[#allocation12 + $0x84] ss:$16 sps:$4 sm:$0xff]  }
  0x5b   :  { %378 = vmatprep.subr.bf16.mxu0 %v4017_v17  ;;  %451 = vmatprep.subr.bf16.mxu1 %v4019_v18  ;;  %v4936_v48 = vld [vmem:[#allocation12 + $0x8c] ss:$16 sps:$4 sm:$0xff]   ;;  %v4938_v49 = vld [vmem:[#allocation12 + $0x80] ss:$16 sps:$4 sm:$0xff]   ;;  %v4940_v50 = vld [vmem:[#allocation12 + $0x88] ss:$16 sps:$4 sm:$0xff]  }
  0x5c   :  { %v4944_v51 = vld [vmem:[#allocation12 + $0x64] ss:$16 sps:$4 sm:$0xff]   ;;  %v4948_v52 = vld [vmem:[#allocation12 + $0x6c] ss:$16 sps:$4 sm:$0xff]   ;;  %v4952_v54 = vld [vmem:[#allocation12 + $0x60] ss:$16 sps:$4 sm:$0xff]  }
  0x5d   :  { %v4067_v53 = vld [vmem:[#allocation7 + $0x10] sm:$0xff]   ;;  %v4954_v55 = vld [vmem:[#allocation12 + $0x68] ss:$16 sps:$4 sm:$0xff]   ;;  %v4958_v57 = vld [vmem:[#allocation12 + $0x4c] ss:$16 sps:$4 sm:$0xff]   ;;  %vm4808_vm0 = vmmov 0  }
  0x5e   :  { %379 = vmatpush1.bf16.msra.mxu0 %v4021_v19  ;;  %452 = vmatpush1.bf16.msra.mxu1 %v4022_v20  ;;  %v4956_v56 = vld [vmem:[#allocation12 + $0x44] ss:$16 sps:$4 sm:$0xff]   ;;  %v4964_v58 = vld [vmem:[#allocation12 + $0x40] ss:$16 sps:$4 sm:$0xff]   ;;  %v4966_v59 = vld [vmem:[#allocation12 + $0x48] ss:$16 sps:$4 sm:$0xff]  }
  0x5f   :  { %380 = vmatprep.subr.bf16.mxu0 %v4023_v21  ;;  %453 = vmatprep.subr.bf16.mxu1 %v4025_v22  ;;  %v4968_v60 = vld [vmem:[#allocation12 + $0x24] ss:$16 sps:$4 sm:$0xff]   ;;  %v4970_v61 = vld [vmem:[#allocation12 + $0x2c] ss:$16 sps:$4 sm:$0xff]   ;;  %v4978_v63 = vld [vmem:[#allocation12 + $0x20] ss:$16 sps:$4 sm:$0xff]  }
  0x60   :  { %v4080_v62 = vld [vmem:[#allocation7 + $0x18] sm:$0xff]   ;;  %v4982_v2 = vld [vmem:[#allocation12 + $0x4] ss:$16 sps:$4 sm:$0xff]   ;;  %v4990_v4 = vld [vmem:[#allocation12] ss:$16 sps:$4 sm:$0xff]   ;;  %s4809_s20 = smov [#allocation18]  }
  0x61   :  { %v4980_v1 = vld [vmem:[#allocation12 + $0x28] ss:$16 sps:$4 sm:$0xff]   ;;  %v4984_v3 = vld [vmem:[#allocation12 + $0xc] ss:$16 sps:$4 sm:$0xff]   ;;  %v5006_v7 = vld [vmem:[#allocation13 + $0xe4] ss:$16 sps:$4 sm:$0xff]  }
  0x62   :  { %381 = vmatpush1.bf16.msra.mxu0 %v4027_v23  ;;  %454 = vmatpush1.bf16.msra.mxu1 %v4028_v24  ;;  %v4992_v5 = vld [vmem:[#allocation12 + $0x8] ss:$16 sps:$4 sm:$0xff]   ;;  %v5008_v8 = vld [vmem:[#allocation13 + $0xec] ss:$16 sps:$4 sm:$0xff]   ;;  %v5010_v9 = vld [vmem:[#allocation13 + $0xe0] ss:$16 sps:$4 sm:$0xff]  }
  0x63   :  { %382 = vmatprep.subr.bf16.mxu0 %v4029_v25  ;;  %455 = vmatprep.subr.bf16.mxu1 %v4031_v26  ;;  %v5012_v10 = vld [vmem:[#allocation13 + $0xe8] ss:$16 sps:$4 sm:$0xff]   ;;  %v5018_v11 = vld [vmem:[#allocation13 + $0xc4] ss:$16 sps:$4 sm:$0xff]   ;;  %v5020_v12 = vld [vmem:[#allocation13 + $0xcc] ss:$16 sps:$4 sm:$0xff]  }
  0x64   :  { %v5022_v13 = vld [vmem:[#allocation13 + $0xc0] ss:$16 sps:$4 sm:$0xff]   ;;  %v5024_v14 = vld [vmem:[#allocation13 + $0xc8] ss:$16 sps:$4 sm:$0xff]   ;;  %v5030_v15 = vld [vmem:[#allocation13 + $0xa4] ss:$16 sps:$4 sm:$0xff]  }
  0x65   :  { %v5032_v16 = vld [vmem:[#allocation13 + $0xac] ss:$16 sps:$4 sm:$0xff]   ;;  %v5034_v17 = vld [vmem:[#allocation13 + $0xa0] ss:$16 sps:$4 sm:$0xff]   ;;  %v5036_v18 = vld [vmem:[#allocation13 + $0xa8] ss:$16 sps:$4 sm:$0xff]  }
  0x66   :  { %383 = vmatpush1.bf16.msra.mxu0 %v4033_v27  ;;  %456 = vmatpush1.bf16.msra.mxu1 %v4034_v28  ;;  %6930 = vst [vmem:[#allocation24_spill] sm:$0xff] %v5032_v16  ;;  %6931 = vst [vmem:[#allocation25_spill] sm:$0xff] %v5034_v17  ;;  %v5042_v19 = vld [vmem:[#allocation13 + $0x84] ss:$16 sps:$4 sm:$0xff]   ;;  %v5044_v20 = vld [vmem:[#allocation13 + $0x8c] ss:$16 sps:$4 sm:$0xff]  }
  0x67   :  { %384 = vmatprep.subr.bf16.mxu0 %v4035_v29  ;;  %457 = vmatprep.subr.bf16.mxu1 %v4037_v30  ;;  %6932 = vst [vmem:[#allocation26_spill] sm:$0xff] %v5036_v18  ;;  %6933 = vst [vmem:[#allocation27_spill] sm:$0xff] %v5042_v19  ;;  %v5046_v21 = vld [vmem:[#allocation13 + $0x80] ss:$16 sps:$4 sm:$0xff]   ;;  %v5048_v22 = vld [vmem:[#allocation13 + $0x88] ss:$16 sps:$4 sm:$0xff]  }
  0x68   :  { %6934 = vst [vmem:[#allocation28_spill] sm:$0xff] %v5044_v20  ;;  %6935 = vst [vmem:[#allocation29_spill] sm:$0xff] %v5046_v21  ;;  %v5054_v23 = vld [vmem:[#allocation13 + $0x64] ss:$16 sps:$4 sm:$0xff]   ;;  %v5056_v24 = vld [vmem:[#allocation13 + $0x6c] ss:$16 sps:$4 sm:$0xff]  }
  0x69   :  { %6936 = vst [vmem:[#allocation30_spill] sm:$0xff] %v5048_v22  ;;  %6937 = vst [vmem:[#allocation31_spill] sm:$0xff] %v5054_v23  ;;  %v5058_v25 = vld [vmem:[#allocation13 + $0x60] ss:$16 sps:$4 sm:$0xff]   ;;  %v5060_v26 = vld [vmem:[#allocation13 + $0x68] ss:$16 sps:$4 sm:$0xff]  }
  0x6a   :  { %385 = vmatpush1.bf16.msra.mxu0 %v4039_v31  ;;  %458 = vmatpush1.bf16.msra.mxu1 %v4040_v32  ;;  %6938 = vst [vmem:[#allocation32_spill] sm:$0xff] %v5056_v24  ;;  %6939 = vst [vmem:[#allocation33_spill] sm:$0xff] %v5058_v25  ;;  %v5062_v27 = vld [vmem:[#allocation13 + $0x44] ss:$16 sps:$4 sm:$0xff]   ;;  %v5064_v28 = vld [vmem:[#allocation13 + $0x4c] ss:$16 sps:$4 sm:$0xff]  }
  0x6b   :  { %836 = vmatprep.subr.bf16.mxu0 %v4898_v33  ;;  %877 = vmatprep.subr.bf16.mxu1 %v4900_v34  ;;  %6940 = vst [vmem:[#allocation34_spill] sm:$0xff] %v5060_v26  ;;  %6941 = vst [vmem:[#allocation35_spill] sm:$0xff] %v5062_v27  ;;  %v5070_v29 = vld [vmem:[#allocation13 + $0x40] ss:$16 sps:$4 sm:$0xff]   ;;  %v5072_v30 = vld [vmem:[#allocation13 + $0x48] ss:$16 sps:$4 sm:$0xff]  }
  0x6c   :  { %6942 = vst [vmem:[#allocation36_spill] sm:$0xff] %v5064_v28  ;;  %6943 = vst [vmem:[#allocation37_spill] sm:$0xff] %v5070_v29  ;;  %v5076_v31 = vld [vmem:[#allocation13 + $0x24] ss:$16 sps:$4 sm:$0xff]   ;;  %v5078_v32 = vld [vmem:[#allocation13 + $0x2c] ss:$16 sps:$4 sm:$0xff]  }
  0x6d   :  { %403 = vmatmul.mubr.bf16.vlgmr.msra.gmra.mxu0 %v4041_v35  ;;  %476 = vmatmul.mubr.bf16.vlgmr.msra.gmra.mxu1 %v4041_v35  ;;  %6944 = vst [vmem:[#allocation38_spill] sm:$0xff] %v5072_v30  ;;  %6945 = vst [vmem:[#allocation39_spill] sm:$0xff] %v5076_v31  ;;  %v5082_v35 = vld [vmem:[#allocation13 + $0x20] ss:$16 sps:$4 sm:$0xff]   ;;  %s3748_s21 = sshll.u32 %s4809_s20, 4  ;;  %s3749_s21 = int_to_ptr.vmem [resolvable:$true] %s3748_s21 }
  0x6e   :  { %837 = vmatpush1.bf16.msra.mxu0 %v4902_v36  ;;  %878 = vmatpush1.bf16.msra.mxu1 %v4904_v37  ;;  %6946 = vst [vmem:[#allocation40_spill] sm:$0xff] %v5078_v32  ;;  %6947 = vst [vmem:[#allocation41_spill] sm:$0xff] %v5082_v35  ;;  %s4765_s22 = scalar_lea.vmem %s3749_s21, 128  ;;  %p4770_p3 = scmp.lt.s32.totalorder %s3749_s21, %s3749_s21 }
  0x6f   :  { %838 = vmatprep.subr.bf16.mxu0 %v4908_v38  ;;  %879 = vmatprep.subr.bf16.mxu1 %v4910_v39  ;;  %p4766_p2 = scmp.ne.s32.totalorder %s3749_s21, %s4765_s22  ;;  %p4771_p4 = scmp.lt.s32.totalorder %s4765_s22, %s4765_s22 }
  0x70   :  { %412 = vmatprep.mubr.bf16.mxu0 %v6613_v0  ;;  %485 = vmatprep.mubr.bf16.mxu1 %v6613_v0 }
  0x71   :  { %p4772_p5 = por %p4771_p4, %p4770_p3 }
  0x72   :  { %839 = vmatpush1.bf16.msra.mxu0 %v4912_v40  ;;  %880 = vmatpush1.bf16.msra.mxu1 %v4916_v41 }
  0x73   :  { %840 = vmatprep.subr.bf16.mxu0 %v4920_v42  ;;  %881 = vmatprep.subr.bf16.mxu1 %v4922_v43  ;;  %p4773_p6 = pnand %p4772_p5, %p4766_p2 }
  0x75   :  { %413 = vmatmul.mubr.bf16.gmra.mxu0 %v4054_v44  ;;  %486 = vmatmul.mubr.bf16.gmra.mxu1 %v4054_v44  ;;  %v5084_v44 = vld [vmem:[#allocation13 + $0x28] ss:$16 sps:$4 sm:$0xff]  }
  0x76   :  { %841 = vmatpush1.bf16.msra.mxu0 %v4926_v45  ;;  %882 = vmatpush1.bf16.msra.mxu1 %v4928_v46  ;;  %6948 = vst [vmem:[#allocation42_spill] sm:$0xff] %v5084_v44 }
  0x77   :  { %842 = vmatprep.subr.bf16.mxu0 %v4932_v47  ;;  %883 = vmatprep.subr.bf16.mxu1 %v4936_v48 }
  0x78   :  { %422 = vmatprep.mubr.bf16.mxu0 %v6613_v0  ;;  %495 = vmatprep.mubr.bf16.mxu1 %v6613_v0 }
  0x7a   :  { %843 = vmatpush1.bf16.msra.mxu0 %v4938_v49  ;;  %884 = vmatpush1.bf16.msra.mxu1 %v4940_v50 }
  0x7b   :  { %844 = vmatprep.subr.bf16.mxu0 %v4944_v51  ;;  %885 = vmatprep.subr.bf16.mxu1 %v4948_v52 }
  0x7d   :  { %423 = vmatmul.mubr.bf16.gmra.mxu0 %v4067_v53  ;;  %496 = vmatmul.mubr.bf16.gmra.mxu1 %v4067_v53  ;;  %v5088_v53 = vld [vmem:[#allocation13 + $0x4] ss:$16 sps:$4 sm:$0xff]  }
  0x7e   :  { %845 = vmatpush1.bf16.msra.mxu0 %v4952_v54  ;;  %886 = vmatpush1.bf16.msra.mxu1 %v4954_v55  ;;  %6949 = vst [vmem:[#allocation43_spill] sm:$0xff] %v5088_v53 }
  0x7f   :  { %846 = vmatprep.subr.bf16.mxu0 %v4956_v56  ;;  %887 = vmatprep.subr.bf16.mxu1 %v4958_v57 }
  0x80   :  { %432 = vmatprep.mubr.bf16.mxu0 %v6613_v0  ;;  %505 = vmatprep.mubr.bf16.mxu1 %v6613_v0 }
  0x82   :  { %847 = vmatpush1.bf16.msra.mxu0 %v4964_v58  ;;  %888 = vmatpush1.bf16.msra.mxu1 %v4966_v59 }
  0x83   :  { %848 = vmatprep.subr.bf16.mxu0 %v4968_v60  ;;  %889 = vmatprep.subr.bf16.mxu1 %v4970_v61 }
  0x85   :  { %433 = vmatmul.mubr.bf16.gmra.mxu0 %v4080_v62  ;;  %506 = vmatmul.mubr.bf16.gmra.mxu1 %v4080_v62  ;;  %v5090_v62 = vld [vmem:[#allocation13 + $0xc] ss:$16 sps:$4 sm:$0xff]  }
  0x86   :  { %849 = vmatpush1.bf16.msra.mxu0 %v4978_v63  ;;  %890 = vmatpush1.bf16.msra.mxu1 %v4980_v1  ;;  %6950 = vst [vmem:[#allocation44_spill] sm:$0xff] %v5090_v62 }
  0x87   :  { %850 = vmatprep.subr.bf16.mxu0 %v4982_v2  ;;  %891 = vmatprep.subr.bf16.mxu1 %v4984_v3 }
  0x88   :  { %868 = vmatprep.mubr.bf16.mxu0 %v6613_v0  ;;  %909 = vmatprep.mubr.bf16.mxu1 %v6613_v0 }
  0x8a   :  { %851 = vmatpush1.bf16.msra.mxu0 %v4990_v4  ;;  %892 = vmatpush1.bf16.msra.mxu1 %v4992_v5 }
  0x8b   :  { %1107 = vmatprep.subr.bf16.mxu0 %v5006_v7  ;;  %1148 = vmatprep.subr.bf16.mxu1 %v5008_v8 }
  0x8d   :  { %869 = vmatmul.mubr.bf16.vlgmr.msra.gmra.mxu0 %v6611_v6  ;;  %910 = vmatmul.mubr.bf16.vlgmr.msra.gmra.mxu1 %v6611_v6  ;;  %v5094_v6 = vld [vmem:[#allocation13] ss:$16 sps:$4 sm:$0xff]  }
  0x8e   :  { %1139 = vmatprep.mubr.bf16.mxu0 %v6613_v0  ;;  %1180 = vmatprep.mubr.bf16.mxu1 %v6613_v0  ;;  %6951 = vst [vmem:[#allocation45_spill] sm:$0xff] %v5094_v6  ;;  %v5096_v0 = vld [vmem:[#allocation13 + $0x8] ss:$16 sps:$4 sm:$0xff]  }
  0x8f   :  { %1108 = vmatpush1.bf16.msra.mxu0 %v5010_v9  ;;  %1149 = vmatpush1.bf16.msra.mxu1 %v5012_v10  ;;  %6952 = vst [vmem:[#allocation46_spill] sm:$0xff] %v5096_v0 }
  0x90   :  { %1109 = vmatprep.subr.bf16.mxu0 %v5018_v11  ;;  %1150 = vmatprep.subr.bf16.mxu1 %v5020_v12 }
  0x93   :  { %1110 = vmatpush1.bf16.msra.mxu0 %v5022_v13  ;;  %1151 = vmatpush1.bf16.msra.mxu1 %v5024_v14 }
  0x94   :  { %1111 = vmatprep.subr.bf16.mxu0 %v5030_v15  ;;  %1152 = vmatprep.subr.bf16.mxu1 %v5032_v16 }
  0x97   :  { %1112 = vmatpush1.bf16.msra.mxu0 %v5034_v17  ;;  %1153 = vmatpush1.bf16.msra.mxu1 %v5036_v18 }
  0x98   :  { %1113 = vmatprep.subr.bf16.mxu0 %v5042_v19  ;;  %1154 = vmatprep.subr.bf16.mxu1 %v5044_v20 }
  0x9b   :  { %1114 = vmatpush1.bf16.msra.mxu0 %v5046_v21  ;;  %1155 = vmatpush1.bf16.msra.mxu1 %v5048_v22 }
  0x9c   :  { %1115 = vmatprep.subr.bf16.mxu0 %v5054_v23  ;;  %1156 = vmatprep.subr.bf16.mxu1 %v5056_v24 }
  0x9f   :  { %1116 = vmatpush1.bf16.msra.mxu0 %v5058_v25  ;;  %1157 = vmatpush1.bf16.msra.mxu1 %v5060_v26 }
  0xa0   :  { %1117 = vmatprep.subr.bf16.mxu0 %v5062_v27  ;;  %1158 = vmatprep.subr.bf16.mxu1 %v5064_v28 }
  0xa3   :  { %1118 = vmatpush1.bf16.msra.mxu0 %v5070_v29  ;;  %1159 = vmatpush1.bf16.msra.mxu1 %v5072_v30  ;;  %v5100_v30 = vld [vmem:[#allocation15 + $0xe4] ss:$16 sps:$4 sm:$0xff]   ;;  %v164_v29 = vld [vmem:[%s6604_s3] sm:$0xf] }
  0xa4   :  { %1119 = vmatprep.subr.bf16.mxu0 %v5076_v31  ;;  %1160 = vmatprep.subr.bf16.mxu1 %v5078_v32  ;;  %6953 = vst [vmem:[#allocation47_spill] sm:$0xff] %v5100_v30  ;;  %v5102_v31 = vld [vmem:[#allocation15 + $0xec] ss:$16 sps:$4 sm:$0xff]  }
  0xa5   :  { %6954 = vst [vmem:[#allocation48_spill] sm:$0xff] %v5102_v31 }
  0xa7   :  { %1120 = vmatpush1.bf16.msra.mxu0 %v5082_v35  ;;  %1161 = vmatpush1.bf16.msra.mxu1 %v5084_v44  ;;  %v166_v44 = vlaneseq }
  0xa8   :  { %1121 = vmatprep.subr.bf16.mxu0 %v5088_v53  ;;  %1162 = vmatprep.subr.bf16.mxu1 %v5090_v62 }
  0xa9   :  { %v5108_v35 = vshrl.u32 %v166_v44, 7 }
  0xab   :  { %1122 = vmatpush1.bf16.msra.mxu0 %v5094_v6  ;;  %1163 = vmatpush1.bf16.msra.mxu1 %v5096_v0  ;;  %6955 = vst [vmem:[#allocation49_spill] sm:$0xff] %v5108_v35  ;;  %v6651_v32 = vsub.s32 2, %v5108_v35  ;;  %v6658_v53 = vsub.s32 0, %v5108_v35  ;;  %v6661_v62 = vsub.s32 3, %v5108_v35  ;;  %v6666_v24 = vsub.s32 1, %v5108_v35 }
  0xac   :  { %1349 = vmatprep.subr.bf16.mxu0 %v5100_v30  ;;  %1390 = vmatprep.subr.bf16.mxu1 %v5102_v31 }
  0xad   :  { %v5120_v30 = vrot.slane %v164_v29, %v6651_v32  ;;  %v169_v0 = vrot.slane %v164_v29, %v6658_v53  ;;  %v5130_v27 = vrot.slane %v164_v29, %v6661_v62  ;;  %v5145_v62 = vrot.slane %v164_v29, %v6666_v24 }
  0xaf   :  { %6960 = vst [vmem:[#allocation54_spill] sm:$0xff] %v5145_v62 }
 0x12d   :  { %v404_v6 = vpop.f32.mrf.mxu0  ;;  %v5116_v28 = vpop.f32.mrf.mxu1 }
 0x12f   :  { %v5122_v31 = vpop.f32.mrf.mxu0  ;;  %v5124_v44 = vpop.f32.mrf.mxu1 }
 0x131   :  { %v408_v26 = vpop.f32.mrf.mxu0  ;;  %v481_v25 = vpop.f32.mrf.mxu1 }
 0x132   :  { %v5133_v23 = vadd.f32 %v408_v26, %v169_v0  ;;  %v5136_v32 = vadd.f32 %v481_v25, %v5120_v30 }
 0x133   :  { %v5138_v22 = vpop.f32.mrf.mxu0  ;;  %v483_v21 = vpop.f32.mrf.mxu1 }
 0x134   :  { %6956 = vst [vmem:[#allocation50_spill] sm:$0xff] %v5133_v23  ;;  %6957 = vst [vmem:[#allocation51_spill] sm:$0xff] %v5136_v32  ;;  %v5141_v20 = vadd.f32 %v483_v21, %v5130_v27 }
 0x135   :  { %6958 = vst [vmem:[#allocation52_spill] sm:$0xff] %v5138_v22  ;;  %v414_v53 = vpop.f32.mrf.mxu0  ;;  %v487_v19 = vpop.f32.mrf.mxu1 }
 0x136   :  { %6959 = vst [vmem:[#allocation53_spill] sm:$0xff] %v5141_v20  ;;  %v5147_v18 = vadd.f32 %v414_v53, %v169_v0  ;;  %v5150_v26 = vadd.f32 %v487_v19, %v5120_v30 }
 0x137   :  { %v416_v23 = vpop.f32.mrf.mxu0  ;;  %v489_v25 = vpop.f32.mrf.mxu1 }
 0x138   :  { %6961 = vst [vmem:[#allocation55_spill] sm:$0xff] %v5147_v18  ;;  %6962 = vst [vmem:[#allocation56_spill] sm:$0xff] %v5150_v26  ;;  %v5153_v32 = vadd.f32 %v416_v23, %v5145_v62  ;;  %v5156_v22 = vadd.f32 %v489_v25, %v5130_v27 }
 0x139   :  { %v418_v21 = vpop.f32.mrf.mxu0  ;;  %v491_v20 = vpop.f32.mrf.mxu1 }
 0x13a   :  { %6963 = vst [vmem:[#allocation57_spill] sm:$0xff] %v5153_v32  ;;  %6964 = vst [vmem:[#allocation58_spill] sm:$0xff] %v5156_v22  ;;  %v5158_v17 = vadd.f32 %v418_v21, %v169_v0  ;;  %v5161_v29 = vadd.f32 %v491_v20, %v5120_v30 }
 0x13b   :  { %v420_v53 = vpop.f32.mrf.mxu0  ;;  %v493_v24 = vpop.f32.mrf.mxu1 }
 0x13c   :  { %6965 = vst [vmem:[#allocation59_spill] sm:$0xff] %v5158_v17  ;;  %6966 = vst [vmem:[#allocation60_spill] sm:$0xff] %v5161_v29  ;;  %v5164_v19 = vadd.f32 %v420_v53, %v5145_v62  ;;  %v5167_v26 = vadd.f32 %v493_v24, %v5130_v27 }
 0x13d   :  { %v424_v23 = vpop.f32.mrf.mxu0  ;;  %v497_v32 = vpop.f32.mrf.mxu1 }
 0x13e   :  { %6967 = vst [vmem:[#allocation61_spill] sm:$0xff] %v5164_v19  ;;  %6968 = vst [vmem:[#allocation62_spill] sm:$0xff] %v5167_v26  ;;  %v5169_v18 = vadd.f32 %v424_v23, %v169_v0  ;;  %v5172_v25 = vadd.f32 %v497_v32, %v5120_v30 }
 0x13f   :  { %v426_v21 = vpop.f32.mrf.mxu0  ;;  %v499_v17 = vpop.f32.mrf.mxu1 }
 0x140   :  { %6969 = vst [vmem:[#allocation63_spill] sm:$0xff] %v5169_v18  ;;  %6970 = vst [vmem:[#allocation64_spill] sm:$0xff] %v5172_v25  ;;  %v5175_v20 = vadd.f32 %v426_v21, %v5145_v62  ;;  %v5178_v29 = vadd.f32 %v499_v17, %v5130_v27 }
 0x141   :  { %v428_v53 = vpop.f32.mrf.mxu0  ;;  %v501_v19 = vpop.f32.mrf.mxu1 }
 0x142   :  { %6971 = vst [vmem:[#allocation65_spill] sm:$0xff] %v5175_v20  ;;  %6972 = vst [vmem:[#allocation66_spill] sm:$0xff] %v5178_v29  ;;  %v5180_v22 = vadd.f32 %v428_v53, %v169_v0  ;;  %v5183_v24 = vadd.f32 %v501_v19, %v5120_v30 }
 0x143   :  { %v430_v23 = vpop.f32.mrf.mxu0  ;;  %v503_v18 = vpop.f32.mrf.mxu1 }
 0x144   :  { %6973 = vst [vmem:[#allocation67_spill] sm:$0xff] %v5180_v22  ;;  %6974 = vst [vmem:[#allocation68_spill] sm:$0xff] %v5183_v24  ;;  %v5186_v32 = vadd.f32 %v430_v23, %v5145_v62  ;;  %v5189_v25 = vadd.f32 %v503_v18, %v5130_v27 }
 0x145   :  { %v434_v21 = vpop.f32.mrf.mxu0  ;;  %v507_v20 = vpop.f32.mrf.mxu1 }
 0x146   :  { %6975 = vst [vmem:[#allocation69_spill] sm:$0xff] %v5186_v32  ;;  %6976 = vst [vmem:[#allocation70_spill] sm:$0xff] %v5189_v25  ;;  %v5191_v26 = vadd.f32 %v434_v21, %v169_v0  ;;  %v5194_v17 = vadd.f32 %v507_v20, %v5120_v30  ;;  %v405_v25 = vadd.f32 %v404_v6, %v169_v0 }
 0x147   :  { %v436_v53 = vpop.f32.mrf.mxu0  ;;  %v509_v22 = vpop.f32.mrf.mxu1 }
 0x148   :  { %6977 = vst [vmem:[#allocation71_spill] sm:$0xff] %v5191_v26  ;;  %6978 = vst [vmem:[#allocation72_spill] sm:$0xff] %v5194_v17  ;;  %v5197_v19 = vadd.f32 %v436_v53, %v5145_v62  ;;  %v5200_v24 = vadd.f32 %v509_v22, %v5130_v27  ;;  %v407_v22 = vadd.f32 %v5122_v31, %v5145_v62 }
 0x149   :  { %v438_v23 = vpop.f32.mrf.mxu0  ;;  %v511_v32 = vpop.f32.mrf.mxu1 }
 0x14a   :  { %6979 = vst [vmem:[#allocation73_spill] sm:$0xff] %v5197_v19  ;;  %6980 = vst [vmem:[#allocation74_spill] sm:$0xff] %v5200_v24  ;;  %v5202_v29 = vadd.f32 %v438_v23, %v169_v0  ;;  %v5205_v18 = vadd.f32 %v511_v32, %v5120_v30 }
 0x14b   :  { %v440_v21 = vpop.f32.mrf.mxu0  ;;  %v513_v26 = vpop.f32.mrf.mxu1 }
 0x14c   :  { %6981 = vst [vmem:[#allocation75_spill] sm:$0xff] %v5202_v29  ;;  %6982 = vst [vmem:[#allocation76_spill] sm:$0xff] %v5205_v18  ;;  %v5208_v20 = vadd.f32 %v440_v21, %v5145_v62  ;;  %v5211_v17 = vadd.f32 %v513_v26, %v5130_v27  ;;  %v480_v26 = vadd.f32 %v5124_v44, %v5130_v27 }
 0x14d   :  { %v870_v53 = vpop.f32.mrf.mxu0  ;;  %v911_v19 = vpop.f32.mrf.mxu1 }
 0x14e   :  { %6983 = vst [vmem:[#allocation77_spill] sm:$0xff] %v5208_v20  ;;  %6984 = vst [vmem:[#allocation78_spill] sm:$0xff] %v5211_v17  ;;  %v918_v24 = vadd.f32 %v870_v53, %v405_v25  ;;  %v478_v20 = vadd.f32 %v5116_v28, %v5120_v30 }
 0x14f   :  { %v872_v23 = vpop.f32.mrf.mxu0  ;;  %v913_v29 = vpop.f32.mrf.mxu1 }
 0x150   :  { %v3828_v35 = vmul.f32 -1.442695, %v918_v24  ;;  %v919_v32 = vadd.f32 %v872_v23, %v407_v22  ;;  %v921_v17 = vadd.f32 %v913_v29, %v480_v26  ;;  %v920_v53 = vadd.f32 %v911_v19, %v478_v20  ;;  %v5222_v19 = vld [vmem:[#allocation15 + $0xe0] ss:$16 sps:$4 sm:$0xff]   ;;  %v5238_v26 = vld [vmem:[#allocation15 + $0xc8] ss:$16 sps:$4 sm:$0xff]  }
 0x151   :  { %v874_v18 = vpop.f32.mrf.mxu0  ;;  %v915_v16 = vpop.f32.mrf.mxu1 }
 0x152   :  { %4197 = vpow2.f32 %v3828_v35  ;;  %v3829_v0 = vmul.f32 -1.442695, %v919_v32  ;;  %v3830_v31 = vmul.f32 -1.442695, %v921_v17 }
 0x153   :  { %v875_v6 = vpop.f32.mrf.mxu0  ;;  %v916_v21 = vpop.f32.mrf.mxu1 }
 0x154   :  { %4199 = vpow2.f32 %v3829_v0  ;;  %v5228_v0 = vld [vmem:[#allocation15 + $0xc4] ss:$16 sps:$4 sm:$0xff]   ;;  %v5230_v6 = vld [vmem:[#allocation15 + $0xcc] ss:$16 sps:$4 sm:$0xff]   ;;  %v5236_v21 = vld [vmem:[#allocation15 + $0xc0] ss:$16 sps:$4 sm:$0xff]  }
 0x155   :  { %4201 = vpow2.f32 %v3830_v31  ;;  %v5242_v31 = vld [vmem:[#allocation15 + $0xa4] ss:$16 sps:$4 sm:$0xff]  }
 0x15f   :  { %v4198_v25 = vpop.eup %4197 }
 0x160   :  { %v925_v62 = vadd.f32 1.0, %v4198_v25  ;;  %v5244_v25 = vld [vmem:[#allocation15 + $0xac] ss:$16 sps:$4 sm:$0xff]  }
 0x161   :  { %v4200_v24 = vpop.eup %4199 }
 0x162   :  { %4203 = vrcp.f32 %v925_v62  ;;  %v931_v16 = vadd.f32 1.0, %v4200_v24  ;;  %v4202_v35 = vpop.eup %4201  ;;  %v5224_v62 = vld [vmem:[#allocation15 + $0xe8] ss:$16 sps:$4 sm:$0xff]   ;;  %v5250_v24 = vld [vmem:[#allocation15 + $0xa0] ss:$16 sps:$4 sm:$0xff]  }
 0x163   :  { %4205 = vtanh.f32 %v920_v53  ;;  %v938_v32 = vadd.f32 1.0, %v4202_v35  ;;  %v6985_v53 = vmov 0   ;;  %v5256_v35 = vld [vmem:[#allocation15 + $0x84] ss:$16 sps:$4 sm:$0xff]  }
 0x164   :  { %4207 = vrcp.f32 %v931_v16  ;;  %v5252_v16 = vld [vmem:[#allocation15 + $0xa8] ss:$16 sps:$4 sm:$0xff]  }
 0x165   :  { %4209 = vrcp.f32 %v938_v32  ;;  %v5268_v32 = vld [vmem:[#allocation15 + $0x64] ss:$16 sps:$4 sm:$0xff]  }
 0x166   :  { %6989 = vst [vmem:[#allocation82_spill] sm:$0xff] %v5268_v32 }
 0x16f   :  { %v4204_v18 = vpop.eup %4203 }
 0x170   :  { %v4206_v22 = vpop.eup %4205 }
 0x171   :  { %v4208_v23 = vpop.eup %4207  ;;  %v942_v44 = vmul.f32 %v4206_v22, %v4204_v18  ;;  %v5258_v18 = vld [vmem:[#allocation15 + $0x8c] ss:$16 sps:$4 sm:$0xff]   ;;  %v5262_v22 = vld [vmem:[#allocation15 + $0x80] ss:$16 sps:$4 sm:$0xff]  }
 0x172   :  { %v941_v27 = vmul.f32 0.0, %v4208_v23  ;;  %v4210_v28 = vpop.eup %4209  ;;  %6986 = vst [vmem:[#allocation79_spill] sm:$0xff] %v5258_v18  ;;  %6987 = vst [vmem:[#allocation80_spill] sm:$0xff] %v5262_v22  ;;  %v5264_v23 = vld [vmem:[#allocation15 + $0x88] ss:$16 sps:$4 sm:$0xff]  }
 0x173   :  { %6988 = vst [vmem:[#allocation81_spill] sm:$0xff] %v5264_v23 }
 0x174   :  { %v5219_v29 = vadd.f32 %v942_v44, %v941_v27  ;;  %v5270_v27 = vld [vmem:[#allocation15 + $0x6c] ss:$16 sps:$4 sm:$0xff]   ;;  %v5274_v44 = vld [vmem:[#allocation15 + $0x60] ss:$16 sps:$4 sm:$0xff]  }
 0x175   :  { %6990 = vst [vmem:[#allocation83_spill] sm:$0xff] %v5270_v27  ;;  %6991 = vst [vmem:[#allocation84_spill] sm:$0xff] %v5274_v44 }
 0x176   :  { %4211 = vtanh.f32 %v5219_v29 }
 0x183   :  { %v4212_v30 = vpop.eup %4211 }
 0x184   :  { %v945_v17 = vmul.f32 %v4212_v30, %v4210_v28  ;;  %v5276_v28 = vld [vmem:[#allocation15 + $0x68] ss:$16 sps:$4 sm:$0xff]   ;;  %v5280_v30 = vld [vmem:[#allocation15 + $0x44] ss:$16 sps:$4 sm:$0xff]  }
 0x185   :  { %6992 = vst [vmem:[#allocation85_spill] sm:$0xff] %v5276_v28  ;;  %6993 = vst [vmem:[#allocation86_spill] sm:$0xff] %v5280_v30 }
 0x186   :  { %v5226_v20 = vpack.c.bf16 %v945_v17, %v945_v17  ;;  %v5282_v17 = vld [vmem:[#allocation15 + $0x4c] ss:$16 sps:$4 sm:$0xff]  }
 0x187   :  { %6994 = vst [vmem:[#allocation87_spill] sm:$0xff] %v5282_v17 }
 0x188   :  { %1140 = vmatmul.mubr.bf16.vlgmr.msra.gmra.mxu0 %v5226_v20  ;;  %1181 = vmatmul.mubr.bf16.vlgmr.msra.gmra.mxu1 %v5226_v20 }
 0x189   :  { %1350 = vmatpush1.bf16.msra.mxu0 %v5222_v19  ;;  %1391 = vmatpush1.bf16.msra.mxu1 %v5224_v62 }
 0x18a   :  { %1351 = vmatprep.subr.bf16.mxu0 %v5228_v0  ;;  %1392 = vmatprep.subr.bf16.mxu1 %v5230_v6 }
 0x18b   :  { %1381 = vmatprep.mubr.bf16.mxu0 %v6985_v53  ;;  %1422 = vmatprep.mubr.bf16.mxu1 %v6985_v53 }
 0x18d   :  { %1352 = vmatpush1.bf16.msra.mxu0 %v5236_v21  ;;  %1393 = vmatpush1.bf16.msra.mxu1 %v5238_v26 }
 0x18e   :  { %1353 = vmatprep.subr.bf16.mxu0 %v5242_v31  ;;  %1394 = vmatprep.subr.bf16.mxu1 %v5244_v25 }
 0x191   :  { %1354 = vmatpush1.bf16.msra.mxu0 %v5250_v24  ;;  %1395 = vmatpush1.bf16.msra.mxu1 %v5252_v16 }
 0x192   :  { %1355 = vmatprep.subr.bf16.mxu0 %v5256_v35  ;;  %1396 = vmatprep.subr.bf16.mxu1 %v5258_v18  ;;  %v5286_v18 = vld [vmem:[#allocation15 + $0x40] ss:$16 sps:$4 sm:$0xff]  }
 0x193   :  { %6995 = vst [vmem:[#allocation88_spill] sm:$0xff] %v5286_v18 }
 0x195   :  { %1356 = vmatpush1.bf16.msra.mxu0 %v5262_v22  ;;  %1397 = vmatpush1.bf16.msra.mxu1 %v5264_v23  ;;  %v5288_v22 = vld [vmem:[#allocation15 + $0x48] ss:$16 sps:$4 sm:$0xff]   ;;  %v5292_v23 = vld [vmem:[#allocation15 + $0x24] ss:$16 sps:$4 sm:$0xff]  }
 0x196   :  { %1357 = vmatprep.subr.bf16.mxu0 %v5268_v32  ;;  %1398 = vmatprep.subr.bf16.mxu1 %v5270_v27  ;;  %v5294_v32 = vld [vmem:[#allocation15 + $0x2c] ss:$16 sps:$4 sm:$0xff]   ;;  %v5298_v27 = vld [vmem:[#allocation15 + $0x20] ss:$16 sps:$4 sm:$0xff]  }
 0x197   :  { %6996 = vst [vmem:[#allocation89_spill] sm:$0xff] %v5294_v32 }
 0x199   :  { %1358 = vmatpush1.bf16.msra.mxu0 %v5274_v44  ;;  %1399 = vmatpush1.bf16.msra.mxu1 %v5276_v28  ;;  %v5300_v44 = vld [vmem:[#allocation15 + $0x28] ss:$16 sps:$4 sm:$0xff]   ;;  %v5304_v28 = vld [vmem:[#allocation15 + $0x4] ss:$16 sps:$4 sm:$0xff]  }
 0x19a   :  { %1359 = vmatprep.subr.bf16.mxu0 %v5280_v30  ;;  %1400 = vmatprep.subr.bf16.mxu1 %v5282_v17  ;;  %v5306_v30 = vld [vmem:[#allocation15 + $0xc] ss:$16 sps:$4 sm:$0xff]   ;;  %v5310_v17 = vld [vmem:[#allocation15] ss:$16 sps:$4 sm:$0xff]  }
 0x19d   :  { %1360 = vmatpush1.bf16.msra.mxu0 %v5286_v18  ;;  %1401 = vmatpush1.bf16.msra.mxu1 %v5288_v22  ;;  %v5312_v18 = vld [vmem:[#allocation15 + $0x8] ss:$16 sps:$4 sm:$0xff]  }
 0x19e   :  { %1361 = vmatprep.subr.bf16.mxu0 %v5292_v23  ;;  %1402 = vmatprep.subr.bf16.mxu1 %v5294_v32  ;;  %v6997_v32 = vmov 0.0|0.0  }
 0x1a1   :  { %1362 = vmatpush1.bf16.msra.mxu0 %v5298_v27  ;;  %1403 = vmatpush1.bf16.msra.mxu1 %v5300_v44 }
 0x1a2   :  { %1363 = vmatprep.subr.bf16.mxu0 %v5304_v28  ;;  %1404 = vmatprep.subr.bf16.mxu1 %v5306_v30 }
 0x1a5   :  { %1364 = vmatpush1.bf16.msra.mxu0 %v5310_v17  ;;  %1405 = vmatpush1.bf16.msra.mxu1 %v5312_v18 }
 0x1a6   :  { %1465 = vmatprep.subr.bf16.mxu0 %v4898_v33  ;;  %1506 = vmatprep.subr.bf16.mxu1 %v4900_v34  ;;  %v6998_v33 = vld [vmem:[#allocation24_spill] sm:$0xff]  ;;  %v6999_v34 = vld [vmem:[#allocation25_spill] sm:$0xff] }
 0x1a8   :  { %1382 = vmatmul.mubr.bf16.vlgmr.msra.gmra.mxu0 %v6997_v32  ;;  %1423 = vmatmul.mubr.bf16.vlgmr.msra.gmra.mxu1 %v6997_v32  ;;  %v5395_v32 = vld [vmem:[%s6607_s6] sm:$0xf] }
 0x1a9   :  { %1466 = vmatpush1.bf16.msra.mxu0 %v4902_v36  ;;  %1507 = vmatpush1.bf16.msra.mxu1 %v4904_v37  ;;  %v7000_v36 = vld [vmem:[#allocation26_spill] sm:$0xff]  ;;  %v7001_v37 = vld [vmem:[#allocation27_spill] sm:$0xff] }
 0x1aa   :  { %1467 = vmatprep.subr.bf16.mxu0 %v4908_v38  ;;  %1508 = vmatprep.subr.bf16.mxu1 %v4910_v39  ;;  %v7002_v38 = vld [vmem:[#allocation28_spill] sm:$0xff]  ;;  %v7003_v39 = vld [vmem:[#allocation29_spill] sm:$0xff] }
 0x1ab   :  { %1497 = vmatprep.mubr.bf16.mxu0 %v6985_v53  ;;  %1538 = vmatprep.mubr.bf16.mxu1 %v6985_v53 }
 0x1ad   :  { %1468 = vmatpush1.bf16.msra.mxu0 %v4912_v40  ;;  %1509 = vmatpush1.bf16.msra.mxu1 %v4916_v41  ;;  %v7004_v40 = vld [vmem:[#allocation30_spill] sm:$0xff]  ;;  %v7005_v41 = vld [vmem:[#allocation31_spill] sm:$0xff] }
 0x1ae   :  { %1469 = vmatprep.subr.bf16.mxu0 %v4920_v42  ;;  %1510 = vmatprep.subr.bf16.mxu1 %v4922_v43  ;;  %v7006_v42 = vld [vmem:[#allocation32_spill] sm:$0xff]  ;;  %v7007_v43 = vld [vmem:[#allocation33_spill] sm:$0xff] }
 0x1b1   :  { %1470 = vmatpush1.bf16.msra.mxu0 %v4926_v45  ;;  %1511 = vmatpush1.bf16.msra.mxu1 %v4928_v46  ;;  %v7008_v45 = vld [vmem:[#allocation34_spill] sm:$0xff]  ;;  %v7009_v46 = vld [vmem:[#allocation35_spill] sm:$0xff] }
 0x1b2   :  { %1471 = vmatprep.subr.bf16.mxu0 %v4932_v47  ;;  %1512 = vmatprep.subr.bf16.mxu1 %v4936_v48  ;;  %v7010_v47 = vld [vmem:[#allocation36_spill] sm:$0xff]  ;;  %v7011_v48 = vld [vmem:[#allocation37_spill] sm:$0xff] }
 0x1b5   :  { %1472 = vmatpush1.bf16.msra.mxu0 %v4938_v49  ;;  %1513 = vmatpush1.bf16.msra.mxu1 %v4940_v50  ;;  %v7012_v49 = vld [vmem:[#allocation38_spill] sm:$0xff]  ;;  %v7013_v50 = vld [vmem:[#allocation39_spill] sm:$0xff] }
 0x1b6   :  { %1473 = vmatprep.subr.bf16.mxu0 %v4944_v51  ;;  %1514 = vmatprep.subr.bf16.mxu1 %v4948_v52  ;;  %v7014_v51 = vld [vmem:[#allocation40_spill] sm:$0xff]  ;;  %v7015_v52 = vld [vmem:[#allocation41_spill] sm:$0xff] }
 0x1b9   :  { %1474 = vmatpush1.bf16.msra.mxu0 %v4952_v54  ;;  %1515 = vmatpush1.bf16.msra.mxu1 %v4954_v55  ;;  %v7016_v54 = vld [vmem:[#allocation42_spill] sm:$0xff]  ;;  %v7017_v55 = vld [vmem:[#allocation43_spill] sm:$0xff] }
 0x1ba   :  { %1475 = vmatprep.subr.bf16.mxu0 %v4956_v56  ;;  %1516 = vmatprep.subr.bf16.mxu1 %v4958_v57  ;;  %v7018_v56 = vld [vmem:[#allocation44_spill] sm:$0xff]  ;;  %v7019_v57 = vld [vmem:[#allocation45_spill] sm:$0xff] }
 0x1bd   :  { %1476 = vmatpush1.bf16.msra.mxu0 %v4964_v58  ;;  %1517 = vmatpush1.bf16.msra.mxu1 %v4966_v59  ;;  %v7020_v58 = vld [vmem:[#allocation46_spill] sm:$0xff]  ;;  %v7021_v59 = vld [vmem:[#allocation47_spill] sm:$0xff] }
 0x1be   :  { %1477 = vmatprep.subr.bf16.mxu0 %v4968_v60  ;;  %1518 = vmatprep.subr.bf16.mxu1 %v4970_v61  ;;  %v7022_v60 = vld [vmem:[#allocation48_spill] sm:$0xff] }
 0x1c1   :  { %1478 = vmatpush1.bf16.msra.mxu0 %v4978_v63  ;;  %1519 = vmatpush1.bf16.msra.mxu1 %v4980_v1 }
 0x1c2   :  { %1479 = vmatprep.subr.bf16.mxu0 %v4982_v2  ;;  %1520 = vmatprep.subr.bf16.mxu1 %v4984_v3 }
 0x1c5   :  { %1480 = vmatpush1.bf16.msra.mxu0 %v4990_v4  ;;  %1521 = vmatpush1.bf16.msra.mxu1 %v4992_v5 }
 0x1c6   :  { %1576 = vmatprep.subr.bf16.mxu0 %v5006_v7  ;;  %1617 = vmatprep.subr.bf16.mxu1 %v5008_v8 }
 0x1c8   :  { %1498 = vmatmul.mubr.bf16.vlgmr.msra.gmra.mxu0 %v5226_v20  ;;  %1539 = vmatmul.mubr.bf16.vlgmr.msra.gmra.mxu1 %v5226_v20 }
 0x1c9   :  { %1577 = vmatpush1.bf16.msra.mxu0 %v5010_v9  ;;  %1618 = vmatpush1.bf16.msra.mxu1 %v5012_v10 }
 0x1ca   :  { %1578 = vmatprep.subr.bf16.mxu0 %v5018_v11  ;;  %1619 = vmatprep.subr.bf16.mxu1 %v5020_v12 }
 0x1cb   :  { %1608 = vmatprep.mubr.bf16.mxu0 %v6985_v53  ;;  %1649 = vmatprep.mubr.bf16.mxu1 %v6985_v53 }
 0x1cd   :  { %1579 = vmatpush1.bf16.msra.mxu0 %v5022_v13  ;;  %1620 = vmatpush1.bf16.msra.mxu1 %v5024_v14 }
 0x1ce   :  { %1580 = vmatprep.subr.bf16.mxu0 %v5030_v15  ;;  %1621 = vmatprep.subr.bf16.mxu1 %v6998_v33 }
 0x1d1   :  { %1581 = vmatpush1.bf16.msra.mxu0 %v6999_v34  ;;  %1622 = vmatpush1.bf16.msra.mxu1 %v7000_v36 }
 0x1d2   :  { %1582 = vmatprep.subr.bf16.mxu0 %v7001_v37  ;;  %1623 = vmatprep.subr.bf16.mxu1 %v7002_v38 }
 0x1d5   :  { %1583 = vmatpush1.bf16.msra.mxu0 %v7003_v39  ;;  %1624 = vmatpush1.bf16.msra.mxu1 %v7004_v40 }
 0x1d6   :  { %1584 = vmatprep.subr.bf16.mxu0 %v7005_v41  ;;  %1625 = vmatprep.subr.bf16.mxu1 %v7006_v42 }
 0x1d9   :  { %1585 = vmatpush1.bf16.msra.mxu0 %v7007_v43  ;;  %1626 = vmatpush1.bf16.msra.mxu1 %v7008_v45 }
 0x1da   :  { %1586 = vmatprep.subr.bf16.mxu0 %v7009_v46  ;;  %1627 = vmatprep.subr.bf16.mxu1 %v7010_v47 }
 0x1dd   :  { %1587 = vmatpush1.bf16.msra.mxu0 %v7011_v48  ;;  %1628 = vmatpush1.bf16.msra.mxu1 %v7012_v49 }
 0x1de   :  { %1588 = vmatprep.subr.bf16.mxu0 %v7013_v50  ;;  %1629 = vmatprep.subr.bf16.mxu1 %v7014_v51 }
 0x1e1   :  { %1589 = vmatpush1.bf16.msra.mxu0 %v7015_v52  ;;  %1630 = vmatpush1.bf16.msra.mxu1 %v7016_v54 }
 0x1e2   :  { %1590 = vmatprep.subr.bf16.mxu0 %v7017_v55  ;;  %1631 = vmatprep.subr.bf16.mxu1 %v7018_v56 }
 0x1e5   :  { %1591 = vmatpush1.bf16.msra.mxu0 %v7019_v57  ;;  %1632 = vmatpush1.bf16.msra.mxu1 %v7020_v58  ;;  %v7023_v57 = vld [vmem:[#allocation49_spill] sm:$0xff] }
 0x1e6   :  { %1658 = vmatprep.subr.bf16.mxu0 %v7021_v59  ;;  %1699 = vmatprep.subr.bf16.mxu1 %v7022_v60  ;;  %v7024_v56 = vsub.s32 0, %v7023_v57  ;;  %v7026_v52 = vsub.s32 1, %v7023_v57 }
 0x1e8   :  { %v5400_v58 = vrot.slane %v5395_v32, %v7024_v56 }
 0x1ea   :  { %7025 = vst [vmem:[#allocation24_spill] sm:$0xff] %v5400_v58 }
 0x248   :  { %v1141_v61 = vpop.f32.mrf.mxu0  ;;  %v1182_v63 = vpop.f32.mrf.mxu1 }
 0x24a   :  { %v1143_v1 = vpop.f32.mrf.mxu0  ;;  %v1184_v2 = vpop.f32.mrf.mxu1 }
 0x24c   :  { %v1145_v3 = vpop.f32.mrf.mxu0  ;;  %v1186_v4 = vpop.f32.mrf.mxu1 }
 0x24d   :  { %v5405_v3 = vrot.slane %v5395_v32, %v7026_v52 }
 0x24e   :  { %v1146_v5 = vpop.f32.mrf.mxu0  ;;  %v1187_v20 = vpop.f32.mrf.mxu1 }
 0x24f   :  { %7027 = vst [vmem:[#allocation25_spill] sm:$0xff] %v5405_v3 }
 0x268   :  { %v1383_v59 = vpop.f32.mrf.mxu0  ;;  %v1424_v60 = vpop.f32.mrf.mxu1 }
 0x269   :  { %v1384_v55 = vadd.f32 %v1383_v59, %v1141_v61  ;;  %v1425_v54 = vadd.f32 %v1424_v60, %v1182_v63  ;;  %v7028_v60 = vsub.s32 2, %v7023_v57 }
 0x26a   :  { %v1385_v4 = vpop.f32.mrf.mxu0  ;;  %v1426_v5 = vpop.f32.mrf.mxu1 }
 0x26b   :  { %v1431_v20 = vadd.f32 %v1384_v55, %v5400_v58  ;;  %v1386_v51 = vadd.f32 %v1385_v4, %v1143_v1  ;;  %v1427_v50 = vadd.f32 %v1426_v5, %v1184_v2  ;;  %v5412_v52 = vrot.slane %v5395_v32, %v7028_v60  ;;  %v7032_v2 = vld [vmem:[#allocation50_spill] sm:$0xff] }
 0x26c   :  { %v1387_v49 = vpop.f32.mrf.mxu0  ;;  %v1428_v48 = vpop.f32.mrf.mxu1 }
 0x26d   :  { %v3895_v47 = vmul.f32 -1.442695, %v1431_v20  ;;  %v1432_v56 = vadd.f32 %v1386_v51, %v5405_v3  ;;  %7029 = vst [vmem:[#allocation26_spill] sm:$0xff] %v5412_v52  ;;  %v1433_v61 = vadd.f32 %v1425_v54, %v5412_v52 }
 0x26e   :  { %v1388_v46 = vpop.f32.mrf.mxu0  ;;  %v1429_v45 = vpop.f32.mrf.mxu1 }
 0x26f   :  { %4213 = vpow2.f32 %v3895_v47  ;;  %v3896_v59 = vmul.f32 -1.442695, %v1432_v56  ;;  %v7030_v45 = vld [vmem:[#allocation54_spill] sm:$0xff]  ;;  %v7031_v47 = vld [vmem:[#allocation52_spill] sm:$0xff] }
 0x270   :  { %v411_v51 = vadd.f32 %v7031_v47, %v7030_v45  ;;  %v7033_v45 = vld [vmem:[#allocation53_spill] sm:$0xff]  ;;  %v7034_v47 = vld [vmem:[#allocation51_spill] sm:$0xff] }
 0x271   :  { %4215 = vpow2.f32 %v3896_v59 }
 0x272   :  { %4217 = vtanh.f32 %v1433_v61 }
 0x27c   :  { %v4214_v55 = vpop.eup %4213 }
 0x27d   :  { %v1438_v63 = vadd.f32 1.0, %v4214_v55 }
 0x27e   :  { %v4216_v1 = vpop.eup %4215 }
 0x27f   :  { %4219 = vrcp.f32 %v1438_v63  ;;  %v1444_v48 = vadd.f32 1.0, %v4216_v1  ;;  %v4218_v56 = vpop.eup %4217 }
 0x281   :  { %4221 = vrcp.f32 %v1444_v48 }
 0x288   :  { %v1499_v49 = vpop.f32.mrf.mxu0  ;;  %v1540_v46 = vpop.f32.mrf.mxu1 }
 0x289   :  { %v1547_v4 = vadd.f32 %v1499_v49, %v7032_v2  ;;  %v1549_v2 = vadd.f32 %v1540_v46, %v7034_v47  ;;  %v7038_v47 = vld [vmem:[#allocation81_spill] sm:$0xff] }
 0x28a   :  { %v1501_v5 = vpop.f32.mrf.mxu0  ;;  %v1542_v20 = vpop.f32.mrf.mxu1 }
 0x28b   :  { %v3898_v59 = vmul.f32 -1.442695, %v1547_v4  ;;  %v1548_v60 = vadd.f32 %v1501_v5, %v411_v51  ;;  %v1550_v49 = vadd.f32 %v1542_v20, %v7033_v45  ;;  %v7035_v20 = vsub.s32 3, %v7023_v57  ;;  %v7036_v57 = vld [vmem:[#allocation79_spill] sm:$0xff] }
 0x28c   :  { %v4220_v54 = vpop.eup %4219  ;;  %v1503_v52 = vpop.f32.mrf.mxu0 }
 0x28d   :  { %v1544_v55 = vpop.f32.mrf.mxu1  ;;  %v1455_v3 = vmul.f32 %v4220_v54, %v4218_v56  ;;  %4223 = vpow2.f32 %v3898_v59  ;;  %v3899_v61 = vmul.f32 -1.442695, %v1548_v60  ;;  %v3900_v42 = vmul.f32 -1.442695, %v1550_v49 }
 0x28e   :  { %v4222_v63 = vpop.eup %4221  ;;  %v1504_v1 = vpop.f32.mrf.mxu0  ;;  %v5426_v46 = vrot.slane %v5395_v32, %v7035_v20  ;;  %v7037_v32 = vld [vmem:[#allocation80_spill] sm:$0xff]  ;;  %v5469_v20 = vld [vmem:[#allocation12 + $0xe4] ss:$16 sps:$4 sm:$0xff]  }
 0x28f   :  { %v1545_v48 = vpop.f32.mrf.mxu1  ;;  %v1454_v58 = vmul.f32 0.0, %v4222_v63  ;;  %4225 = vpow2.f32 %v3899_v61 }
 0x290   :  { %4227 = vtanh.f32 %v1549_v2  ;;  %v7039_v2 = vld [vmem:[#allocation82_spill] sm:$0xff] }
 0x291   :  { %v5418_v43 = vadd.f32 %v1455_v3, %v1454_v58  ;;  %4229 = vpow2.f32 %v3900_v42  ;;  %v1434_v42 = vadd.f32 %v1427_v50, %v5426_v46 }
 0x293   :  { %v3897_v63 = vmul.f32 -1.442695, %v1434_v42  ;;  %v5472_v42 = vld [vmem:[#allocation12 + $0xec] ss:$16 sps:$4 sm:$0xff]  }
 0x29a   :  { %v4224_v4 = vpop.eup %4223 }
 0x29b   :  { %v1554_v51 = vadd.f32 1.0, %v4224_v4  ;;  %v7040_v4 = vld [vmem:[#allocation83_spill] sm:$0xff] }
 0x29c   :  { %v4226_v52 = vpop.eup %4225 }
 0x29d   :  { %4231 = vrcp.f32 %v1554_v51  ;;  %v1560_v5 = vadd.f32 1.0, %v4226_v52  ;;  %v4228_v56 = vpop.eup %4227  ;;  %v7041_v51 = vld [vmem:[#allocation84_spill] sm:$0xff]  ;;  %v7042_v52 = vld [vmem:[#allocation85_spill] sm:$0xff] }
 0x29e   :  { %v4230_v59 = vpop.eup %4229 }
 0x29f   :  { %4233 = vrcp.f32 %v1560_v5  ;;  %v1567_v58 = vadd.f32 1.0, %v4230_v59  ;;  %v7043_v5 = vld [vmem:[#allocation86_spill] sm:$0xff]  ;;  %v7045_v59 = vld [vmem:[#allocation88_spill] sm:$0xff] }
 0x2a1   :  { %4235 = vrcp.f32 %v1567_v58 }
 0x2aa   :  { %v4232_v60 = vpop.eup %4231 }
 0x2ab   :  { %v1571_v54 = vmul.f32 %v4232_v60, %v4228_v56  ;;  %v7044_v56 = vld [vmem:[#allocation87_spill] sm:$0xff]  ;;  %v7046_v60 = vld [vmem:[#allocation89_spill] sm:$0xff] }
 0x2ac   :  { %v4234_v55 = vpop.eup %4233 }
 0x2ad   :  { %v1570_v3 = vmul.f32 %v4234_v55, %v5219_v29 }
 0x2ae   :  { %v4236_v1 = vpop.eup %4235 }
 0x2af   :  { %v5428_v61 = vadd.f32 %v1571_v54, %v1570_v3 }
 0x2b1   :  { %4237 = vtanh.f32 %v5428_v61 }
 0x2b2   :  { %4239 = vpow2.f32 %v3897_v63  ;;  %v5475_v63 = vld [vmem:[#allocation12 + $0xe0] ss:$16 sps:$4 sm:$0xff]  }
 0x2b3   :  { %4241 = vtanh.f32 %v5418_v43 }
 0x2be   :  { %v4238_v48 = vpop.eup %4237 }
 0x2bf   :  { %v1574_v45 = vmul.f32 %v4238_v48, %v4236_v1  ;;  %v4240_v29 = vpop.eup %4239  ;;  %v5478_v1 = vld [vmem:[#allocation12 + $0xe8] ss:$16 sps:$4 sm:$0xff]   ;;  %v5481_v48 = vld [vmem:[#allocation12 + $0xc4] ss:$16 sps:$4 sm:$0xff]  }
 0x2c0   :  { %v1451_v50 = vadd.f32 1.0, %v4240_v29  ;;  %v4242_v54 = vpop.eup %4241  ;;  %v5489_v29 = vld [vmem:[#allocation12 + $0xc0] ss:$16 sps:$4 sm:$0xff]  }
 0x2c1   :  { %v5432_v49 = vpack.c.bf16 %v1574_v45, %v1574_v45  ;;  %v5484_v45 = vld [vmem:[#allocation12 + $0xcc] ss:$16 sps:$4 sm:$0xff]   ;;  %7047 = vst [vmem:[#allocation27_spill] sm:$0xff] %v5489_v29 }
 0x2c2   :  { %4243 = vrcp.f32 %v1451_v50  ;;  %v5492_v50 = vld [vmem:[#allocation12 + $0xc8] ss:$16 sps:$4 sm:$0xff]  }
 0x2c3   :  { %1609 = vmatmul.mubr.bf16.vlgmr.msra.gmra.mxu0 %v5432_v49  ;;  %1650 = vmatmul.mubr.bf16.vlgmr.msra.gmra.mxu1 %v5432_v49  ;;  %7048 = vst [vmem:[#allocation28_spill] sm:$0xff] %v5492_v50 }
 0x2c4   :  { %1659 = vmatpush1.bf16.msra.mxu0 %v5222_v19  ;;  %1700 = vmatpush1.bf16.msra.mxu1 %v5224_v62 }
 0x2c5   :  { %1660 = vmatprep.subr.bf16.mxu0 %v5228_v0  ;;  %1701 = vmatprep.subr.bf16.mxu1 %v5230_v6 }
 0x2c6   :  { %1690 = vmatprep.mubr.bf16.mxu0 %v6985_v53  ;;  %1731 = vmatprep.mubr.bf16.mxu1 %v6985_v53 }
 0x2c8   :  { %1661 = vmatpush1.bf16.msra.mxu0 %v5236_v21  ;;  %1702 = vmatpush1.bf16.msra.mxu1 %v5238_v26 }
 0x2c9   :  { %1662 = vmatprep.subr.bf16.mxu0 %v5242_v31  ;;  %1703 = vmatprep.subr.bf16.mxu1 %v5244_v25 }
 0x2cc   :  { %1663 = vmatpush1.bf16.msra.mxu0 %v5250_v24  ;;  %1704 = vmatpush1.bf16.msra.mxu1 %v5252_v16 }
 0x2cd   :  { %1664 = vmatprep.subr.bf16.mxu0 %v5256_v35  ;;  %1705 = vmatprep.subr.bf16.mxu1 %v7036_v57 }
 0x2cf   :  { %v4244_v55 = vpop.eup %4243 }
 0x2d0   :  { %1665 = vmatpush1.bf16.msra.mxu0 %v7037_v32  ;;  %1706 = vmatpush1.bf16.msra.mxu1 %v7038_v47  ;;  %v1458_v58 = vmul.f32 %v4244_v55, %v4242_v54  ;;  %v5495_v54 = vld [vmem:[#allocation12 + $0xa4] ss:$16 sps:$4 sm:$0xff]   ;;  %v5498_v55 = vld [vmem:[#allocation12 + $0xac] ss:$16 sps:$4 sm:$0xff]  }
 0x2d1   :  { %1666 = vmatprep.subr.bf16.mxu0 %v7039_v2  ;;  %1707 = vmatprep.subr.bf16.mxu1 %v7040_v4  ;;  %7049 = vst [vmem:[#allocation29_spill] sm:$0xff] %v5495_v54  ;;  %7050 = vst [vmem:[#allocation30_spill] sm:$0xff] %v5498_v55 }
 0x2d2   :  { %v1459_v3 = vpack.c.bf16 %v1458_v58, %v1458_v58  ;;  %v5501_v58 = vld [vmem:[#allocation12 + $0xa0] ss:$16 sps:$4 sm:$0xff]  }
 0x2d3   :  { %7051 = vst [vmem:[#allocation31_spill] sm:$0xff] %v5501_v58 }
 0x2d4   :  { %1667 = vmatpush1.bf16.msra.mxu0 %v7041_v51  ;;  %1708 = vmatpush1.bf16.msra.mxu1 %v7042_v52 }
 0x2d5   :  { %1668 = vmatprep.subr.bf16.mxu0 %v7043_v5  ;;  %1709 = vmatprep.subr.bf16.mxu1 %v7044_v56 }
 0x2d8   :  { %1669 = vmatpush1.bf16.msra.mxu0 %v7045_v59  ;;  %1710 = vmatpush1.bf16.msra.mxu1 %v5288_v22 }
 0x2d9   :  { %1670 = vmatprep.subr.bf16.mxu0 %v5292_v23  ;;  %1711 = vmatprep.subr.bf16.mxu1 %v7046_v60 }
 0x2dc   :  { %1671 = vmatpush1.bf16.msra.mxu0 %v5298_v27  ;;  %1712 = vmatpush1.bf16.msra.mxu1 %v5300_v44 }
 0x2dd   :  { %1672 = vmatprep.subr.bf16.mxu0 %v5304_v28  ;;  %1713 = vmatprep.subr.bf16.mxu1 %v5306_v30 }
 0x2e0   :  { %1673 = vmatpush1.bf16.msra.mxu0 %v5310_v17  ;;  %1714 = vmatpush1.bf16.msra.mxu1 %v5312_v18 }
 0x2e1   :  { %1774 = vmatprep.subr.bf16.mxu0 %v5469_v20  ;;  %1815 = vmatprep.subr.bf16.mxu1 %v5472_v42 }
 0x2e3   :  { %1691 = vmatmul.mubr.bf16.vlgmr.msra.gmra.mxu0 %v1459_v3  ;;  %1732 = vmatmul.mubr.bf16.vlgmr.msra.gmra.mxu1 %v1459_v3  ;;  %v5504_v3 = vld [vmem:[#allocation12 + $0xa8] ss:$16 sps:$4 sm:$0xff]  }
 0x2e4   :  { %1775 = vmatpush1.bf16.msra.mxu0 %v5475_v63  ;;  %1816 = vmatpush1.bf16.msra.mxu1 %v5478_v1  ;;  %7052 = vst [vmem:[#allocation49_spill] sm:$0xff] %v5504_v3 }
 0x2e5   :  { %1776 = vmatprep.subr.bf16.mxu0 %v5481_v48  ;;  %1817 = vmatprep.subr.bf16.mxu1 %v5484_v45 }
 0x2e6   :  { %1806 = vmatprep.mubr.bf16.mxu0 %v6985_v53  ;;  %1847 = vmatprep.mubr.bf16.mxu1 %v6985_v53 }
 0x2e8   :  { %1777 = vmatpush1.bf16.msra.mxu0 %v5489_v29  ;;  %1818 = vmatpush1.bf16.msra.mxu1 %v5492_v50  ;;  %v5507_v29 = vld [vmem:[#allocation12 + $0x84] ss:$16 sps:$4 sm:$0xff]   ;;  %v5510_v50 = vld [vmem:[#allocation12 + $0x8c] ss:$16 sps:$4 sm:$0xff]  }
 0x2e9   :  { %1778 = vmatprep.subr.bf16.mxu0 %v5495_v54  ;;  %1819 = vmatprep.subr.bf16.mxu1 %v5498_v55  ;;  %7053 = vst [vmem:[#allocation54_spill] sm:$0xff] %v5507_v29  ;;  %7054 = vst [vmem:[#allocation52_spill] sm:$0xff] %v5510_v50  ;;  %v5513_v54 = vld [vmem:[#allocation12 + $0x80] ss:$16 sps:$4 sm:$0xff]   ;;  %v5516_v55 = vld [vmem:[#allocation12 + $0x88] ss:$16 sps:$4 sm:$0xff]  }
 0x2ea   :  { %7055 = vst [vmem:[#allocation50_spill] sm:$0xff] %v5513_v54  ;;  %7056 = vst [vmem:[#allocation53_spill] sm:$0xff] %v5516_v55 }
 0x2ec   :  { %1779 = vmatpush1.bf16.msra.mxu0 %v5501_v58  ;;  %1820 = vmatpush1.bf16.msra.mxu1 %v5504_v3  ;;  %v5519_v58 = vld [vmem:[#allocation12 + $0x64] ss:$16 sps:$4 sm:$0xff]   ;;  %v5522_v3 = vld [vmem:[#allocation12 + $0x6c] ss:$16 sps:$4 sm:$0xff]  }
 0x2ed   :  { %1780 = vmatprep.subr.bf16.mxu0 %v5507_v29  ;;  %1821 = vmatprep.subr.bf16.mxu1 %v5510_v50  ;;  %7057 = vst [vmem:[#allocation51_spill] sm:$0xff] %v5519_v58  ;;  %7058 = vst [vmem:[#allocation79_spill] sm:$0xff] %v5522_v3  ;;  %v5525_v29 = vld [vmem:[#allocation12 + $0x60] ss:$16 sps:$4 sm:$0xff]   ;;  %v5528_v50 = vld [vmem:[#allocation12 + $0x68] ss:$16 sps:$4 sm:$0xff]  }
 0x2ee   :  { %7059 = vst [vmem:[#allocation80_spill] sm:$0xff] %v5525_v29  ;;  %7060 = vst [vmem:[#allocation81_spill] sm:$0xff] %v5528_v50 }
 0x2f0   :  { %1781 = vmatpush1.bf16.msra.mxu0 %v5513_v54  ;;  %1822 = vmatpush1.bf16.msra.mxu1 %v5516_v55  ;;  %v5531_v54 = vld [vmem:[#allocation12 + $0x44] ss:$16 sps:$4 sm:$0xff]   ;;  %v5534_v55 = vld [vmem:[#allocation12 + $0x4c] ss:$16 sps:$4 sm:$0xff]  }
 0x2f1   :  { %1782 = vmatprep.subr.bf16.mxu0 %v5519_v58  ;;  %1823 = vmatprep.subr.bf16.mxu1 %v5522_v3  ;;  %7061 = vst [vmem:[#allocation82_spill] sm:$0xff] %v5531_v54  ;;  %7062 = vst [vmem:[#allocation83_spill] sm:$0xff] %v5534_v55  ;;  %v5537_v58 = vld [vmem:[#allocation12 + $0x40] ss:$16 sps:$4 sm:$0xff]   ;;  %v5540_v3 = vld [vmem:[#allocation12 + $0x48] ss:$16 sps:$4 sm:$0xff]  }
 0x2f2   :  { %7063 = vst [vmem:[#allocation84_spill] sm:$0xff] %v5537_v58  ;;  %7064 = vst [vmem:[#allocation85_spill] sm:$0xff] %v5540_v3 }
 0x2f4   :  { %1783 = vmatpush1.bf16.msra.mxu0 %v5525_v29  ;;  %1824 = vmatpush1.bf16.msra.mxu1 %v5528_v50  ;;  %v5543_v29 = vld [vmem:[#allocation12 + $0x24] ss:$16 sps:$4 sm:$0xff]   ;;  %v5546_v50 = vld [vmem:[#allocation12 + $0x2c] ss:$16 sps:$4 sm:$0xff]  }
 0x2f5   :  { %1784 = vmatprep.subr.bf16.mxu0 %v5531_v54  ;;  %1825 = vmatprep.subr.bf16.mxu1 %v5534_v55  ;;  %7065 = vst [vmem:[#allocation86_spill] sm:$0xff] %v5543_v29  ;;  %7066 = vst [vmem:[#allocation87_spill] sm:$0xff] %v5546_v50  ;;  %v5549_v54 = vld [vmem:[#allocation12 + $0x20] ss:$16 sps:$4 sm:$0xff]   ;;  %v5552_v55 = vld [vmem:[#allocation12 + $0x28] ss:$16 sps:$4 sm:$0xff]  }
 0x2f6   :  { %7067 = vst [vmem:[#allocation88_spill] sm:$0xff] %v5549_v54  ;;  %7068 = vst [vmem:[#allocation89_spill] sm:$0xff] %v5552_v55 }
 0x2f8   :  { %1785 = vmatpush1.bf16.msra.mxu0 %v5537_v58  ;;  %1826 = vmatpush1.bf16.msra.mxu1 %v5540_v3  ;;  %v5555_v58 = vld [vmem:[#allocation12 + $0x4] ss:$16 sps:$4 sm:$0xff]   ;;  %v5558_v3 = vld [vmem:[#allocation12 + $0xc] ss:$16 sps:$4 sm:$0xff]  }
 0x2f9   :  { %1786 = vmatprep.subr.bf16.mxu0 %v5543_v29  ;;  %1827 = vmatprep.subr.bf16.mxu1 %v5546_v50  ;;  %7069 = vst [vmem:[#allocation90_spill] sm:$0xff] %v5555_v58  ;;  %7070 = vst [vmem:[#allocation91_spill] sm:$0xff] %v5558_v3  ;;  %v5561_v29 = vld [vmem:[#allocation12] ss:$16 sps:$4 sm:$0xff]   ;;  %v5564_v50 = vld [vmem:[#allocation12 + $0x8] ss:$16 sps:$4 sm:$0xff]  }
 0x2fa   :  { %7071 = vst [vmem:[#allocation92_spill] sm:$0xff] %v5561_v29  ;;  %7072 = vst [vmem:[#allocation93_spill] sm:$0xff] %v5564_v50 }
 0x2fc   :  { %1787 = vmatpush1.bf16.msra.mxu0 %v5549_v54  ;;  %1828 = vmatpush1.bf16.msra.mxu1 %v5552_v55 }
 0x2fd   :  { %1788 = vmatprep.subr.bf16.mxu0 %v5555_v58  ;;  %1829 = vmatprep.subr.bf16.mxu1 %v5558_v3  ;;  %v7091_v58 = vld [vmem:[#allocation25_spill] sm:$0xff] }
 0x300   :  { %1789 = vmatpush1.bf16.msra.mxu0 %v5561_v29  ;;  %1830 = vmatpush1.bf16.msra.mxu1 %v5564_v50 }
 0x301   :  { %1885 = vmatprep.subr.bf16.mxu0 %v5006_v7  ;;  %1926 = vmatprep.subr.bf16.mxu1 %v5008_v8  ;;  %v7073_v7 = vld [vmem:[#allocation32_spill] sm:$0xff]  ;;  %v7074_v8 = vld [vmem:[#allocation33_spill] sm:$0xff] }
 0x303   :  { %1807 = vmatmul.mubr.bf16.vlgmr.msra.gmra.mxu0 %v5432_v49  ;;  %1848 = vmatmul.mubr.bf16.vlgmr.msra.gmra.mxu1 %v5432_v49 }
 0x304   :  { %1886 = vmatpush1.bf16.msra.mxu0 %v5010_v9  ;;  %1927 = vmatpush1.bf16.msra.mxu1 %v5012_v10  ;;  %v7075_v9 = vld [vmem:[#allocation34_spill] sm:$0xff]  ;;  %v7076_v10 = vld [vmem:[#allocation35_spill] sm:$0xff] }
 0x305   :  { %1887 = vmatprep.subr.bf16.mxu0 %v5018_v11  ;;  %1928 = vmatprep.subr.bf16.mxu1 %v5020_v12  ;;  %v7077_v11 = vld [vmem:[#allocation36_spill] sm:$0xff]  ;;  %v7078_v12 = vld [vmem:[#allocation37_spill] sm:$0xff] }
 0x306   :  { %1917 = vmatprep.mubr.bf16.mxu0 %v6985_v53  ;;  %1958 = vmatprep.mubr.bf16.mxu1 %v6985_v53 }
 0x308   :  { %1888 = vmatpush1.bf16.msra.mxu0 %v5022_v13  ;;  %1929 = vmatpush1.bf16.msra.mxu1 %v5024_v14  ;;  %v7079_v13 = vld [vmem:[#allocation38_spill] sm:$0xff]  ;;  %v7080_v14 = vld [vmem:[#allocation39_spill] sm:$0xff] }
 0x309   :  { %1889 = vmatprep.subr.bf16.mxu0 %v5030_v15  ;;  %1930 = vmatprep.subr.bf16.mxu1 %v6998_v33  ;;  %v7081_v15 = vld [vmem:[#allocation40_spill] sm:$0xff]  ;;  %v7082_v33 = vld [vmem:[#allocation41_spill] sm:$0xff] }
 0x30c   :  { %1890 = vmatpush1.bf16.msra.mxu0 %v6999_v34  ;;  %1931 = vmatpush1.bf16.msra.mxu1 %v7000_v36  ;;  %v7083_v34 = vld [vmem:[#allocation42_spill] sm:$0xff]  ;;  %v7084_v36 = vld [vmem:[#allocation43_spill] sm:$0xff] }
 0x30d   :  { %1891 = vmatprep.subr.bf16.mxu0 %v7001_v37  ;;  %1932 = vmatprep.subr.bf16.mxu1 %v7002_v38  ;;  %v7085_v37 = vld [vmem:[#allocation44_spill] sm:$0xff]  ;;  %v7086_v38 = vld [vmem:[#allocation45_spill] sm:$0xff] }
 0x310   :  { %1892 = vmatpush1.bf16.msra.mxu0 %v7003_v39  ;;  %1933 = vmatpush1.bf16.msra.mxu1 %v7004_v40  ;;  %v7087_v39 = vld [vmem:[#allocation46_spill] sm:$0xff]  ;;  %v7088_v40 = vld [vmem:[#allocation47_spill] sm:$0xff] }
 0x311   :  { %1893 = vmatprep.subr.bf16.mxu0 %v7005_v41  ;;  %1934 = vmatprep.subr.bf16.mxu1 %v7073_v7  ;;  %v7089_v41 = vld [vmem:[#allocation48_spill] sm:$0xff] }
 0x314   :  { %1894 = vmatpush1.bf16.msra.mxu0 %v7074_v8  ;;  %1935 = vmatpush1.bf16.msra.mxu1 %v7075_v9 }
 0x315   :  { %1895 = vmatprep.subr.bf16.mxu0 %v7076_v10  ;;  %1936 = vmatprep.subr.bf16.mxu1 %v7077_v11 }
 0x318   :  { %1896 = vmatpush1.bf16.msra.mxu0 %v7078_v12  ;;  %1937 = vmatpush1.bf16.msra.mxu1 %v7079_v13 }
 0x319   :  { %1897 = vmatprep.subr.bf16.mxu0 %v7080_v14  ;;  %1938 = vmatprep.subr.bf16.mxu1 %v7081_v15 }
 0x31c   :  { %1898 = vmatpush1.bf16.msra.mxu0 %v7082_v33  ;;  %1939 = vmatpush1.bf16.msra.mxu1 %v7083_v34 }
 0x31d   :  { %1899 = vmatprep.subr.bf16.mxu0 %v7084_v36  ;;  %1940 = vmatprep.subr.bf16.mxu1 %v7085_v37 }
 0x320   :  { %1900 = vmatpush1.bf16.msra.mxu0 %v7086_v38  ;;  %1941 = vmatpush1.bf16.msra.mxu1 %v7087_v39  ;;  %v7090_v38 = vld [vmem:[#allocation24_spill] sm:$0xff] }
 0x321   :  { %1967 = vmatprep.subr.bf16.mxu0 %v7088_v40  ;;  %2008 = vmatprep.subr.bf16.mxu1 %v7089_v41 }
 0x383   :  { %v1610_v49 = vpop.f32.mrf.mxu0  ;;  %v1651_v7 = vpop.f32.mrf.mxu1 }
 0x385   :  { %v1612_v8 = vpop.f32.mrf.mxu0  ;;  %v1653_v9 = vpop.f32.mrf.mxu1 }
 0x387   :  { %v1614_v10 = vpop.f32.mrf.mxu0  ;;  %v1655_v11 = vpop.f32.mrf.mxu1 }
 0x389   :  { %v1615_v12 = vpop.f32.mrf.mxu0  ;;  %v1656_v13 = vpop.f32.mrf.mxu1 }
 0x38a   :  { %v7092_v12 = vld [vmem:[#allocation26_spill] sm:$0xff] }
 0x3a3   :  { %v1692_v14 = vpop.f32.mrf.mxu0  ;;  %v1733_v15 = vpop.f32.mrf.mxu1 }
 0x3a4   :  { %v1693_v33 = vadd.f32 %v1692_v14, %v1610_v49  ;;  %v1734_v34 = vadd.f32 %v1733_v15, %v1651_v7 }
 0x3a5   :  { %v1694_v36 = vpop.f32.mrf.mxu0  ;;  %v1735_v37 = vpop.f32.mrf.mxu1 }
 0x3a6   :  { %v1740_v39 = vadd.f32 %v1693_v33, %v7090_v38  ;;  %v1695_v50 = vadd.f32 %v1694_v36, %v1612_v8  ;;  %v1736_v40 = vadd.f32 %v1735_v37, %v1653_v9  ;;  %v1742_v13 = vadd.f32 %v1734_v34, %v7092_v12  ;;  %v7093_v9 = vld [vmem:[#allocation55_spill] sm:$0xff]  ;;  %v7096_v12 = vld [vmem:[#allocation56_spill] sm:$0xff] }
 0x3a7   :  { %v1696_v29 = vpop.f32.mrf.mxu0  ;;  %v1737_v41 = vpop.f32.mrf.mxu1 }
 0x3a8   :  { %v3901_v3 = vmul.f32 -1.442695, %v1740_v39  ;;  %v1741_v55 = vadd.f32 %v1695_v50, %v7091_v58 }
 0x3a9   :  { %v1697_v54 = vpop.f32.mrf.mxu0  ;;  %v1738_v10 = vpop.f32.mrf.mxu1 }
 0x3aa   :  { %4245 = vpow2.f32 %v3901_v3  ;;  %v3902_v11 = vmul.f32 -1.442695, %v1741_v55  ;;  %v7094_v3 = vld [vmem:[#allocation57_spill] sm:$0xff] }
 0x3ac   :  { %4247 = vpow2.f32 %v3902_v11 }
 0x3ad   :  { %4249 = vtanh.f32 %v1742_v13 }
 0x3b7   :  { %v4246_v49 = vpop.eup %4245 }
 0x3b8   :  { %v1747_v7 = vadd.f32 1.0, %v4246_v49 }
 0x3b9   :  { %v4248_v14 = vpop.eup %4247 }
 0x3ba   :  { %4251 = vrcp.f32 %v1747_v7  ;;  %v1753_v15 = vadd.f32 1.0, %v4248_v14  ;;  %v4250_v54 = vpop.eup %4249 }
 0x3bc   :  { %4253 = vrcp.f32 %v1753_v15 }
 0x3c3   :  { %v1808_v8 = vpop.f32.mrf.mxu0  ;;  %v1849_v29 = vpop.f32.mrf.mxu1 }
 0x3c4   :  { %v1856_v33 = vadd.f32 %v1808_v8, %v7093_v9  ;;  %v7095_v8 = vld [vmem:[#allocation58_spill] sm:$0xff] }
 0x3c5   :  { %v1810_v36 = vpop.f32.mrf.mxu0  ;;  %v1851_v50 = vpop.f32.mrf.mxu1 }
 0x3c6   :  { %v3904_v37 = vmul.f32 -1.442695, %v1856_v33  ;;  %v1857_v55 = vadd.f32 %v1810_v36, %v7094_v3  ;;  %v1859_v9 = vadd.f32 %v1851_v50, %v7095_v8  ;;  %v1858_v33 = vadd.f32 %v1849_v29, %v7096_v12  ;;  %v5694_v8 = vld [vmem:[#allocation13 + $0xec] ss:$16 sps:$4 sm:$0xff]  }
 0x3c7   :  { %v4252_v39 = vpop.eup %4251  ;;  %v1812_v41 = vpop.f32.mrf.mxu0  ;;  %v1743_v12 = vadd.f32 %v1736_v40, %v5426_v46  ;;  %v7122_v40 = vld [vmem:[#allocation93_spill] sm:$0xff] }
 0x3c8   :  { %v1853_v34 = vpop.f32.mrf.mxu1  ;;  %v1764_v10 = vmul.f32 %v4252_v39, %v4250_v54  ;;  %4255 = vpow2.f32 %v3904_v37  ;;  %v3905_v11 = vmul.f32 -1.442695, %v1857_v55  ;;  %v3906_v58 = vmul.f32 -1.442695, %v1859_v9  ;;  %v5699_v9 = vld [vmem:[#allocation13 + $0xe0] ss:$16 sps:$4 sm:$0xff]  }
 0x3c9   :  { %v4254_v13 = vpop.eup %4253  ;;  %v1813_v49 = vpop.f32.mrf.mxu0  ;;  %v3903_v29 = vmul.f32 -1.442695, %v1743_v12  ;;  %v5740_v12 = vld [vmem:[#allocation13 + $0x88] ss:$16 sps:$4 sm:$0xff]  }
 0x3ca   :  { %v1854_v7 = vpop.f32.mrf.mxu1  ;;  %v1763_v14 = vmul.f32 %v4254_v13, %v5418_v43  ;;  %4257 = vpow2.f32 %v3905_v11  ;;  %7134 = vst [vmem:[#allocation43_spill] sm:$0xff] %v5740_v12 }
 0x3cb   :  { %4259 = vtanh.f32 %v1858_v33  ;;  %v5702_v33 = vld [vmem:[#allocation13 + $0xe8] ss:$16 sps:$4 sm:$0xff]  }
 0x3cc   :  { %v5611_v15 = vadd.f32 %v1764_v10, %v1763_v14  ;;  %4261 = vpow2.f32 %v3906_v58  ;;  %v5691_v14 = vld [vmem:[#allocation13 + $0xe4] ss:$16 sps:$4 sm:$0xff]  }
 0x3d5   :  { %v4256_v36 = vpop.eup %4255 }
 0x3d6   :  { %v1863_v3 = vadd.f32 1.0, %v4256_v36  ;;  %v5705_v36 = vld [vmem:[#allocation13 + $0xc4] ss:$16 sps:$4 sm:$0xff]  }
 0x3d7   :  { %v4258_v41 = vpop.eup %4257  ;;  %7123 = vst [vmem:[#allocation32_spill] sm:$0xff] %v5705_v36 }
 0x3d8   :  { %4263 = vrcp.f32 %v1863_v3  ;;  %v1869_v54 = vadd.f32 1.0, %v4258_v41  ;;  %v4260_v37 = vpop.eup %4259  ;;  %v5708_v3 = vld [vmem:[#allocation13 + $0xcc] ss:$16 sps:$4 sm:$0xff]   ;;  %v5713_v41 = vld [vmem:[#allocation13 + $0xc0] ss:$16 sps:$4 sm:$0xff]  }
 0x3d9   :  { %v4262_v55 = vpop.eup %4261  ;;  %7124 = vst [vmem:[#allocation33_spill] sm:$0xff] %v5708_v3  ;;  %7125 = vst [vmem:[#allocation34_spill] sm:$0xff] %v5713_v41 }
 0x3da   :  { %4265 = vrcp.f32 %v1869_v54  ;;  %v1876_v10 = vadd.f32 1.0, %v4262_v55  ;;  %v5716_v54 = vld [vmem:[#allocation13 + $0xc8] ss:$16 sps:$4 sm:$0xff]   ;;  %v5722_v55 = vld [vmem:[#allocation13 + $0xac] ss:$16 sps:$4 sm:$0xff]  }
 0x3db   :  { %7126 = vst [vmem:[#allocation35_spill] sm:$0xff] %v5716_v54  ;;  %7128 = vst [vmem:[#allocation37_spill] sm:$0xff] %v5722_v55 }
 0x3dc   :  { %4267 = vrcp.f32 %v1876_v10  ;;  %v5734_v10 = vld [vmem:[#allocation13 + $0x8c] ss:$16 sps:$4 sm:$0xff]  }
 0x3dd   :  { %7132 = vst [vmem:[#allocation41_spill] sm:$0xff] %v5734_v10 }
 0x3e5   :  { %v4264_v39 = vpop.eup %4263 }
 0x3e6   :  { %v1880_v43 = vmul.f32 %v4264_v39, %v4260_v37  ;;  %v5719_v37 = vld [vmem:[#allocation13 + $0xa4] ss:$16 sps:$4 sm:$0xff]   ;;  %v5725_v39 = vld [vmem:[#allocation13 + $0xa0] ss:$16 sps:$4 sm:$0xff]  }
 0x3e7   :  { %v4266_v34 = vpop.eup %4265  ;;  %7127 = vst [vmem:[#allocation36_spill] sm:$0xff] %v5719_v37  ;;  %7129 = vst [vmem:[#allocation38_spill] sm:$0xff] %v5725_v39 }
 0x3e8   :  { %v1879_v11 = vmul.f32 %v4266_v34, %v5428_v61  ;;  %v5731_v34 = vld [vmem:[#allocation13 + $0x84] ss:$16 sps:$4 sm:$0xff]  }
 0x3e9   :  { %v4268_v58 = vpop.eup %4267  ;;  %7131 = vst [vmem:[#allocation40_spill] sm:$0xff] %v5731_v34 }
 0x3ea   :  { %v5616_v50 = vadd.f32 %v1880_v43, %v1879_v11  ;;  %v5728_v43 = vld [vmem:[#allocation13 + $0xa8] ss:$16 sps:$4 sm:$0xff]   ;;  %v5737_v11 = vld [vmem:[#allocation13 + $0x80] ss:$16 sps:$4 sm:$0xff]  }
 0x3eb   :  { %7130 = vst [vmem:[#allocation39_spill] sm:$0xff] %v5728_v43  ;;  %7133 = vst [vmem:[#allocation42_spill] sm:$0xff] %v5737_v11 }
 0x3ec   :  { %4269 = vtanh.f32 %v5616_v50 }
 0x3ed   :  { %4271 = vpow2.f32 %v3903_v29  ;;  %v5743_v29 = vld [vmem:[#allocation13 + $0x64] ss:$16 sps:$4 sm:$0xff]  }
 0x3ee   :  { %4273 = vtanh.f32 %v5611_v15  ;;  %7135 = vst [vmem:[#allocation44_spill] sm:$0xff] %v5743_v29 }
 0x3f9   :  { %v4270_v13 = vpop.eup %4269 }
 0x3fa   :  { %v1883_v49 = vmul.f32 %v4270_v13, %v4268_v58  ;;  %v4272_v61 = vpop.eup %4271  ;;  %v5746_v58 = vld [vmem:[#allocation13 + $0x6c] ss:$16 sps:$4 sm:$0xff]   ;;  %v5749_v13 = vld [vmem:[#allocation13 + $0x60] ss:$16 sps:$4 sm:$0xff]  }
 0x3fb   :  { %7136 = vst [vmem:[#allocation45_spill] sm:$0xff] %v5746_v58  ;;  %7137 = vst [vmem:[#allocation46_spill] sm:$0xff] %v5749_v13 }
 0x3fc   :  { %v5620_v7 = vpack.c.bf16 %v1883_v49, %v1883_v49  ;;  %v5752_v49 = vld [vmem:[#allocation13 + $0x68] ss:$16 sps:$4 sm:$0xff]  }
 0x3fd   :  { %7138 = vst [vmem:[#allocation47_spill] sm:$0xff] %v5752_v49 }
 0x3fe   :  { %1918 = vmatmul.mubr.bf16.vlgmr.msra.gmra.mxu0 %v5620_v7  ;;  %1959 = vmatmul.mubr.bf16.vlgmr.msra.gmra.mxu1 %v5620_v7 }
 0x3ff   :  { %1968 = vmatpush1.bf16.msra.mxu0 %v5222_v19  ;;  %2009 = vmatpush1.bf16.msra.mxu1 %v5224_v62  ;;  %v1760_v19 = vadd.f32 1.0, %v4272_v61  ;;  %v4274_v62 = vpop.eup %4273  ;;  %v5758_v61 = vld [vmem:[#allocation13 + $0x4c] ss:$16 sps:$4 sm:$0xff]  }
 0x400   :  { %1969 = vmatprep.subr.bf16.mxu0 %v5228_v0  ;;  %2010 = vmatprep.subr.bf16.mxu1 %v5230_v6  ;;  %7140 = vst [vmem:[#allocation24_spill] sm:$0xff] %v5758_v61 }
 0x401   :  { %1999 = vmatprep.mubr.bf16.mxu0 %v6985_v53  ;;  %2040 = vmatprep.mubr.bf16.mxu1 %v6985_v53  ;;  %4275 = vrcp.f32 %v1760_v19  ;;  %v5761_v19 = vld [vmem:[#allocation13 + $0x40] ss:$16 sps:$4 sm:$0xff]  }
 0x402   :  { %7141 = vst [vmem:[#allocation55_spill] sm:$0xff] %v5761_v19 }
 0x403   :  { %1970 = vmatpush1.bf16.msra.mxu0 %v5236_v21  ;;  %2011 = vmatpush1.bf16.msra.mxu1 %v5238_v26  ;;  %v7097_v26 = vld [vmem:[#allocation27_spill] sm:$0xff] }
 0x404   :  { %1971 = vmatprep.subr.bf16.mxu0 %v5242_v31  ;;  %2012 = vmatprep.subr.bf16.mxu1 %v5244_v25  ;;  %v7098_v31 = vld [vmem:[#allocation28_spill] sm:$0xff]  ;;  %v7099_v25 = vld [vmem:[#allocation29_spill] sm:$0xff] }
 0x407   :  { %1972 = vmatpush1.bf16.msra.mxu0 %v5250_v24  ;;  %2013 = vmatpush1.bf16.msra.mxu1 %v5252_v16  ;;  %v7100_v24 = vld [vmem:[#allocation30_spill] sm:$0xff]  ;;  %v7101_v16 = vld [vmem:[#allocation31_spill] sm:$0xff] }
 0x408   :  { %1973 = vmatprep.subr.bf16.mxu0 %v5256_v35  ;;  %2014 = vmatprep.subr.bf16.mxu1 %v7036_v57  ;;  %v7102_v35 = vld [vmem:[#allocation49_spill] sm:$0xff]  ;;  %v7111_v57 = vld [vmem:[#allocation82_spill] sm:$0xff] }
 0x40b   :  { %1974 = vmatpush1.bf16.msra.mxu0 %v7037_v32  ;;  %2015 = vmatpush1.bf16.msra.mxu1 %v7038_v47  ;;  %v7112_v32 = vld [vmem:[#allocation83_spill] sm:$0xff]  ;;  %v7113_v47 = vld [vmem:[#allocation84_spill] sm:$0xff] }
 0x40c   :  { %1975 = vmatprep.subr.bf16.mxu0 %v7039_v2  ;;  %2016 = vmatprep.subr.bf16.mxu1 %v7040_v4  ;;  %v7114_v2 = vld [vmem:[#allocation85_spill] sm:$0xff]  ;;  %v7115_v4 = vld [vmem:[#allocation86_spill] sm:$0xff] }
 0x40e   :  { %v4276_v0 = vpop.eup %4275 }
 0x40f   :  { %1976 = vmatpush1.bf16.msra.mxu0 %v7041_v51  ;;  %2017 = vmatpush1.bf16.msra.mxu1 %v7042_v52  ;;  %v1767_v6 = vmul.f32 %v4276_v0, %v4274_v62  ;;  %v7116_v51 = vld [vmem:[#allocation87_spill] sm:$0xff]  ;;  %v7117_v52 = vld [vmem:[#allocation88_spill] sm:$0xff] }
 0x410   :  { %1977 = vmatprep.subr.bf16.mxu0 %v7043_v5  ;;  %2018 = vmatprep.subr.bf16.mxu1 %v7044_v56  ;;  %v7118_v5 = vld [vmem:[#allocation89_spill] sm:$0xff]  ;;  %v7119_v56 = vld [vmem:[#allocation90_spill] sm:$0xff] }
 0x411   :  { %v1768_v21 = vpack.c.bf16 %v1767_v6, %v1767_v6  ;;  %v5764_v62 = vld [vmem:[#allocation13 + $0x48] ss:$16 sps:$4 sm:$0xff]   ;;  %v5767_v0 = vld [vmem:[#allocation13 + $0x24] ss:$16 sps:$4 sm:$0xff]   ;;  %v5770_v6 = vld [vmem:[#allocation13 + $0x2c] ss:$16 sps:$4 sm:$0xff]  }
 0x412   :  { %7142 = vst [vmem:[#allocation57_spill] sm:$0xff] %v5764_v62  ;;  %7143 = vst [vmem:[#allocation58_spill] sm:$0xff] %v5767_v0 }
 0x413   :  { %1978 = vmatpush1.bf16.msra.mxu0 %v7045_v59  ;;  %2019 = vmatpush1.bf16.msra.mxu1 %v5288_v22  ;;  %v7104_v22 = vld [vmem:[#allocation52_spill] sm:$0xff]  ;;  %v7120_v59 = vld [vmem:[#allocation91_spill] sm:$0xff]  ;;  %7144 = vst [vmem:[#allocation56_spill] sm:$0xff] %v5770_v6 }
 0x414   :  { %1979 = vmatprep.subr.bf16.mxu0 %v5292_v23  ;;  %2020 = vmatprep.subr.bf16.mxu1 %v7046_v60  ;;  %v7105_v23 = vld [vmem:[#allocation50_spill] sm:$0xff]  ;;  %v7121_v60 = vld [vmem:[#allocation92_spill] sm:$0xff] }
 0x417   :  { %1980 = vmatpush1.bf16.msra.mxu0 %v5298_v27  ;;  %2021 = vmatpush1.bf16.msra.mxu1 %v5300_v44  ;;  %v7106_v27 = vld [vmem:[#allocation53_spill] sm:$0xff]  ;;  %v7107_v44 = vld [vmem:[#allocation51_spill] sm:$0xff] }
 0x418   :  { %1981 = vmatprep.subr.bf16.mxu0 %v5304_v28  ;;  %2022 = vmatprep.subr.bf16.mxu1 %v5306_v30  ;;  %v7108_v28 = vld [vmem:[#allocation79_spill] sm:$0xff]  ;;  %v7109_v30 = vld [vmem:[#allocation80_spill] sm:$0xff] }
 0x41b   :  { %1982 = vmatpush1.bf16.msra.mxu0 %v5310_v17  ;;  %2023 = vmatpush1.bf16.msra.mxu1 %v5312_v18  ;;  %v7103_v18 = vld [vmem:[#allocation54_spill] sm:$0xff]  ;;  %v7110_v17 = vld [vmem:[#allocation81_spill] sm:$0xff] }
 0x41c   :  { %2083 = vmatprep.subr.bf16.mxu0 %v5469_v20  ;;  %2124 = vmatprep.subr.bf16.mxu1 %v5472_v42 }
 0x41e   :  { %2000 = vmatmul.mubr.bf16.vlgmr.msra.gmra.mxu0 %v1768_v21  ;;  %2041 = vmatmul.mubr.bf16.vlgmr.msra.gmra.mxu1 %v1768_v21  ;;  %v5773_v21 = vld [vmem:[#allocation13 + $0x20] ss:$16 sps:$4 sm:$0xff]  }
 0x41f   :  { %2084 = vmatpush1.bf16.msra.mxu0 %v5475_v63  ;;  %2125 = vmatpush1.bf16.msra.mxu1 %v5478_v1  ;;  %7145 = vst [vmem:[#allocation27_spill] sm:$0xff] %v5773_v21 }
 0x420   :  { %2085 = vmatprep.subr.bf16.mxu0 %v5481_v48  ;;  %2126 = vmatprep.subr.bf16.mxu1 %v5484_v45 }
 0x421   :  { %2115 = vmatprep.mubr.bf16.mxu0 %v6985_v53  ;;  %2156 = vmatprep.mubr.bf16.mxu1 %v6985_v53 }
 0x423   :  { %2086 = vmatpush1.bf16.msra.mxu0 %v7097_v26  ;;  %2127 = vmatpush1.bf16.msra.mxu1 %v7098_v31 }
 0x424   :  { %2087 = vmatprep.subr.bf16.mxu0 %v7099_v25  ;;  %2128 = vmatprep.subr.bf16.mxu1 %v7100_v24 }
 0x427   :  { %2088 = vmatpush1.bf16.msra.mxu0 %v7101_v16  ;;  %2129 = vmatpush1.bf16.msra.mxu1 %v7102_v35 }
 0x428   :  { %2089 = vmatprep.subr.bf16.mxu0 %v7103_v18  ;;  %2130 = vmatprep.subr.bf16.mxu1 %v7104_v22 }
 0x42b   :  { %2090 = vmatpush1.bf16.msra.mxu0 %v7105_v23  ;;  %2131 = vmatpush1.bf16.msra.mxu1 %v7106_v27 }
 0x42c   :  { %2091 = vmatprep.subr.bf16.mxu0 %v7107_v44  ;;  %2132 = vmatprep.subr.bf16.mxu1 %v7108_v28 }
 0x42f   :  { %2092 = vmatpush1.bf16.msra.mxu0 %v7109_v30  ;;  %2133 = vmatpush1.bf16.msra.mxu1 %v7110_v17 }
 0x430   :  { %2093 = vmatprep.subr.bf16.mxu0 %v7111_v57  ;;  %2134 = vmatprep.subr.bf16.mxu1 %v7112_v32 }
 0x433   :  { %2094 = vmatpush1.bf16.msra.mxu0 %v7113_v47  ;;  %2135 = vmatpush1.bf16.msra.mxu1 %v7114_v2 }
 0x434   :  { %2095 = vmatprep.subr.bf16.mxu0 %v7115_v4  ;;  %2136 = vmatprep.subr.bf16.mxu1 %v7116_v51 }
 0x437   :  { %2096 = vmatpush1.bf16.msra.mxu0 %v7117_v52  ;;  %2137 = vmatpush1.bf16.msra.mxu1 %v7118_v5 }
 0x438   :  { %2097 = vmatprep.subr.bf16.mxu0 %v7119_v56  ;;  %2138 = vmatprep.subr.bf16.mxu1 %v7120_v59 }
 0x43b   :  { %2098 = vmatpush1.bf16.msra.mxu0 %v7121_v60  ;;  %2139 = vmatpush1.bf16.msra.mxu1 %v7122_v40 }
 0x43c   :  { %2194 = vmatprep.subr.bf16.mxu0 %v5691_v14  ;;  %2235 = vmatprep.subr.bf16.mxu1 %v5694_v8 }
 0x43e   :  { %2116 = vmatmul.mubr.bf16.vlgmr.msra.gmra.mxu0 %v5620_v7  ;;  %2157 = vmatmul.mubr.bf16.vlgmr.msra.gmra.mxu1 %v5620_v7  ;;  %v5755_v7 = vld [vmem:[#allocation13 + $0x44] ss:$16 sps:$4 sm:$0xff]  }
 0x43f   :  { %2195 = vmatpush1.bf16.msra.mxu0 %v5699_v9  ;;  %2236 = vmatpush1.bf16.msra.mxu1 %v5702_v33  ;;  %7139 = vst [vmem:[#allocation48_spill] sm:$0xff] %v5755_v7 }
 0x440   :  { %2196 = vmatprep.subr.bf16.mxu0 %v5705_v36  ;;  %2237 = vmatprep.subr.bf16.mxu1 %v5708_v3 }
 0x441   :  { %2226 = vmatprep.mubr.bf16.mxu0 %v6985_v53  ;;  %2267 = vmatprep.mubr.bf16.mxu1 %v6985_v53 }
 0x443   :  { %2197 = vmatpush1.bf16.msra.mxu0 %v5713_v41  ;;  %2238 = vmatpush1.bf16.msra.mxu1 %v5716_v54  ;;  %v7153_v41 = vld [vmem:[#allocation25_spill] sm:$0xff] }
 0x444   :  { %2198 = vmatprep.subr.bf16.mxu0 %v5719_v37  ;;  %2239 = vmatprep.subr.bf16.mxu1 %v5722_v55 }
 0x447   :  { %2199 = vmatpush1.bf16.msra.mxu0 %v5725_v39  ;;  %2240 = vmatpush1.bf16.msra.mxu1 %v5728_v43 }
 0x448   :  { %2200 = vmatprep.subr.bf16.mxu0 %v5731_v34  ;;  %2241 = vmatprep.subr.bf16.mxu1 %v5734_v10 }
 0x44b   :  { %2201 = vmatpush1.bf16.msra.mxu0 %v5737_v11  ;;  %2242 = vmatpush1.bf16.msra.mxu1 %v5740_v12 }
 0x44c   :  { %2202 = vmatprep.subr.bf16.mxu0 %v5743_v29  ;;  %2243 = vmatprep.subr.bf16.mxu1 %v5746_v58 }
 0x44f   :  { %2203 = vmatpush1.bf16.msra.mxu0 %v5749_v13  ;;  %2244 = vmatpush1.bf16.msra.mxu1 %v5752_v49 }
 0x450   :  { %2204 = vmatprep.subr.bf16.mxu0 %v5755_v7  ;;  %2245 = vmatprep.subr.bf16.mxu1 %v5758_v61  ;;  %v5776_v61 = vld [vmem:[#allocation13 + $0x28] ss:$16 sps:$4 sm:$0xff]  }
 0x451   :  { %7146 = vst [vmem:[#allocation28_spill] sm:$0xff] %v5776_v61 }
 0x453   :  { %2205 = vmatpush1.bf16.msra.mxu0 %v5761_v19  ;;  %2246 = vmatpush1.bf16.msra.mxu1 %v5764_v62  ;;  %v5779_v19 = vld [vmem:[#allocation13 + $0x4] ss:$16 sps:$4 sm:$0xff]   ;;  %v5782_v62 = vld [vmem:[#allocation13 + $0xc] ss:$16 sps:$4 sm:$0xff]  }
 0x454   :  { %2206 = vmatprep.subr.bf16.mxu0 %v5767_v0  ;;  %2247 = vmatprep.subr.bf16.mxu1 %v5770_v6  ;;  %7147 = vst [vmem:[#allocation29_spill] sm:$0xff] %v5779_v19  ;;  %7148 = vst [vmem:[#allocation30_spill] sm:$0xff] %v5782_v62  ;;  %v5785_v0 = vld [vmem:[#allocation13] ss:$16 sps:$4 sm:$0xff]   ;;  %v5788_v6 = vld [vmem:[#allocation13 + $0x8] ss:$16 sps:$4 sm:$0xff]  }
 0x455   :  { %7149 = vst [vmem:[#allocation31_spill] sm:$0xff] %v5785_v0  ;;  %7150 = vst [vmem:[#allocation49_spill] sm:$0xff] %v5788_v6 }
 0x457   :  { %2207 = vmatpush1.bf16.msra.mxu0 %v5773_v21  ;;  %2248 = vmatpush1.bf16.msra.mxu1 %v5776_v61  ;;  %v5791_v21 = vld [vmem:[#allocation15 + $0xe4] ss:$16 sps:$4 sm:$0xff]   ;;  %v5794_v61 = vld [vmem:[#allocation15 + $0xec] ss:$16 sps:$4 sm:$0xff]  }
 0x458   :  { %2208 = vmatprep.subr.bf16.mxu0 %v5779_v19  ;;  %2249 = vmatprep.subr.bf16.mxu1 %v5782_v62  ;;  %7151 = vst [vmem:[#allocation54_spill] sm:$0xff] %v5791_v21  ;;  %7152 = vst [vmem:[#allocation52_spill] sm:$0xff] %v5794_v61 }
 0x45b   :  { %2209 = vmatpush1.bf16.msra.mxu0 %v5785_v0  ;;  %2250 = vmatpush1.bf16.msra.mxu1 %v5788_v6 }
 0x45c   :  { %2276 = vmatprep.subr.bf16.mxu0 %v5791_v21  ;;  %2317 = vmatprep.subr.bf16.mxu1 %v5794_v61 }
 0x4be   :  { %v1919_v19 = vpop.f32.mrf.mxu0  ;;  %v1960_v7 = vpop.f32.mrf.mxu1 }
 0x4c0   :  { %v1921_v49 = vpop.f32.mrf.mxu0  ;;  %v1962_v62 = vpop.f32.mrf.mxu1 }
 0x4c2   :  { %v1923_v13 = vpop.f32.mrf.mxu0  ;;  %v1964_v58 = vpop.f32.mrf.mxu1 }
 0x4c3   :  { %v7154_v58 = vld [vmem:[#allocation26_spill] sm:$0xff] }
 0x4c4   :  { %v1924_v29 = vpop.f32.mrf.mxu0  ;;  %v1965_v0 = vpop.f32.mrf.mxu1 }
 0x4de   :  { %v2001_v12 = vpop.f32.mrf.mxu0  ;;  %v2042_v11 = vpop.f32.mrf.mxu1 }
 0x4df   :  { %v2002_v10 = vadd.f32 %v2001_v12, %v1919_v19  ;;  %v2043_v6 = vadd.f32 %v2042_v11, %v1960_v7 }
 0x4e0   :  { %v2003_v34 = vpop.f32.mrf.mxu0  ;;  %v2044_v43 = vpop.f32.mrf.mxu1 }
 0x4e1   :  { %v2049_v21 = vadd.f32 %v2002_v10, %v7090_v38  ;;  %v2004_v39 = vadd.f32 %v2003_v34, %v1921_v49  ;;  %v2045_v55 = vadd.f32 %v2044_v43, %v1962_v62  ;;  %v2051_v0 = vadd.f32 %v2043_v6, %v7154_v58  ;;  %v7155_v34 = vld [vmem:[#allocation59_spill] sm:$0xff]  ;;  %v7158_v58 = vld [vmem:[#allocation60_spill] sm:$0xff] }
 0x4e2   :  { %v2005_v37 = vpop.f32.mrf.mxu0  ;;  %v2046_v61 = vpop.f32.mrf.mxu1 }
 0x4e3   :  { %v3907_v54 = vmul.f32 -1.442695, %v2049_v21  ;;  %v2050_v3 = vadd.f32 %v2004_v39, %v7153_v41 }
 0x4e4   :  { %v2006_v36 = vpop.f32.mrf.mxu0  ;;  %v2047_v13 = vpop.f32.mrf.mxu1 }
 0x4e5   :  { %4277 = vpow2.f32 %v3907_v54  ;;  %v3908_v29 = vmul.f32 -1.442695, %v2050_v3  ;;  %v7156_v54 = vld [vmem:[#allocation61_spill] sm:$0xff] }
 0x4e7   :  { %4279 = vpow2.f32 %v3908_v29 }
 0x4e8   :  { %4281 = vtanh.f32 %v2051_v0 }
 0x4f2   :  { %v4278_v12 = vpop.eup %4277 }
 0x4f3   :  { %v2056_v11 = vadd.f32 1.0, %v4278_v12 }
 0x4f4   :  { %v4280_v7 = vpop.eup %4279 }
 0x4f5   :  { %4283 = vrcp.f32 %v2056_v11  ;;  %v2062_v10 = vadd.f32 1.0, %v4280_v7  ;;  %v4282_v36 = vpop.eup %4281 }
 0x4f7   :  { %4285 = vrcp.f32 %v2062_v10 }
 0x4fe   :  { %v2117_v43 = vpop.f32.mrf.mxu0  ;;  %v2158_v37 = vpop.f32.mrf.mxu1 }
 0x4ff   :  { %v2165_v49 = vadd.f32 %v2117_v43, %v7155_v34  ;;  %v7157_v43 = vld [vmem:[#allocation62_spill] sm:$0xff] }
 0x500   :  { %v2119_v61 = vpop.f32.mrf.mxu0  ;;  %v2160_v39 = vpop.f32.mrf.mxu1 }
 0x501   :  { %v3910_v19 = vmul.f32 -1.442695, %v2165_v49  ;;  %v2166_v3 = vadd.f32 %v2119_v61, %v7156_v54  ;;  %v2168_v34 = vadd.f32 %v2160_v39, %v7157_v43  ;;  %v2167_v49 = vadd.f32 %v2158_v37, %v7158_v58  ;;  %v5825_v43 = vld [vmem:[#allocation15 + $0xcc] ss:$16 sps:$4 sm:$0xff]  }
 0x502   :  { %v4284_v62 = vpop.eup %4283  ;;  %v2121_v21 = vpop.f32.mrf.mxu0  ;;  %v2052_v58 = vadd.f32 %v2045_v55, %v5426_v46  ;;  %v5822_v55 = vld [vmem:[#allocation15 + $0xc4] ss:$16 sps:$4 sm:$0xff]  }
 0x503   :  { %v2162_v6 = vpop.f32.mrf.mxu1  ;;  %v2073_v13 = vmul.f32 %v4284_v62, %v4282_v36  ;;  %4287 = vpow2.f32 %v3910_v19  ;;  %v3911_v29 = vmul.f32 -1.442695, %v2166_v3  ;;  %v3912_v41 = vmul.f32 -1.442695, %v2168_v34 }
 0x504   :  { %v4286_v0 = vpop.eup %4285  ;;  %v2122_v12 = vpop.f32.mrf.mxu0  ;;  %v3909_v37 = vmul.f32 -1.442695, %v2052_v58  ;;  %v5864_v58 = vld [vmem:[#allocation15 + $0x6c] ss:$16 sps:$4 sm:$0xff]  }
 0x505   :  { %v2163_v11 = vpop.f32.mrf.mxu1  ;;  %v2072_v7 = vmul.f32 %v4286_v0, %v5611_v15  ;;  %4289 = vpow2.f32 %v3911_v29  ;;  %7161 = vst [vmem:[#allocation51_spill] sm:$0xff] %v5864_v58 }
 0x506   :  { %4291 = vtanh.f32 %v2167_v49  ;;  %v5830_v49 = vld [vmem:[#allocation15 + $0xc0] ss:$16 sps:$4 sm:$0xff]  }
 0x507   :  { %v5803_v10 = vadd.f32 %v2073_v13, %v2072_v7  ;;  %4293 = vpow2.f32 %v3912_v41  ;;  %v5816_v7 = vld [vmem:[#allocation15 + $0xe0] ss:$16 sps:$4 sm:$0xff]  }
 0x510   :  { %v4288_v61 = vpop.eup %4287 }
 0x511   :  { %v2172_v54 = vadd.f32 1.0, %v4288_v61  ;;  %v5833_v61 = vld [vmem:[#allocation15 + $0xc8] ss:$16 sps:$4 sm:$0xff]  }
 0x512   :  { %v4290_v21 = vpop.eup %4289 }
 0x513   :  { %4295 = vrcp.f32 %v2172_v54  ;;  %v2178_v36 = vadd.f32 1.0, %v4290_v21  ;;  %v4292_v19 = vpop.eup %4291  ;;  %v5836_v54 = vld [vmem:[#allocation15 + $0xa4] ss:$16 sps:$4 sm:$0xff]   ;;  %v5839_v21 = vld [vmem:[#allocation15 + $0xac] ss:$16 sps:$4 sm:$0xff]  }
 0x514   :  { %v4294_v3 = vpop.eup %4293 }
 0x515   :  { %4297 = vrcp.f32 %v2178_v36  ;;  %v2185_v13 = vadd.f32 1.0, %v4294_v3  ;;  %v5845_v3 = vld [vmem:[#allocation15 + $0xa8] ss:$16 sps:$4 sm:$0xff]  }
 0x517   :  { %4299 = vrcp.f32 %v2185_v13  ;;  %v5858_v13 = vld [vmem:[#allocation15 + $0x88] ss:$16 sps:$4 sm:$0xff]  }
 0x518   :  { %7159 = vst [vmem:[#allocation50_spill] sm:$0xff] %v5858_v13 }
 0x520   :  { %v4296_v62 = vpop.eup %4295 }
 0x521   :  { %v2189_v15 = vmul.f32 %v4296_v62, %v4292_v19  ;;  %v5842_v19 = vld [vmem:[#allocation15 + $0xa0] ss:$16 sps:$4 sm:$0xff]   ;;  %v5848_v62 = vld [vmem:[#allocation15 + $0x84] ss:$16 sps:$4 sm:$0xff]  }
 0x522   :  { %v4298_v6 = vpop.eup %4297 }
 0x523   :  { %v2188_v29 = vmul.f32 %v4298_v6, %v5616_v50  ;;  %v5819_v50 = vld [vmem:[#allocation15 + $0xe8] ss:$16 sps:$4 sm:$0xff]   ;;  %v5855_v6 = vld [vmem:[#allocation15 + $0x80] ss:$16 sps:$4 sm:$0xff]  }
 0x524   :  { %v4300_v41 = vpop.eup %4299 }
 0x525   :  { %v5808_v39 = vadd.f32 %v2189_v15, %v2188_v29  ;;  %v5851_v15 = vld [vmem:[#allocation15 + $0x8c] ss:$16 sps:$4 sm:$0xff]   ;;  %v5861_v29 = vld [vmem:[#allocation15 + $0x64] ss:$16 sps:$4 sm:$0xff]  }
 0x526   :  { %7160 = vst [vmem:[#allocation53_spill] sm:$0xff] %v5861_v29 }
 0x527   :  { %4301 = vtanh.f32 %v5808_v39 }
 0x528   :  { %4303 = vpow2.f32 %v3909_v37  ;;  %v5867_v37 = vld [vmem:[#allocation15 + $0x60] ss:$16 sps:$4 sm:$0xff]  }
 0x529   :  { %4305 = vtanh.f32 %v5803_v10  ;;  %7162 = vst [vmem:[#allocation79_spill] sm:$0xff] %v5867_v37 }
 0x534   :  { %v4302_v0 = vpop.eup %4301 }
 0x535   :  { %v2192_v12 = vmul.f32 %v4302_v0, %v4300_v41  ;;  %v4304_v34 = vpop.eup %4303  ;;  %v5870_v41 = vld [vmem:[#allocation15 + $0x68] ss:$16 sps:$4 sm:$0xff]   ;;  %v5873_v0 = vld [vmem:[#allocation15 + $0x44] ss:$16 sps:$4 sm:$0xff]  }
 0x536   :  { %v2069_v36 = vadd.f32 1.0, %v4304_v34  ;;  %7163 = vst [vmem:[#allocation80_spill] sm:$0xff] %v5870_v41  ;;  %7164 = vst [vmem:[#allocation81_spill] sm:$0xff] %v5873_v0  ;;  %v5879_v34 = vld [vmem:[#allocation15 + $0x40] ss:$16 sps:$4 sm:$0xff]  }
 0x537   :  { %v5812_v11 = vpack.c.bf16 %v2192_v12, %v2192_v12  ;;  %v5876_v12 = vld [vmem:[#allocation15 + $0x4c] ss:$16 sps:$4 sm:$0xff]   ;;  %7166 = vst [vmem:[#allocation83_spill] sm:$0xff] %v5879_v34 }
 0x538   :  { %4307 = vrcp.f32 %v2069_v36  ;;  %7165 = vst [vmem:[#allocation82_spill] sm:$0xff] %v5876_v12  ;;  %v5882_v36 = vld [vmem:[#allocation15 + $0x48] ss:$16 sps:$4 sm:$0xff]  }
 0x539   :  { %2227 = vmatmul.mubr.bf16.vlgmr.msra.gmra.mxu0 %v5812_v11  ;;  %2268 = vmatmul.mubr.bf16.vlgmr.msra.gmra.mxu1 %v5812_v11  ;;  %7167 = vst [vmem:[#allocation84_spill] sm:$0xff] %v5882_v36 }
 0x53a   :  { %2277 = vmatpush1.bf16.msra.mxu0 %v5816_v7  ;;  %2318 = vmatpush1.bf16.msra.mxu1 %v5819_v50 }
 0x53b   :  { %2278 = vmatprep.subr.bf16.mxu0 %v5822_v55  ;;  %2319 = vmatprep.subr.bf16.mxu1 %v5825_v43 }
 0x53c   :  { %2308 = vmatprep.mubr.bf16.mxu0 %v6985_v53  ;;  %2349 = vmatprep.mubr.bf16.mxu1 %v6985_v53 }
 0x53e   :  { %2279 = vmatpush1.bf16.msra.mxu0 %v5830_v49  ;;  %2320 = vmatpush1.bf16.msra.mxu1 %v5833_v61 }
 0x53f   :  { %2280 = vmatprep.subr.bf16.mxu0 %v5836_v54  ;;  %2321 = vmatprep.subr.bf16.mxu1 %v5839_v21 }
 0x542   :  { %2281 = vmatpush1.bf16.msra.mxu0 %v5842_v19  ;;  %2322 = vmatpush1.bf16.msra.mxu1 %v5845_v3 }
 0x543   :  { %2282 = vmatprep.subr.bf16.mxu0 %v5848_v62  ;;  %2323 = vmatprep.subr.bf16.mxu1 %v5851_v15 }
 0x546   :  { %2283 = vmatpush1.bf16.msra.mxu0 %v5855_v6  ;;  %2324 = vmatpush1.bf16.msra.mxu1 %v5858_v13  ;;  %v5906_v13 = vld [vmem:[#allocation15 + $0x8] ss:$16 sps:$4 sm:$0xff]  }
 0x547   :  { %2284 = vmatprep.subr.bf16.mxu0 %v5861_v29  ;;  %2325 = vmatprep.subr.bf16.mxu1 %v5864_v58  ;;  %v5891_v29 = vld [vmem:[#allocation15 + $0x20] ss:$16 sps:$4 sm:$0xff]  }
 0x548   :  { %7170 = vst [vmem:[#allocation87_spill] sm:$0xff] %v5891_v29 }
 0x54a   :  { %2285 = vmatpush1.bf16.msra.mxu0 %v5867_v37  ;;  %2326 = vmatpush1.bf16.msra.mxu1 %v5870_v41  ;;  %v5885_v37 = vld [vmem:[#allocation15 + $0x24] ss:$16 sps:$4 sm:$0xff]   ;;  %v5888_v41 = vld [vmem:[#allocation15 + $0x2c] ss:$16 sps:$4 sm:$0xff]  }
 0x54b   :  { %2286 = vmatprep.subr.bf16.mxu0 %v5873_v0  ;;  %2327 = vmatprep.subr.bf16.mxu1 %v5876_v12  ;;  %7168 = vst [vmem:[#allocation85_spill] sm:$0xff] %v5885_v37  ;;  %7169 = vst [vmem:[#allocation86_spill] sm:$0xff] %v5888_v41  ;;  %v4306_v0 = vpop.eup %4305  ;;  %v5894_v12 = vld [vmem:[#allocation15 + $0x28] ss:$16 sps:$4 sm:$0xff]  }
 0x54c   :  { %v4308_v58 = vpop.eup %4307 }
 0x54e   :  { %2287 = vmatpush1.bf16.msra.mxu0 %v5879_v34  ;;  %2328 = vmatpush1.bf16.msra.mxu1 %v5882_v36  ;;  %v5897_v34 = vld [vmem:[#allocation15 + $0x4] ss:$16 sps:$4 sm:$0xff]   ;;  %v5900_v36 = vld [vmem:[#allocation15 + $0xc] ss:$16 sps:$4 sm:$0xff]  }
 0x54f   :  { %2288 = vmatprep.subr.bf16.mxu0 %v5885_v37  ;;  %2329 = vmatprep.subr.bf16.mxu1 %v5888_v41  ;;  %v2076_v37 = vmul.f32 %v4308_v58, %v4306_v0  ;;  %v5903_v41 = vld [vmem:[#allocation15] ss:$16 sps:$4 sm:$0xff]  }
 0x552   :  { %2289 = vmatpush1.bf16.msra.mxu0 %v5891_v29  ;;  %2330 = vmatpush1.bf16.msra.mxu1 %v5894_v12  ;;  %v2077_v29 = vpack.c.bf16 %v2076_v37, %v2076_v37 }
 0x553   :  { %2290 = vmatprep.subr.bf16.mxu0 %v5897_v34  ;;  %2331 = vmatprep.subr.bf16.mxu1 %v5900_v36 }
 0x556   :  { %2291 = vmatpush1.bf16.msra.mxu0 %v5903_v41  ;;  %2332 = vmatpush1.bf16.msra.mxu1 %v5906_v13 }
 0x557   :  { %2392 = vmatprep.subr.bf16.mxu0 %v5469_v20  ;;  %2433 = vmatprep.subr.bf16.mxu1 %v5472_v42  ;;  %v7171_v20 = vld [vmem:[#allocation32_spill] sm:$0xff]  ;;  %v7172_v42 = vld [vmem:[#allocation33_spill] sm:$0xff] }
 0x559   :  { %2309 = vmatmul.mubr.bf16.vlgmr.msra.gmra.mxu0 %v2077_v29  ;;  %2350 = vmatmul.mubr.bf16.vlgmr.msra.gmra.mxu1 %v2077_v29 }
 0x55a   :  { %2393 = vmatpush1.bf16.msra.mxu0 %v5475_v63  ;;  %2434 = vmatpush1.bf16.msra.mxu1 %v5478_v1  ;;  %v7173_v63 = vld [vmem:[#allocation34_spill] sm:$0xff]  ;;  %v7174_v1 = vld [vmem:[#allocation35_spill] sm:$0xff] }
 0x55b   :  { %2394 = vmatprep.subr.bf16.mxu0 %v5481_v48  ;;  %2435 = vmatprep.subr.bf16.mxu1 %v5484_v45  ;;  %v7175_v48 = vld [vmem:[#allocation36_spill] sm:$0xff]  ;;  %v7176_v45 = vld [vmem:[#allocation37_spill] sm:$0xff] }
 0x55c   :  { %2424 = vmatprep.mubr.bf16.mxu0 %v6985_v53  ;;  %2465 = vmatprep.mubr.bf16.mxu1 %v6985_v53 }
 0x55e   :  { %2395 = vmatpush1.bf16.msra.mxu0 %v7097_v26  ;;  %2436 = vmatpush1.bf16.msra.mxu1 %v7098_v31  ;;  %v7177_v26 = vld [vmem:[#allocation38_spill] sm:$0xff]  ;;  %v7178_v31 = vld [vmem:[#allocation39_spill] sm:$0xff] }
 0x55f   :  { %2396 = vmatprep.subr.bf16.mxu0 %v7099_v25  ;;  %2437 = vmatprep.subr.bf16.mxu1 %v7100_v24  ;;  %v7179_v25 = vld [vmem:[#allocation40_spill] sm:$0xff]  ;;  %v7180_v24 = vld [vmem:[#allocation41_spill] sm:$0xff] }
 0x562   :  { %2397 = vmatpush1.bf16.msra.mxu0 %v7101_v16  ;;  %2438 = vmatpush1.bf16.msra.mxu1 %v7102_v35  ;;  %v7181_v16 = vld [vmem:[#allocation42_spill] sm:$0xff]  ;;  %v7182_v35 = vld [vmem:[#allocation43_spill] sm:$0xff] }
 0x563   :  { %2398 = vmatprep.subr.bf16.mxu0 %v7103_v18  ;;  %2439 = vmatprep.subr.bf16.mxu1 %v7104_v22  ;;  %v7183_v18 = vld [vmem:[#allocation44_spill] sm:$0xff]  ;;  %v7184_v22 = vld [vmem:[#allocation45_spill] sm:$0xff] }
 0x566   :  { %2399 = vmatpush1.bf16.msra.mxu0 %v7105_v23  ;;  %2440 = vmatpush1.bf16.msra.mxu1 %v7106_v27  ;;  %v7185_v23 = vld [vmem:[#allocation46_spill] sm:$0xff]  ;;  %v7186_v27 = vld [vmem:[#allocation47_spill] sm:$0xff] }
 0x567   :  { %2400 = vmatprep.subr.bf16.mxu0 %v7107_v44  ;;  %2441 = vmatprep.subr.bf16.mxu1 %v7108_v28  ;;  %v7187_v44 = vld [vmem:[#allocation48_spill] sm:$0xff] }
 0x568   :  { %v7188_v28 = vld [vmem:[#allocation24_spill] sm:$0xff] }
 0x56a   :  { %2401 = vmatpush1.bf16.msra.mxu0 %v7109_v30  ;;  %2442 = vmatpush1.bf16.msra.mxu1 %v7110_v17  ;;  %v7189_v30 = vld [vmem:[#allocation55_spill] sm:$0xff]  ;;  %v7190_v17 = vld [vmem:[#allocation57_spill] sm:$0xff] }
 0x56b   :  { %2402 = vmatprep.subr.bf16.mxu0 %v7111_v57  ;;  %2443 = vmatprep.subr.bf16.mxu1 %v7112_v32  ;;  %v7191_v57 = vld [vmem:[#allocation58_spill] sm:$0xff]  ;;  %v7192_v32 = vld [vmem:[#allocation56_spill] sm:$0xff] }
 0x56e   :  { %2403 = vmatpush1.bf16.msra.mxu0 %v7113_v47  ;;  %2444 = vmatpush1.bf16.msra.mxu1 %v7114_v2  ;;  %v7193_v47 = vld [vmem:[#allocation27_spill] sm:$0xff]  ;;  %v7194_v2 = vld [vmem:[#allocation28_spill] sm:$0xff] }
 0x56f   :  { %2404 = vmatprep.subr.bf16.mxu0 %v7115_v4  ;;  %2445 = vmatprep.subr.bf16.mxu1 %v7116_v51  ;;  %v7195_v4 = vld [vmem:[#allocation29_spill] sm:$0xff]  ;;  %v7196_v51 = vld [vmem:[#allocation30_spill] sm:$0xff] }
 0x572   :  { %2405 = vmatpush1.bf16.msra.mxu0 %v7117_v52  ;;  %2446 = vmatpush1.bf16.msra.mxu1 %v7118_v5  ;;  %v7197_v52 = vld [vmem:[#allocation31_spill] sm:$0xff]  ;;  %v7198_v5 = vld [vmem:[#allocation49_spill] sm:$0xff] }
 0x573   :  { %2406 = vmatprep.subr.bf16.mxu0 %v7119_v56  ;;  %2447 = vmatprep.subr.bf16.mxu1 %v7120_v59  ;;  %v7199_v56 = vld [vmem:[#allocation54_spill] sm:$0xff]  ;;  %v7200_v59 = vld [vmem:[#allocation52_spill] sm:$0xff] }
 0x576   :  { %2407 = vmatpush1.bf16.msra.mxu0 %v7121_v60  ;;  %2448 = vmatpush1.bf16.msra.mxu1 %v7122_v40 }
 0x577   :  { %2503 = vmatprep.subr.bf16.mxu0 %v5691_v14  ;;  %2544 = vmatprep.subr.bf16.mxu1 %v5694_v8 }
 0x579   :  { %2425 = vmatmul.mubr.bf16.vlgmr.msra.gmra.mxu0 %v5812_v11  ;;  %2466 = vmatmul.mubr.bf16.vlgmr.msra.gmra.mxu1 %v5812_v11 }
 0x57a   :  { %2504 = vmatpush1.bf16.msra.mxu0 %v5699_v9  ;;  %2545 = vmatpush1.bf16.msra.mxu1 %v5702_v33 }
 0x57b   :  { %2505 = vmatprep.subr.bf16.mxu0 %v7171_v20  ;;  %2546 = vmatprep.subr.bf16.mxu1 %v7172_v42 }
 0x57c   :  { %2535 = vmatprep.mubr.bf16.mxu0 %v6985_v53  ;;  %2576 = vmatprep.mubr.bf16.mxu1 %v6985_v53 }
 0x57e   :  { %2506 = vmatpush1.bf16.msra.mxu0 %v7173_v63  ;;  %2547 = vmatpush1.bf16.msra.mxu1 %v7174_v1 }
 0x57f   :  { %2507 = vmatprep.subr.bf16.mxu0 %v7175_v48  ;;  %2548 = vmatprep.subr.bf16.mxu1 %v7176_v45 }
 0x582   :  { %2508 = vmatpush1.bf16.msra.mxu0 %v7177_v26  ;;  %2549 = vmatpush1.bf16.msra.mxu1 %v7178_v31 }
 0x583   :  { %2509 = vmatprep.subr.bf16.mxu0 %v7179_v25  ;;  %2550 = vmatprep.subr.bf16.mxu1 %v7180_v24 }
 0x586   :  { %2510 = vmatpush1.bf16.msra.mxu0 %v7181_v16  ;;  %2551 = vmatpush1.bf16.msra.mxu1 %v7182_v35 }
 0x587   :  { %2511 = vmatprep.subr.bf16.mxu0 %v7183_v18  ;;  %2552 = vmatprep.subr.bf16.mxu1 %v7184_v22 }
 0x58a   :  { %2512 = vmatpush1.bf16.msra.mxu0 %v7185_v23  ;;  %2553 = vmatpush1.bf16.msra.mxu1 %v7186_v27 }
 0x58b   :  { %2513 = vmatprep.subr.bf16.mxu0 %v7187_v44  ;;  %2554 = vmatprep.subr.bf16.mxu1 %v7188_v28  ;;  %v7201_v44 = vld [vmem:[#allocation25_spill] sm:$0xff] }
 0x58e   :  { %2514 = vmatpush1.bf16.msra.mxu0 %v7189_v30  ;;  %2555 = vmatpush1.bf16.msra.mxu1 %v7190_v17 }
 0x58f   :  { %2515 = vmatprep.subr.bf16.mxu0 %v7191_v57  ;;  %2556 = vmatprep.subr.bf16.mxu1 %v7192_v32 }
 0x592   :  { %2516 = vmatpush1.bf16.msra.mxu0 %v7193_v47  ;;  %2557 = vmatpush1.bf16.msra.mxu1 %v7194_v2 }
 0x593   :  { %2517 = vmatprep.subr.bf16.mxu0 %v7195_v4  ;;  %2558 = vmatprep.subr.bf16.mxu1 %v7196_v51 }
 0x596   :  { %2518 = vmatpush1.bf16.msra.mxu0 %v7197_v52  ;;  %2559 = vmatpush1.bf16.msra.mxu1 %v7198_v5 }
 0x597   :  { %2585 = vmatprep.subr.bf16.mxu0 %v7199_v56  ;;  %2626 = vmatprep.subr.bf16.mxu1 %v7200_v59 }
 0x5f9   :  { %v2228_v60 = vpop.f32.mrf.mxu0  ;;  %v2269_v40 = vpop.f32.mrf.mxu1 }
 0x5fb   :  { %v2230_v11 = vpop.f32.mrf.mxu0  ;;  %v2271_v29 = vpop.f32.mrf.mxu1 }
 0x5fd   :  { %v2232_v58 = vpop.f32.mrf.mxu0  ;;  %v2273_v37 = vpop.f32.mrf.mxu1 }
 0x5ff   :  { %v2233_v0 = vpop.f32.mrf.mxu0  ;;  %v2274_v2 = vpop.f32.mrf.mxu1 }
 0x600   :  { %v7202_v2 = vld [vmem:[#allocation26_spill] sm:$0xff] }
 0x619   :  { %v2310_v47 = vpop.f32.mrf.mxu0  ;;  %v2351_v4 = vpop.f32.mrf.mxu1 }
 0x61a   :  { %v2311_v32 = vadd.f32 %v2310_v47, %v2228_v60  ;;  %v2352_v51 = vadd.f32 %v2351_v4, %v2269_v40 }
 0x61b   :  { %v2312_v57 = vpop.f32.mrf.mxu0  ;;  %v2353_v52 = vpop.f32.mrf.mxu1 }
 0x61c   :  { %v2358_v5 = vadd.f32 %v2311_v32, %v7090_v38  ;;  %v2313_v17 = vadd.f32 %v2312_v57, %v2230_v11  ;;  %v2354_v56 = vadd.f32 %v2353_v52, %v2271_v29  ;;  %v2360_v0 = vadd.f32 %v2352_v51, %v7202_v2  ;;  %v7203_v52 = vld [vmem:[#allocation63_spill] sm:$0xff]  ;;  %v7206_v2 = vld [vmem:[#allocation64_spill] sm:$0xff] }
 0x61d   :  { %v2314_v30 = vpop.f32.mrf.mxu0  ;;  %v2355_v59 = vpop.f32.mrf.mxu1 }
 0x61e   :  { %v3913_v28 = vmul.f32 -1.442695, %v2358_v5  ;;  %v2359_v27 = vadd.f32 %v2313_v17, %v7201_v44 }
 0x61f   :  { %v2315_v23 = vpop.f32.mrf.mxu0  ;;  %v2356_v58 = vpop.f32.mrf.mxu1 }
 0x620   :  { %4309 = vpow2.f32 %v3913_v28  ;;  %v3914_v37 = vmul.f32 -1.442695, %v2359_v27  ;;  %v7204_v28 = vld [vmem:[#allocation65_spill] sm:$0xff] }
 0x622   :  { %4311 = vpow2.f32 %v3914_v37 }
 0x623   :  { %4313 = vtanh.f32 %v2360_v0 }
 0x62d   :  { %v4310_v47 = vpop.eup %4309 }
 0x62e   :  { %v2365_v4 = vadd.f32 1.0, %v4310_v47 }
 0x62f   :  { %v4312_v60 = vpop.eup %4311 }
 0x630   :  { %4315 = vrcp.f32 %v2365_v4  ;;  %v2371_v32 = vadd.f32 1.0, %v4312_v60  ;;  %v4314_v23 = vpop.eup %4313 }
 0x632   :  { %4317 = vrcp.f32 %v2371_v32 }
 0x639   :  { %v2426_v57 = vpop.f32.mrf.mxu0  ;;  %v2467_v30 = vpop.f32.mrf.mxu1 }
 0x63a   :  { %v2474_v5 = vadd.f32 %v2426_v57, %v7203_v52  ;;  %v7205_v57 = vld [vmem:[#allocation66_spill] sm:$0xff] }
 0x63b   :  { %v2428_v59 = vpop.f32.mrf.mxu0  ;;  %v2469_v17 = vpop.f32.mrf.mxu1 }
 0x63c   :  { %v3916_v40 = vmul.f32 -1.442695, %v2474_v5  ;;  %v2475_v27 = vadd.f32 %v2428_v59, %v7204_v28  ;;  %v2477_v52 = vadd.f32 %v2469_v17, %v7205_v57  ;;  %v2476_v5 = vadd.f32 %v2467_v30, %v7206_v2  ;;  %v7208_v57 = vld [vmem:[#allocation53_spill] sm:$0xff] }
 0x63d   :  { %v4316_v11 = vpop.eup %4315  ;;  %v2430_v29 = vpop.f32.mrf.mxu0  ;;  %v2361_v2 = vadd.f32 %v2354_v56, %v5426_v46 }
 0x63e   :  { %v2471_v51 = vpop.f32.mrf.mxu1  ;;  %v2382_v58 = vmul.f32 %v4316_v11, %v4314_v23  ;;  %4319 = vpow2.f32 %v3916_v40  ;;  %v3917_v37 = vmul.f32 -1.442695, %v2475_v27  ;;  %v3918_v44 = vmul.f32 -1.442695, %v2477_v52  ;;  %v7209_v52 = vld [vmem:[#allocation51_spill] sm:$0xff] }
 0x63f   :  { %v4318_v0 = vpop.eup %4317  ;;  %v2431_v47 = vpop.f32.mrf.mxu0  ;;  %v3915_v30 = vmul.f32 -1.442695, %v2361_v2 }
 0x640   :  { %v2472_v4 = vpop.f32.mrf.mxu1  ;;  %v2381_v60 = vmul.f32 %v4318_v0, %v5803_v10  ;;  %4321 = vpow2.f32 %v3917_v37 }
 0x641   :  { %4323 = vtanh.f32 %v2476_v5  ;;  %v7210_v5 = vld [vmem:[#allocation79_spill] sm:$0xff] }
 0x642   :  { %v5987_v32 = vadd.f32 %v2382_v58, %v2381_v60  ;;  %4325 = vpow2.f32 %v3918_v44  ;;  %v7207_v60 = vld [vmem:[#allocation50_spill] sm:$0xff] }
 0x64b   :  { %v4320_v59 = vpop.eup %4319 }
 0x64c   :  { %v2481_v28 = vadd.f32 1.0, %v4320_v59  ;;  %v7211_v59 = vld [vmem:[#allocation80_spill] sm:$0xff] }
 0x64d   :  { %v4322_v29 = vpop.eup %4321 }
 0x64e   :  { %4327 = vrcp.f32 %v2481_v28  ;;  %v2487_v23 = vadd.f32 1.0, %v4322_v29  ;;  %v4324_v40 = vpop.eup %4323  ;;  %v7212_v28 = vld [vmem:[#allocation81_spill] sm:$0xff]  ;;  %v7213_v29 = vld [vmem:[#allocation82_spill] sm:$0xff] }
 0x64f   :  { %v4326_v27 = vpop.eup %4325 }
 0x650   :  { %4329 = vrcp.f32 %v2487_v23  ;;  %v2494_v58 = vadd.f32 1.0, %v4326_v27  ;;  %v7214_v23 = vld [vmem:[#allocation83_spill] sm:$0xff]  ;;  %v7216_v27 = vld [vmem:[#allocation85_spill] sm:$0xff] }
 0x652   :  { %4331 = vrcp.f32 %v2494_v58  ;;  %v7218_v58 = vld [vmem:[#allocation87_spill] sm:$0xff] }
 0x65b   :  { %v4328_v11 = vpop.eup %4327 }
 0x65c   :  { %v2498_v10 = vmul.f32 %v4328_v11, %v4324_v40  ;;  %v7215_v40 = vld [vmem:[#allocation84_spill] sm:$0xff]  ;;  %v7217_v11 = vld [vmem:[#allocation86_spill] sm:$0xff] }
 0x65d   :  { %v4330_v51 = vpop.eup %4329 }
 0x65e   :  { %v2497_v37 = vmul.f32 %v4330_v51, %v5808_v39 }
 0x65f   :  { %v4332_v44 = vpop.eup %4331 }
 0x660   :  { %v5992_v17 = vadd.f32 %v2498_v10, %v2497_v37 }
 0x662   :  { %4333 = vtanh.f32 %v5992_v17 }
 0x663   :  { %4335 = vpow2.f32 %v3915_v30  ;;  %v6033_v30 = vld [vmem:[#allocation12 + $0xe4] ss:$16 sps:$4 sm:$0xff]  }
 0x664   :  { %4337 = vtanh.f32 %v5987_v32 }
 0x66f   :  { %v4334_v0 = vpop.eup %4333 }
 0x670   :  { %v2501_v47 = vmul.f32 %v4334_v0, %v4332_v44  ;;  %v4336_v39 = vpop.eup %4335  ;;  %v6036_v44 = vld [vmem:[#allocation12 + $0xec] ss:$16 sps:$4 sm:$0xff]   ;;  %v6039_v0 = vld [vmem:[#allocation12 + $0xe0] ss:$16 sps:$4 sm:$0xff]  }
 0x671   :  { %v2378_v56 = vadd.f32 1.0, %v4336_v39  ;;  %v4338_v10 = vpop.eup %4337  ;;  %v6045_v39 = vld [vmem:[#allocation12 + $0xc4] ss:$16 sps:$4 sm:$0xff]  }
 0x672   :  { %v5996_v4 = vpack.c.bf16 %v2501_v47, %v2501_v47  ;;  %v6042_v47 = vld [vmem:[#allocation12 + $0xe8] ss:$16 sps:$4 sm:$0xff]   ;;  %7219 = vst [vmem:[#allocation88_spill] sm:$0xff] %v6045_v39 }
 0x673   :  { %4339 = vrcp.f32 %v2378_v56  ;;  %v6048_v56 = vld [vmem:[#allocation12 + $0xcc] ss:$16 sps:$4 sm:$0xff]  }
 0x674   :  { %2536 = vmatmul.mubr.bf16.vlgmr.msra.gmra.mxu0 %v5996_v4  ;;  %2577 = vmatmul.mubr.bf16.vlgmr.msra.gmra.mxu1 %v5996_v4  ;;  %7220 = vst [vmem:[#allocation89_spill] sm:$0xff] %v6048_v56 }
 0x675   :  { %2586 = vmatpush1.bf16.msra.mxu0 %v5816_v7  ;;  %2627 = vmatpush1.bf16.msra.mxu1 %v5819_v50 }
 0x676   :  { %2587 = vmatprep.subr.bf16.mxu0 %v5822_v55  ;;  %2628 = vmatprep.subr.bf16.mxu1 %v5825_v43 }
 0x677   :  { %2617 = vmatprep.mubr.bf16.mxu0 %v6985_v53  ;;  %2658 = vmatprep.mubr.bf16.mxu1 %v6985_v53 }
 0x679   :  { %2588 = vmatpush1.bf16.msra.mxu0 %v5830_v49  ;;  %2629 = vmatpush1.bf16.msra.mxu1 %v5833_v61 }
 0x67a   :  { %2589 = vmatprep.subr.bf16.mxu0 %v5836_v54  ;;  %2630 = vmatprep.subr.bf16.mxu1 %v5839_v21 }
 0x67d   :  { %2590 = vmatpush1.bf16.msra.mxu0 %v5842_v19  ;;  %2631 = vmatpush1.bf16.msra.mxu1 %v5845_v3 }
 0x67e   :  { %2591 = vmatprep.subr.bf16.mxu0 %v5848_v62  ;;  %2632 = vmatprep.subr.bf16.mxu1 %v5851_v15 }
 0x680   :  { %v4340_v51 = vpop.eup %4339 }
 0x681   :  { %2592 = vmatpush1.bf16.msra.mxu0 %v5855_v6  ;;  %2633 = vmatpush1.bf16.msra.mxu1 %v7207_v60  ;;  %v2385_v37 = vmul.f32 %v4340_v51, %v4338_v10  ;;  %v6053_v10 = vld [vmem:[#allocation12 + $0xc0] ss:$16 sps:$4 sm:$0xff]   ;;  %v6056_v51 = vld [vmem:[#allocation12 + $0xc8] ss:$16 sps:$4 sm:$0xff]  }
 0x682   :  { %2593 = vmatprep.subr.bf16.mxu0 %v7208_v57  ;;  %2634 = vmatprep.subr.bf16.mxu1 %v7209_v52  ;;  %7221 = vst [vmem:[#allocation90_spill] sm:$0xff] %v6053_v10  ;;  %7222 = vst [vmem:[#allocation91_spill] sm:$0xff] %v6056_v51 }
 0x683   :  { %v2386_v2 = vpack.c.bf16 %v2385_v37, %v2385_v37  ;;  %v6059_v37 = vld [vmem:[#allocation12 + $0xa4] ss:$16 sps:$4 sm:$0xff]  }
 0x684   :  { %7223 = vst [vmem:[#allocation92_spill] sm:$0xff] %v6059_v37 }
 0x685   :  { %2594 = vmatpush1.bf16.msra.mxu0 %v7210_v5  ;;  %2635 = vmatpush1.bf16.msra.mxu1 %v7211_v59 }
 0x686   :  { %2595 = vmatprep.subr.bf16.mxu0 %v7212_v28  ;;  %2636 = vmatprep.subr.bf16.mxu1 %v7213_v29 }
 0x689   :  { %2596 = vmatpush1.bf16.msra.mxu0 %v7214_v23  ;;  %2637 = vmatpush1.bf16.msra.mxu1 %v7215_v40 }
 0x68a   :  { %2597 = vmatprep.subr.bf16.mxu0 %v7216_v27  ;;  %2638 = vmatprep.subr.bf16.mxu1 %v7217_v11 }
 0x68d   :  { %2598 = vmatpush1.bf16.msra.mxu0 %v7218_v58  ;;  %2639 = vmatpush1.bf16.msra.mxu1 %v5894_v12 }
 0x68e   :  { %2599 = vmatprep.subr.bf16.mxu0 %v5897_v34  ;;  %2640 = vmatprep.subr.bf16.mxu1 %v5900_v36 }
 0x691   :  { %2600 = vmatpush1.bf16.msra.mxu0 %v5903_v41  ;;  %2641 = vmatpush1.bf16.msra.mxu1 %v5906_v13 }
 0x692   :  { %2701 = vmatprep.subr.bf16.mxu0 %v6033_v30  ;;  %2742 = vmatprep.subr.bf16.mxu1 %v6036_v44 }
 0x694   :  { %2618 = vmatmul.mubr.bf16.vlgmr.msra.gmra.mxu0 %v2386_v2  ;;  %2659 = vmatmul.mubr.bf16.vlgmr.msra.gmra.mxu1 %v2386_v2  ;;  %v6062_v2 = vld [vmem:[#allocation12 + $0xac] ss:$16 sps:$4 sm:$0xff]  }
 0x695   :  { %2702 = vmatpush1.bf16.msra.mxu0 %v6039_v0  ;;  %2743 = vmatpush1.bf16.msra.mxu1 %v6042_v47  ;;  %7224 = vst [vmem:[#allocation93_spill] sm:$0xff] %v6062_v2 }
 0x696   :  { %2703 = vmatprep.subr.bf16.mxu0 %v6045_v39  ;;  %2744 = vmatprep.subr.bf16.mxu1 %v6048_v56  ;;  %v6065_v56 = vld [vmem:[#allocation12 + $0xa0] ss:$16 sps:$4 sm:$0xff]   ;;  %v6068_v39 = vld [vmem:[#allocation12 + $0xa8] ss:$16 sps:$4 sm:$0xff]  }
 0x697   :  { %2733 = vmatprep.mubr.bf16.mxu0 %v6985_v53  ;;  %2774 = vmatprep.mubr.bf16.mxu1 %v6985_v53  ;;  %7225 = vst [vmem:[#allocation59_spill] sm:$0xff] %v6065_v56  ;;  %7226 = vst [vmem:[#allocation61_spill] sm:$0xff] %v6068_v39 }
 0x699   :  { %2704 = vmatpush1.bf16.msra.mxu0 %v6053_v10  ;;  %2745 = vmatpush1.bf16.msra.mxu1 %v6056_v51  ;;  %v6071_v10 = vld [vmem:[#allocation12 + $0x84] ss:$16 sps:$4 sm:$0xff]   ;;  %v6074_v51 = vld [vmem:[#allocation12 + $0x8c] ss:$16 sps:$4 sm:$0xff]  }
 0x69a   :  { %2705 = vmatprep.subr.bf16.mxu0 %v6059_v37  ;;  %2746 = vmatprep.subr.bf16.mxu1 %v6062_v2  ;;  %7227 = vst [vmem:[#allocation62_spill] sm:$0xff] %v6071_v10  ;;  %7228 = vst [vmem:[#allocation60_spill] sm:$0xff] %v6074_v51  ;;  %v6077_v37 = vld [vmem:[#allocation12 + $0x80] ss:$16 sps:$4 sm:$0xff]   ;;  %v6080_v2 = vld [vmem:[#allocation12 + $0x88] ss:$16 sps:$4 sm:$0xff]  }
 0x69b   :  { %7229 = vst [vmem:[#allocation32_spill] sm:$0xff] %v6077_v37  ;;  %7230 = vst [vmem:[#allocation33_spill] sm:$0xff] %v6080_v2 }
 0x69d   :  { %2706 = vmatpush1.bf16.msra.mxu0 %v6065_v56  ;;  %2747 = vmatpush1.bf16.msra.mxu1 %v6068_v39  ;;  %v6083_v56 = vld [vmem:[#allocation12 + $0x64] ss:$16 sps:$4 sm:$0xff]   ;;  %v6086_v39 = vld [vmem:[#allocation12 + $0x6c] ss:$16 sps:$4 sm:$0xff]  }
 0x69e   :  { %2707 = vmatprep.subr.bf16.mxu0 %v6071_v10  ;;  %2748 = vmatprep.subr.bf16.mxu1 %v6074_v51  ;;  %7231 = vst [vmem:[#allocation34_spill] sm:$0xff] %v6083_v56  ;;  %7232 = vst [vmem:[#allocation35_spill] sm:$0xff] %v6086_v39  ;;  %v6089_v10 = vld [vmem:[#allocation12 + $0x60] ss:$16 sps:$4 sm:$0xff]   ;;  %v6092_v51 = vld [vmem:[#allocation12 + $0x68] ss:$16 sps:$4 sm:$0xff]  }
 0x69f   :  { %7233 = vst [vmem:[#allocation36_spill] sm:$0xff] %v6089_v10  ;;  %7234 = vst [vmem:[#allocation37_spill] sm:$0xff] %v6092_v51 }
 0x6a1   :  { %2708 = vmatpush1.bf16.msra.mxu0 %v6077_v37  ;;  %2749 = vmatpush1.bf16.msra.mxu1 %v6080_v2  ;;  %v6095_v37 = vld [vmem:[#allocation12 + $0x44] ss:$16 sps:$4 sm:$0xff]   ;;  %v6098_v2 = vld [vmem:[#allocation12 + $0x4c] ss:$16 sps:$4 sm:$0xff]  }
 0x6a2   :  { %2709 = vmatprep.subr.bf16.mxu0 %v6083_v56  ;;  %2750 = vmatprep.subr.bf16.mxu1 %v6086_v39  ;;  %7235 = vst [vmem:[#allocation38_spill] sm:$0xff] %v6095_v37  ;;  %7236 = vst [vmem:[#allocation39_spill] sm:$0xff] %v6098_v2  ;;  %v6101_v56 = vld [vmem:[#allocation12 + $0x40] ss:$16 sps:$4 sm:$0xff]   ;;  %v6104_v39 = vld [vmem:[#allocation12 + $0x48] ss:$16 sps:$4 sm:$0xff]  }
 0x6a3   :  { %7237 = vst [vmem:[#allocation40_spill] sm:$0xff] %v6101_v56  ;;  %7238 = vst [vmem:[#allocation41_spill] sm:$0xff] %v6104_v39 }
 0x6a5   :  { %2710 = vmatpush1.bf16.msra.mxu0 %v6089_v10  ;;  %2751 = vmatpush1.bf16.msra.mxu1 %v6092_v51  ;;  %v6107_v10 = vld [vmem:[#allocation12 + $0x24] ss:$16 sps:$4 sm:$0xff]   ;;  %v6110_v51 = vld [vmem:[#allocation12 + $0x2c] ss:$16 sps:$4 sm:$0xff]  }
 0x6a6   :  { %2711 = vmatprep.subr.bf16.mxu0 %v6095_v37  ;;  %2752 = vmatprep.subr.bf16.mxu1 %v6098_v2  ;;  %7239 = vst [vmem:[#allocation42_spill] sm:$0xff] %v6107_v10  ;;  %7240 = vst [vmem:[#allocation43_spill] sm:$0xff] %v6110_v51  ;;  %v6113_v37 = vld [vmem:[#allocation12 + $0x20] ss:$16 sps:$4 sm:$0xff]   ;;  %v6116_v2 = vld [vmem:[#allocation12 + $0x28] ss:$16 sps:$4 sm:$0xff]  }
 0x6a9   :  { %2712 = vmatpush1.bf16.msra.mxu0 %v6101_v56  ;;  %2753 = vmatpush1.bf16.msra.mxu1 %v6104_v39  ;;  %v6119_v56 = vld [vmem:[#allocation12 + $0x4] ss:$16 sps:$4 sm:$0xff]   ;;  %v6122_v39 = vld [vmem:[#allocation12 + $0xc] ss:$16 sps:$4 sm:$0xff]  }
 0x6aa   :  { %2713 = vmatprep.subr.bf16.mxu0 %v6107_v10  ;;  %2754 = vmatprep.subr.bf16.mxu1 %v6110_v51  ;;  %7241 = vst [vmem:[#allocation44_spill] sm:$0xff] %v6119_v56  ;;  %7242 = vst [vmem:[#allocation45_spill] sm:$0xff] %v6122_v39  ;;  %v6125_v10 = vld [vmem:[#allocation12] ss:$16 sps:$4 sm:$0xff]   ;;  %v6128_v51 = vld [vmem:[#allocation12 + $0x8] ss:$16 sps:$4 sm:$0xff]  }
 0x6ab   :  { %7243 = vst [vmem:[#allocation63_spill] sm:$0xff] %v6125_v10  ;;  %7244 = vst [vmem:[#allocation65_spill] sm:$0xff] %v6128_v51 }
 0x6ad   :  { %2714 = vmatpush1.bf16.msra.mxu0 %v6113_v37  ;;  %2755 = vmatpush1.bf16.msra.mxu1 %v6116_v2 }
 0x6ae   :  { %2715 = vmatprep.subr.bf16.mxu0 %v6119_v56  ;;  %2756 = vmatprep.subr.bf16.mxu1 %v6122_v39 }
 0x6b1   :  { %2716 = vmatpush1.bf16.msra.mxu0 %v6125_v10  ;;  %2757 = vmatpush1.bf16.msra.mxu1 %v6128_v51  ;;  %v7261_v10 = vld [vmem:[#allocation25_spill] sm:$0xff] }
 0x6b2   :  { %2812 = vmatprep.subr.bf16.mxu0 %v5691_v14  ;;  %2853 = vmatprep.subr.bf16.mxu1 %v5694_v8  ;;  %v7245_v14 = vld [vmem:[#allocation46_spill] sm:$0xff]  ;;  %v7246_v8 = vld [vmem:[#allocation47_spill] sm:$0xff] }
 0x6b4   :  { %2734 = vmatmul.mubr.bf16.vlgmr.msra.gmra.mxu0 %v5996_v4  ;;  %2775 = vmatmul.mubr.bf16.vlgmr.msra.gmra.mxu1 %v5996_v4 }
 0x6b5   :  { %2813 = vmatpush1.bf16.msra.mxu0 %v5699_v9  ;;  %2854 = vmatpush1.bf16.msra.mxu1 %v5702_v33  ;;  %v7247_v9 = vld [vmem:[#allocation48_spill] sm:$0xff] }
 0x6b6   :  { %2814 = vmatprep.subr.bf16.mxu0 %v7171_v20  ;;  %2855 = vmatprep.subr.bf16.mxu1 %v7172_v42  ;;  %v7248_v33 = vld [vmem:[#allocation24_spill] sm:$0xff]  ;;  %v7249_v20 = vld [vmem:[#allocation55_spill] sm:$0xff]  ;;  %v7250_v42 = vld [vmem:[#allocation57_spill] sm:$0xff] }
 0x6b7   :  { %2844 = vmatprep.mubr.bf16.mxu0 %v6985_v53  ;;  %2885 = vmatprep.mubr.bf16.mxu1 %v6985_v53 }
 0x6b9   :  { %2815 = vmatpush1.bf16.msra.mxu0 %v7173_v63  ;;  %2856 = vmatpush1.bf16.msra.mxu1 %v7174_v1  ;;  %v7251_v63 = vld [vmem:[#allocation58_spill] sm:$0xff]  ;;  %v7252_v1 = vld [vmem:[#allocation56_spill] sm:$0xff] }
 0x6ba   :  { %2816 = vmatprep.subr.bf16.mxu0 %v7175_v48  ;;  %2857 = vmatprep.subr.bf16.mxu1 %v7176_v45  ;;  %v7253_v48 = vld [vmem:[#allocation27_spill] sm:$0xff]  ;;  %v7254_v45 = vld [vmem:[#allocation28_spill] sm:$0xff] }
 0x6bd   :  { %2817 = vmatpush1.bf16.msra.mxu0 %v7177_v26  ;;  %2858 = vmatpush1.bf16.msra.mxu1 %v7178_v31  ;;  %v7255_v26 = vld [vmem:[#allocation29_spill] sm:$0xff]  ;;  %v7256_v31 = vld [vmem:[#allocation30_spill] sm:$0xff] }
 0x6be   :  { %2818 = vmatprep.subr.bf16.mxu0 %v7179_v25  ;;  %2859 = vmatprep.subr.bf16.mxu1 %v7180_v24  ;;  %v7257_v25 = vld [vmem:[#allocation31_spill] sm:$0xff]  ;;  %v7258_v24 = vld [vmem:[#allocation49_spill] sm:$0xff] }
 0x6c1   :  { %2819 = vmatpush1.bf16.msra.mxu0 %v7181_v16  ;;  %2860 = vmatpush1.bf16.msra.mxu1 %v7182_v35  ;;  %v7259_v16 = vld [vmem:[#allocation54_spill] sm:$0xff]  ;;  %v7260_v35 = vld [vmem:[#allocation52_spill] sm:$0xff] }
 0x6c2   :  { %2820 = vmatprep.subr.bf16.mxu0 %v7183_v18  ;;  %2861 = vmatprep.subr.bf16.mxu1 %v7184_v22 }
 0x6c5   :  { %2821 = vmatpush1.bf16.msra.mxu0 %v7245_v14  ;;  %2862 = vmatpush1.bf16.msra.mxu1 %v7246_v8 }
 0x6c6   :  { %2822 = vmatprep.subr.bf16.mxu0 %v7247_v9  ;;  %2863 = vmatprep.subr.bf16.mxu1 %v7248_v33 }
 0x6c9   :  { %2823 = vmatpush1.bf16.msra.mxu0 %v7249_v20  ;;  %2864 = vmatpush1.bf16.msra.mxu1 %v7250_v42 }
 0x6ca   :  { %2824 = vmatprep.subr.bf16.mxu0 %v7251_v63  ;;  %2865 = vmatprep.subr.bf16.mxu1 %v7252_v1 }
 0x6cd   :  { %2825 = vmatpush1.bf16.msra.mxu0 %v7253_v48  ;;  %2866 = vmatpush1.bf16.msra.mxu1 %v7254_v45 }
 0x6ce   :  { %2826 = vmatprep.subr.bf16.mxu0 %v7255_v26  ;;  %2867 = vmatprep.subr.bf16.mxu1 %v7256_v31 }
 0x6d1   :  { %2827 = vmatpush1.bf16.msra.mxu0 %v7257_v25  ;;  %2868 = vmatpush1.bf16.msra.mxu1 %v7258_v24 }
 0x6d2   :  { %2894 = vmatprep.subr.bf16.mxu0 %v7259_v16  ;;  %2935 = vmatprep.subr.bf16.mxu1 %v7260_v35 }
 0x734   :  { %v2537_v18 = vpop.f32.mrf.mxu0  ;;  %v2578_v22 = vpop.f32.mrf.mxu1 }
 0x736   :  { %v2539_v4 = vpop.f32.mrf.mxu0  ;;  %v2580_v14 = vpop.f32.mrf.mxu1 }
 0x738   :  { %v2541_v8 = vpop.f32.mrf.mxu0  ;;  %v2582_v9 = vpop.f32.mrf.mxu1 }
 0x73a   :  { %v2542_v33 = vpop.f32.mrf.mxu0  ;;  %v2583_v20 = vpop.f32.mrf.mxu1 }
 0x73b   :  { %v7262_v33 = vld [vmem:[#allocation26_spill] sm:$0xff] }
 0x754   :  { %v2619_v42 = vpop.f32.mrf.mxu0  ;;  %v2660_v63 = vpop.f32.mrf.mxu1 }
 0x755   :  { %v2620_v1 = vadd.f32 %v2619_v42, %v2537_v18  ;;  %v2661_v48 = vadd.f32 %v2660_v63, %v2578_v22 }
 0x756   :  { %v2621_v45 = vpop.f32.mrf.mxu0  ;;  %v2662_v26 = vpop.f32.mrf.mxu1 }
 0x757   :  { %v2667_v31 = vadd.f32 %v2620_v1, %v7090_v38  ;;  %v2622_v25 = vadd.f32 %v2621_v45, %v2539_v4  ;;  %v2663_v24 = vadd.f32 %v2662_v26, %v2580_v14  ;;  %v2669_v20 = vadd.f32 %v2661_v48, %v7262_v33  ;;  %v7263_v1 = vld [vmem:[#allocation67_spill] sm:$0xff]  ;;  %v7266_v33 = vld [vmem:[#allocation68_spill] sm:$0xff] }
 0x758   :  { %v2623_v16 = vpop.f32.mrf.mxu0  ;;  %v2664_v35 = vpop.f32.mrf.mxu1 }
 0x759   :  { %v3919_v51 = vmul.f32 -1.442695, %v2667_v31  ;;  %v2668_v39 = vadd.f32 %v2622_v25, %v7261_v10 }
 0x75a   :  { %v2624_v56 = vpop.f32.mrf.mxu0  ;;  %v2665_v8 = vpop.f32.mrf.mxu1 }
 0x75b   :  { %4341 = vpow2.f32 %v3919_v51  ;;  %v3920_v9 = vmul.f32 -1.442695, %v2668_v39  ;;  %v7264_v51 = vld [vmem:[#allocation69_spill] sm:$0xff] }
 0x75d   :  { %4343 = vpow2.f32 %v3920_v9 }
 0x75e   :  { %4345 = vtanh.f32 %v2669_v20 }
 0x768   :  { %v4342_v18 = vpop.eup %4341 }
 0x769   :  { %v2674_v22 = vadd.f32 1.0, %v4342_v18 }
 0x76a   :  { %v4344_v42 = vpop.eup %4343 }
 0x76b   :  { %4347 = vrcp.f32 %v2674_v22  ;;  %v2680_v63 = vadd.f32 1.0, %v4344_v42  ;;  %v4346_v56 = vpop.eup %4345 }
 0x76d   :  { %4349 = vrcp.f32 %v2680_v63 }
 0x774   :  { %v2735_v4 = vpop.f32.mrf.mxu0  ;;  %v2776_v14 = vpop.f32.mrf.mxu1 }
 0x775   :  { %v2783_v45 = vadd.f32 %v2735_v4, %v7263_v1  ;;  %v7265_v4 = vld [vmem:[#allocation70_spill] sm:$0xff] }
 0x776   :  { %v2737_v26 = vpop.f32.mrf.mxu0  ;;  %v2778_v31 = vpop.f32.mrf.mxu1 }
 0x777   :  { %v3922_v25 = vmul.f32 -1.442695, %v2783_v45  ;;  %v2784_v39 = vadd.f32 %v2737_v26, %v7264_v51  ;;  %v2786_v1 = vadd.f32 %v2778_v31, %v7265_v4  ;;  %v2785_v45 = vadd.f32 %v2776_v14, %v7266_v33  ;;  %v6258_v4 = vld [vmem:[#allocation13 + $0xec] ss:$16 sps:$4 sm:$0xff]  }
 0x778   :  { %v4348_v16 = vpop.eup %4347  ;;  %v2739_v35 = vpop.f32.mrf.mxu0  ;;  %v2670_v33 = vadd.f32 %v2663_v24, %v5426_v46  ;;  %v7292_v24 = vld [vmem:[#allocation65_spill] sm:$0xff] }
 0x779   :  { %v2780_v48 = vpop.f32.mrf.mxu1  ;;  %v2691_v8 = vmul.f32 %v4348_v16, %v4346_v56  ;;  %4351 = vpow2.f32 %v3922_v25  ;;  %v3923_v9 = vmul.f32 -1.442695, %v2784_v39  ;;  %v3924_v10 = vmul.f32 -1.442695, %v2786_v1  ;;  %v6263_v1 = vld [vmem:[#allocation13 + $0xe0] ss:$16 sps:$4 sm:$0xff]  }
 0x77a   :  { %v4350_v20 = vpop.eup %4349  ;;  %v2740_v18 = vpop.f32.mrf.mxu0  ;;  %v3921_v14 = vmul.f32 -1.442695, %v2670_v33  ;;  %v6304_v33 = vld [vmem:[#allocation13 + $0x88] ss:$16 sps:$4 sm:$0xff]  }
 0x77b   :  { %v2781_v22 = vpop.f32.mrf.mxu1  ;;  %v2690_v42 = vmul.f32 %v4350_v20, %v5987_v32  ;;  %4353 = vpow2.f32 %v3923_v9  ;;  %7304 = vst [vmem:[#allocation85_spill] sm:$0xff] %v6304_v33 }
 0x77c   :  { %4355 = vtanh.f32 %v2785_v45  ;;  %v6266_v45 = vld [vmem:[#allocation13 + $0xe8] ss:$16 sps:$4 sm:$0xff]  }
 0x77d   :  { %v6175_v63 = vadd.f32 %v2691_v8, %v2690_v42  ;;  %4357 = vpow2.f32 %v3924_v10  ;;  %v6255_v42 = vld [vmem:[#allocation13 + $0xe4] ss:$16 sps:$4 sm:$0xff]  }
 0x786   :  { %v4352_v26 = vpop.eup %4351 }
 0x787   :  { %v2790_v51 = vadd.f32 1.0, %v4352_v26  ;;  %v6269_v26 = vld [vmem:[#allocation13 + $0xc4] ss:$16 sps:$4 sm:$0xff]  }
 0x788   :  { %v4354_v35 = vpop.eup %4353  ;;  %7293 = vst [vmem:[#allocation66_spill] sm:$0xff] %v6269_v26 }
 0x789   :  { %4359 = vrcp.f32 %v2790_v51  ;;  %v2796_v56 = vadd.f32 1.0, %v4354_v35  ;;  %v4356_v25 = vpop.eup %4355  ;;  %v6272_v51 = vld [vmem:[#allocation13 + $0xcc] ss:$16 sps:$4 sm:$0xff]   ;;  %v6277_v35 = vld [vmem:[#allocation13 + $0xc0] ss:$16 sps:$4 sm:$0xff]  }
 0x78a   :  { %v4358_v39 = vpop.eup %4357  ;;  %7294 = vst [vmem:[#allocation64_spill] sm:$0xff] %v6272_v51  ;;  %7295 = vst [vmem:[#allocation50_spill] sm:$0xff] %v6277_v35 }
 0x78b   :  { %4361 = vrcp.f32 %v2796_v56  ;;  %v2803_v8 = vadd.f32 1.0, %v4358_v39  ;;  %v6280_v56 = vld [vmem:[#allocation13 + $0xc8] ss:$16 sps:$4 sm:$0xff]   ;;  %v6286_v39 = vld [vmem:[#allocation13 + $0xac] ss:$16 sps:$4 sm:$0xff]  }
 0x78c   :  { %7296 = vst [vmem:[#allocation53_spill] sm:$0xff] %v6280_v56  ;;  %7298 = vst [vmem:[#allocation79_spill] sm:$0xff] %v6286_v39 }
 0x78d   :  { %4363 = vrcp.f32 %v2803_v8  ;;  %v6298_v8 = vld [vmem:[#allocation13 + $0x8c] ss:$16 sps:$4 sm:$0xff]  }
 0x78e   :  { %7302 = vst [vmem:[#allocation83_spill] sm:$0xff] %v6298_v8 }
 0x796   :  { %v4360_v16 = vpop.eup %4359 }
 0x797   :  { %v2807_v32 = vmul.f32 %v4360_v16, %v4356_v25  ;;  %v6283_v25 = vld [vmem:[#allocation13 + $0xa4] ss:$16 sps:$4 sm:$0xff]   ;;  %v6289_v16 = vld [vmem:[#allocation13 + $0xa0] ss:$16 sps:$4 sm:$0xff]  }
 0x798   :  { %v4362_v48 = vpop.eup %4361  ;;  %7297 = vst [vmem:[#allocation51_spill] sm:$0xff] %v6283_v25  ;;  %7299 = vst [vmem:[#allocation80_spill] sm:$0xff] %v6289_v16 }
 0x799   :  { %v2806_v9 = vmul.f32 %v4362_v48, %v5992_v17  ;;  %v6295_v48 = vld [vmem:[#allocation13 + $0x84] ss:$16 sps:$4 sm:$0xff]  }
 0x79a   :  { %v4364_v10 = vpop.eup %4363  ;;  %7301 = vst [vmem:[#allocation82_spill] sm:$0xff] %v6295_v48 }
 0x79b   :  { %v6180_v31 = vadd.f32 %v2807_v32, %v2806_v9  ;;  %v6292_v32 = vld [vmem:[#allocation13 + $0xa8] ss:$16 sps:$4 sm:$0xff]   ;;  %v6301_v9 = vld [vmem:[#allocation13 + $0x80] ss:$16 sps:$4 sm:$0xff]  }
 0x79c   :  { %7300 = vst [vmem:[#allocation81_spill] sm:$0xff] %v6292_v32  ;;  %7303 = vst [vmem:[#allocation84_spill] sm:$0xff] %v6301_v9 }
 0x79d   :  { %4365 = vtanh.f32 %v6180_v31 }
 0x79e   :  { %4367 = vpow2.f32 %v3921_v14  ;;  %v6307_v14 = vld [vmem:[#allocation13 + $0x64] ss:$16 sps:$4 sm:$0xff]  }
 0x79f   :  { %4369 = vtanh.f32 %v6175_v63  ;;  %7305 = vst [vmem:[#allocation86_spill] sm:$0xff] %v6307_v14 }
 0x7aa   :  { %v4366_v20 = vpop.eup %4365 }
 0x7ab   :  { %v2810_v18 = vmul.f32 %v4366_v20, %v4364_v10  ;;  %v4368_v17 = vpop.eup %4367  ;;  %v6310_v10 = vld [vmem:[#allocation13 + $0x6c] ss:$16 sps:$4 sm:$0xff]   ;;  %v6313_v20 = vld [vmem:[#allocation13 + $0x60] ss:$16 sps:$4 sm:$0xff]  }
 0x7ac   :  { %7306 = vst [vmem:[#allocation87_spill] sm:$0xff] %v6310_v10  ;;  %7307 = vst [vmem:[#allocation46_spill] sm:$0xff] %v6313_v20 }
 0x7ad   :  { %v6184_v22 = vpack.c.bf16 %v2810_v18, %v2810_v18  ;;  %v6316_v18 = vld [vmem:[#allocation13 + $0x68] ss:$16 sps:$4 sm:$0xff]  }
 0x7ae   :  { %7308 = vst [vmem:[#allocation47_spill] sm:$0xff] %v6316_v18 }
 0x7af   :  { %2845 = vmatmul.mubr.bf16.vlgmr.msra.gmra.mxu0 %v6184_v22  ;;  %2886 = vmatmul.mubr.bf16.vlgmr.msra.gmra.mxu1 %v6184_v22 }
 0x7b0   :  { %2895 = vmatpush1.bf16.msra.mxu0 %v5816_v7  ;;  %2936 = vmatpush1.bf16.msra.mxu1 %v5819_v50  ;;  %v2687_v7 = vadd.f32 1.0, %v4368_v17  ;;  %v4370_v50 = vpop.eup %4369  ;;  %v6322_v17 = vld [vmem:[#allocation13 + $0x4c] ss:$16 sps:$4 sm:$0xff]  }
 0x7b1   :  { %2896 = vmatprep.subr.bf16.mxu0 %v5822_v55  ;;  %2937 = vmatprep.subr.bf16.mxu1 %v5825_v43  ;;  %7310 = vst [vmem:[#allocation24_spill] sm:$0xff] %v6322_v17 }
 0x7b2   :  { %2926 = vmatprep.mubr.bf16.mxu0 %v6985_v53  ;;  %2967 = vmatprep.mubr.bf16.mxu1 %v6985_v53  ;;  %4371 = vrcp.f32 %v2687_v7  ;;  %v6325_v7 = vld [vmem:[#allocation13 + $0x40] ss:$16 sps:$4 sm:$0xff]  }
 0x7b3   :  { %7311 = vst [vmem:[#allocation55_spill] sm:$0xff] %v6325_v7 }
 0x7b4   :  { %2897 = vmatpush1.bf16.msra.mxu0 %v5830_v49  ;;  %2938 = vmatpush1.bf16.msra.mxu1 %v5833_v61  ;;  %v7267_v61 = vld [vmem:[#allocation88_spill] sm:$0xff] }
 0x7b5   :  { %2898 = vmatprep.subr.bf16.mxu0 %v5836_v54  ;;  %2939 = vmatprep.subr.bf16.mxu1 %v5839_v21  ;;  %v7268_v54 = vld [vmem:[#allocation89_spill] sm:$0xff]  ;;  %v7269_v21 = vld [vmem:[#allocation90_spill] sm:$0xff] }
 0x7b8   :  { %2899 = vmatpush1.bf16.msra.mxu0 %v5842_v19  ;;  %2940 = vmatpush1.bf16.msra.mxu1 %v5845_v3  ;;  %v7270_v19 = vld [vmem:[#allocation91_spill] sm:$0xff]  ;;  %v7271_v3 = vld [vmem:[#allocation92_spill] sm:$0xff] }
 0x7b9   :  { %2900 = vmatprep.subr.bf16.mxu0 %v5848_v62  ;;  %2941 = vmatprep.subr.bf16.mxu1 %v5851_v15  ;;  %v7272_v62 = vld [vmem:[#allocation93_spill] sm:$0xff]  ;;  %v7273_v15 = vld [vmem:[#allocation59_spill] sm:$0xff] }
 0x7bc   :  { %2901 = vmatpush1.bf16.msra.mxu0 %v5855_v6  ;;  %2942 = vmatpush1.bf16.msra.mxu1 %v7207_v60  ;;  %v7274_v6 = vld [vmem:[#allocation61_spill] sm:$0xff]  ;;  %v7280_v60 = vld [vmem:[#allocation35_spill] sm:$0xff] }
 0x7bd   :  { %2902 = vmatprep.subr.bf16.mxu0 %v7208_v57  ;;  %2943 = vmatprep.subr.bf16.mxu1 %v7209_v52  ;;  %v7281_v57 = vld [vmem:[#allocation36_spill] sm:$0xff]  ;;  %v7282_v52 = vld [vmem:[#allocation37_spill] sm:$0xff] }
 0x7bf   :  { %v4372_v55 = vpop.eup %4371 }
 0x7c0   :  { %2903 = vmatpush1.bf16.msra.mxu0 %v7210_v5  ;;  %2944 = vmatpush1.bf16.msra.mxu1 %v7211_v59  ;;  %v2694_v43 = vmul.f32 %v4372_v55, %v4370_v50  ;;  %v7283_v5 = vld [vmem:[#allocation38_spill] sm:$0xff]  ;;  %v7284_v59 = vld [vmem:[#allocation39_spill] sm:$0xff] }
 0x7c1   :  { %2904 = vmatprep.subr.bf16.mxu0 %v7212_v28  ;;  %2945 = vmatprep.subr.bf16.mxu1 %v7213_v29  ;;  %v7285_v28 = vld [vmem:[#allocation40_spill] sm:$0xff]  ;;  %v7286_v29 = vld [vmem:[#allocation41_spill] sm:$0xff] }
 0x7c2   :  { %v2695_v49 = vpack.c.bf16 %v2694_v43, %v2694_v43  ;;  %v6328_v50 = vld [vmem:[#allocation13 + $0x48] ss:$16 sps:$4 sm:$0xff]   ;;  %v6331_v55 = vld [vmem:[#allocation13 + $0x24] ss:$16 sps:$4 sm:$0xff]   ;;  %v6334_v43 = vld [vmem:[#allocation13 + $0x2c] ss:$16 sps:$4 sm:$0xff]  }
 0x7c3   :  { %7312 = vst [vmem:[#allocation57_spill] sm:$0xff] %v6328_v50  ;;  %7313 = vst [vmem:[#allocation58_spill] sm:$0xff] %v6331_v55 }
 0x7c4   :  { %2905 = vmatpush1.bf16.msra.mxu0 %v7214_v23  ;;  %2946 = vmatpush1.bf16.msra.mxu1 %v7215_v40  ;;  %v7287_v23 = vld [vmem:[#allocation42_spill] sm:$0xff]  ;;  %v7288_v40 = vld [vmem:[#allocation43_spill] sm:$0xff]  ;;  %7314 = vst [vmem:[#allocation56_spill] sm:$0xff] %v6334_v43 }
 0x7c5   :  { %2906 = vmatprep.subr.bf16.mxu0 %v7216_v27  ;;  %2947 = vmatprep.subr.bf16.mxu1 %v7217_v11  ;;  %v7289_v27 = vld [vmem:[#allocation44_spill] sm:$0xff]  ;;  %v7290_v11 = vld [vmem:[#allocation45_spill] sm:$0xff] }
 0x7c8   :  { %2907 = vmatpush1.bf16.msra.mxu0 %v7218_v58  ;;  %2948 = vmatpush1.bf16.msra.mxu1 %v5894_v12  ;;  %v7277_v12 = vld [vmem:[#allocation32_spill] sm:$0xff]  ;;  %v7291_v58 = vld [vmem:[#allocation63_spill] sm:$0xff] }
 0x7c9   :  { %2908 = vmatprep.subr.bf16.mxu0 %v5897_v34  ;;  %2949 = vmatprep.subr.bf16.mxu1 %v5900_v36  ;;  %v7278_v34 = vld [vmem:[#allocation33_spill] sm:$0xff]  ;;  %v7279_v36 = vld [vmem:[#allocation34_spill] sm:$0xff] }
 0x7cc   :  { %2909 = vmatpush1.bf16.msra.mxu0 %v5903_v41  ;;  %2950 = vmatpush1.bf16.msra.mxu1 %v5906_v13  ;;  %v7275_v13 = vld [vmem:[#allocation62_spill] sm:$0xff]  ;;  %v7276_v41 = vld [vmem:[#allocation60_spill] sm:$0xff] }
 0x7cd   :  { %3010 = vmatprep.subr.bf16.mxu0 %v6033_v30  ;;  %3051 = vmatprep.subr.bf16.mxu1 %v6036_v44 }
 0x7cf   :  { %2927 = vmatmul.mubr.bf16.vlgmr.msra.gmra.mxu0 %v2695_v49  ;;  %2968 = vmatmul.mubr.bf16.vlgmr.msra.gmra.mxu1 %v2695_v49  ;;  %v6337_v49 = vld [vmem:[#allocation13 + $0x20] ss:$16 sps:$4 sm:$0xff]  }
 0x7d0   :  { %3011 = vmatpush1.bf16.msra.mxu0 %v6039_v0  ;;  %3052 = vmatpush1.bf16.msra.mxu1 %v6042_v47  ;;  %7315 = vst [vmem:[#allocation27_spill] sm:$0xff] %v6337_v49 }
 0x7d1   :  { %3012 = vmatprep.subr.bf16.mxu0 %v7267_v61  ;;  %3053 = vmatprep.subr.bf16.mxu1 %v7268_v54 }
 0x7d2   :  { %3042 = vmatprep.mubr.bf16.mxu0 %v6985_v53  ;;  %3083 = vmatprep.mubr.bf16.mxu1 %v6985_v53 }
 0x7d4   :  { %3013 = vmatpush1.bf16.msra.mxu0 %v7269_v21  ;;  %3054 = vmatpush1.bf16.msra.mxu1 %v7270_v19 }
 0x7d5   :  { %3014 = vmatprep.subr.bf16.mxu0 %v7271_v3  ;;  %3055 = vmatprep.subr.bf16.mxu1 %v7272_v62 }
 0x7d8   :  { %3015 = vmatpush1.bf16.msra.mxu0 %v7273_v15  ;;  %3056 = vmatpush1.bf16.msra.mxu1 %v7274_v6 }
 0x7d9   :  { %3016 = vmatprep.subr.bf16.mxu0 %v7275_v13  ;;  %3057 = vmatprep.subr.bf16.mxu1 %v7276_v41 }
 0x7dc   :  { %3017 = vmatpush1.bf16.msra.mxu0 %v7277_v12  ;;  %3058 = vmatpush1.bf16.msra.mxu1 %v7278_v34 }
 0x7dd   :  { %3018 = vmatprep.subr.bf16.mxu0 %v7279_v36  ;;  %3059 = vmatprep.subr.bf16.mxu1 %v7280_v60 }
 0x7e0   :  { %3019 = vmatpush1.bf16.msra.mxu0 %v7281_v57  ;;  %3060 = vmatpush1.bf16.msra.mxu1 %v7282_v52 }
 0x7e1   :  { %3020 = vmatprep.subr.bf16.mxu0 %v7283_v5  ;;  %3061 = vmatprep.subr.bf16.mxu1 %v7284_v59 }
 0x7e4   :  { %3021 = vmatpush1.bf16.msra.mxu0 %v7285_v28  ;;  %3062 = vmatpush1.bf16.msra.mxu1 %v7286_v29 }
 0x7e5   :  { %3022 = vmatprep.subr.bf16.mxu0 %v7287_v23  ;;  %3063 = vmatprep.subr.bf16.mxu1 %v7288_v40 }
 0x7e8   :  { %3023 = vmatpush1.bf16.msra.mxu0 %v6113_v37  ;;  %3064 = vmatpush1.bf16.msra.mxu1 %v6116_v2 }
 0x7e9   :  { %3024 = vmatprep.subr.bf16.mxu0 %v7289_v27  ;;  %3065 = vmatprep.subr.bf16.mxu1 %v7290_v11 }
 0x7ec   :  { %3025 = vmatpush1.bf16.msra.mxu0 %v7291_v58  ;;  %3066 = vmatpush1.bf16.msra.mxu1 %v7292_v24 }
 0x7ed   :  { %3121 = vmatprep.subr.bf16.mxu0 %v6255_v42  ;;  %3162 = vmatprep.subr.bf16.mxu1 %v6258_v4 }
 0x7ef   :  { %3043 = vmatmul.mubr.bf16.vlgmr.msra.gmra.mxu0 %v6184_v22  ;;  %3084 = vmatmul.mubr.bf16.vlgmr.msra.gmra.mxu1 %v6184_v22  ;;  %v6319_v22 = vld [vmem:[#allocation13 + $0x44] ss:$16 sps:$4 sm:$0xff]  }
 0x7f0   :  { %3122 = vmatpush1.bf16.msra.mxu0 %v6263_v1  ;;  %3163 = vmatpush1.bf16.msra.mxu1 %v6266_v45  ;;  %7309 = vst [vmem:[#allocation48_spill] sm:$0xff] %v6319_v22 }
 0x7f1   :  { %3123 = vmatprep.subr.bf16.mxu0 %v6269_v26  ;;  %3164 = vmatprep.subr.bf16.mxu1 %v6272_v51 }
 0x7f2   :  { %3153 = vmatprep.mubr.bf16.mxu0 %v6985_v53  ;;  %3194 = vmatprep.mubr.bf16.mxu1 %v6985_v53 }
 0x7f4   :  { %3124 = vmatpush1.bf16.msra.mxu0 %v6277_v35  ;;  %3165 = vmatpush1.bf16.msra.mxu1 %v6280_v56  ;;  %v7323_v35 = vld [vmem:[#allocation25_spill] sm:$0xff] }
 0x7f5   :  { %3125 = vmatprep.subr.bf16.mxu0 %v6283_v25  ;;  %3166 = vmatprep.subr.bf16.mxu1 %v6286_v39 }
 0x7f8   :  { %3126 = vmatpush1.bf16.msra.mxu0 %v6289_v16  ;;  %3167 = vmatpush1.bf16.msra.mxu1 %v6292_v32 }
 0x7f9   :  { %3127 = vmatprep.subr.bf16.mxu0 %v6295_v48  ;;  %3168 = vmatprep.subr.bf16.mxu1 %v6298_v8 }
 0x7fc   :  { %3128 = vmatpush1.bf16.msra.mxu0 %v6301_v9  ;;  %3169 = vmatpush1.bf16.msra.mxu1 %v6304_v33 }
 0x7fd   :  { %3129 = vmatprep.subr.bf16.mxu0 %v6307_v14  ;;  %3170 = vmatprep.subr.bf16.mxu1 %v6310_v10 }
 0x800   :  { %3130 = vmatpush1.bf16.msra.mxu0 %v6313_v20  ;;  %3171 = vmatpush1.bf16.msra.mxu1 %v6316_v18 }
 0x801   :  { %3131 = vmatprep.subr.bf16.mxu0 %v6319_v22  ;;  %3172 = vmatprep.subr.bf16.mxu1 %v6322_v17  ;;  %v6340_v17 = vld [vmem:[#allocation13 + $0x28] ss:$16 sps:$4 sm:$0xff]  }
 0x802   :  { %7316 = vst [vmem:[#allocation28_spill] sm:$0xff] %v6340_v17 }
 0x804   :  { %3132 = vmatpush1.bf16.msra.mxu0 %v6325_v7  ;;  %3173 = vmatpush1.bf16.msra.mxu1 %v6328_v50  ;;  %v6343_v7 = vld [vmem:[#allocation13 + $0x4] ss:$16 sps:$4 sm:$0xff]   ;;  %v6346_v50 = vld [vmem:[#allocation13 + $0xc] ss:$16 sps:$4 sm:$0xff]  }
 0x805   :  { %3133 = vmatprep.subr.bf16.mxu0 %v6331_v55  ;;  %3174 = vmatprep.subr.bf16.mxu1 %v6334_v43  ;;  %7317 = vst [vmem:[#allocation29_spill] sm:$0xff] %v6343_v7  ;;  %7318 = vst [vmem:[#allocation30_spill] sm:$0xff] %v6346_v50  ;;  %v6349_v55 = vld [vmem:[#allocation13] ss:$16 sps:$4 sm:$0xff]   ;;  %v6352_v43 = vld [vmem:[#allocation13 + $0x8] ss:$16 sps:$4 sm:$0xff]  }
 0x806   :  { %7319 = vst [vmem:[#allocation31_spill] sm:$0xff] %v6349_v55  ;;  %7320 = vst [vmem:[#allocation49_spill] sm:$0xff] %v6352_v43 }
 0x808   :  { %3134 = vmatpush1.bf16.msra.mxu0 %v6337_v49  ;;  %3175 = vmatpush1.bf16.msra.mxu1 %v6340_v17  ;;  %v6355_v49 = vld [vmem:[#allocation15 + $0xe4] ss:$16 sps:$4 sm:$0xff]   ;;  %v6358_v17 = vld [vmem:[#allocation15 + $0xec] ss:$16 sps:$4 sm:$0xff]  }
 0x809   :  { %3135 = vmatprep.subr.bf16.mxu0 %v6343_v7  ;;  %3176 = vmatprep.subr.bf16.mxu1 %v6346_v50  ;;  %7321 = vst [vmem:[#allocation54_spill] sm:$0xff] %v6355_v49  ;;  %7322 = vst [vmem:[#allocation52_spill] sm:$0xff] %v6358_v17 }
 0x80c   :  { %3136 = vmatpush1.bf16.msra.mxu0 %v6349_v55  ;;  %3177 = vmatpush1.bf16.msra.mxu1 %v6352_v43 }
 0x80d   :  { %3203 = vmatprep.subr.bf16.mxu0 %v6355_v49  ;;  %3244 = vmatprep.subr.bf16.mxu1 %v6358_v17 }
 0x86f   :  { %v2846_v7 = vpop.f32.mrf.mxu0  ;;  %v2887_v22 = vpop.f32.mrf.mxu1 }
 0x871   :  { %v2848_v18 = vpop.f32.mrf.mxu0  ;;  %v2889_v50 = vpop.f32.mrf.mxu1 }
 0x873   :  { %v2850_v20 = vpop.f32.mrf.mxu0  ;;  %v2891_v10 = vpop.f32.mrf.mxu1 }
 0x874   :  { %v7324_v10 = vld [vmem:[#allocation26_spill] sm:$0xff] }
 0x875   :  { %v2851_v14 = vpop.f32.mrf.mxu0  ;;  %v2892_v55 = vpop.f32.mrf.mxu1 }
 0x88f   :  { %v2928_v33 = vpop.f32.mrf.mxu0  ;;  %v2969_v9 = vpop.f32.mrf.mxu1 }
 0x890   :  { %v2929_v8 = vadd.f32 %v2928_v33, %v2846_v7  ;;  %v2970_v43 = vadd.f32 %v2969_v9, %v2887_v22 }
 0x891   :  { %v2930_v48 = vpop.f32.mrf.mxu0  ;;  %v2971_v32 = vpop.f32.mrf.mxu1 }
 0x892   :  { %v2976_v49 = vadd.f32 %v2929_v8, %v7090_v38  ;;  %v2931_v16 = vadd.f32 %v2930_v48, %v2848_v18  ;;  %v2972_v39 = vadd.f32 %v2971_v32, %v2889_v50  ;;  %v2978_v55 = vadd.f32 %v2970_v43, %v7324_v10  ;;  %v7325_v48 = vld [vmem:[#allocation71_spill] sm:$0xff]  ;;  %v7328_v10 = vld [vmem:[#allocation72_spill] sm:$0xff] }
 0x893   :  { %v2932_v25 = vpop.f32.mrf.mxu0  ;;  %v2973_v17 = vpop.f32.mrf.mxu1 }
 0x894   :  { %v3925_v56 = vmul.f32 -1.442695, %v2976_v49  ;;  %v2977_v51 = vadd.f32 %v2931_v16, %v7323_v35 }
 0x895   :  { %v2933_v26 = vpop.f32.mrf.mxu0  ;;  %v2974_v20 = vpop.f32.mrf.mxu1 }
 0x896   :  { %4373 = vpow2.f32 %v3925_v56  ;;  %v3926_v14 = vmul.f32 -1.442695, %v2977_v51  ;;  %v7326_v56 = vld [vmem:[#allocation73_spill] sm:$0xff] }
 0x898   :  { %4375 = vpow2.f32 %v3926_v14 }
 0x899   :  { %4377 = vtanh.f32 %v2978_v55 }
 0x8a3   :  { %v4374_v33 = vpop.eup %4373 }
 0x8a4   :  { %v2983_v9 = vadd.f32 1.0, %v4374_v33 }
 0x8a5   :  { %v4376_v22 = vpop.eup %4375 }
 0x8a6   :  { %4379 = vrcp.f32 %v2983_v9  ;;  %v2989_v8 = vadd.f32 1.0, %v4376_v22  ;;  %v4378_v26 = vpop.eup %4377 }
 0x8a8   :  { %4381 = vrcp.f32 %v2989_v8 }
 0x8af   :  { %v3044_v32 = vpop.f32.mrf.mxu0  ;;  %v3085_v25 = vpop.f32.mrf.mxu1 }
 0x8b0   :  { %v3092_v18 = vadd.f32 %v3044_v32, %v7325_v48  ;;  %v7327_v32 = vld [vmem:[#allocation74_spill] sm:$0xff] }
 0x8b1   :  { %v3046_v17 = vpop.f32.mrf.mxu0  ;;  %v3087_v16 = vpop.f32.mrf.mxu1 }
 0x8b2   :  { %v3928_v7 = vmul.f32 -1.442695, %v3092_v18  ;;  %v3093_v51 = vadd.f32 %v3046_v17, %v7326_v56  ;;  %v3095_v48 = vadd.f32 %v3087_v16, %v7327_v32  ;;  %v3094_v18 = vadd.f32 %v3085_v25, %v7328_v10  ;;  %v6389_v32 = vld [vmem:[#allocation15 + $0xcc] ss:$16 sps:$4 sm:$0xff]  }
 0x8b3   :  { %v4380_v50 = vpop.eup %4379  ;;  %v3048_v49 = vpop.f32.mrf.mxu0  ;;  %v2979_v10 = vadd.f32 %v2972_v39, %v5426_v46  ;;  %v6386_v39 = vld [vmem:[#allocation15 + $0xc4] ss:$16 sps:$4 sm:$0xff]  }
 0x8b4   :  { %v3089_v43 = vpop.f32.mrf.mxu1  ;;  %v3000_v20 = vmul.f32 %v4380_v50, %v4378_v26  ;;  %4383 = vpow2.f32 %v3928_v7  ;;  %v3929_v14 = vmul.f32 -1.442695, %v3093_v51  ;;  %v3930_v35 = vmul.f32 -1.442695, %v3095_v48 }
 0x8b5   :  { %v4382_v55 = vpop.eup %4381  ;;  %v3049_v33 = vpop.f32.mrf.mxu0  ;;  %v3927_v25 = vmul.f32 -1.442695, %v2979_v10  ;;  %v6428_v10 = vld [vmem:[#allocation15 + $0x6c] ss:$16 sps:$4 sm:$0xff]  }
 0x8b6   :  { %v3090_v9 = vpop.f32.mrf.mxu1  ;;  %v2999_v22 = vmul.f32 %v4382_v55, %v6175_v63  ;;  %4385 = vpow2.f32 %v3929_v14  ;;  %7331 = vst [vmem:[#allocation70_spill] sm:$0xff] %v6428_v10 }
 0x8b7   :  { %4387 = vtanh.f32 %v3094_v18  ;;  %v6394_v18 = vld [vmem:[#allocation15 + $0xc0] ss:$16 sps:$4 sm:$0xff]  }
 0x8b8   :  { %v6367_v8 = vadd.f32 %v3000_v20, %v2999_v22  ;;  %4389 = vpow2.f32 %v3930_v35  ;;  %v6380_v22 = vld [vmem:[#allocation15 + $0xe0] ss:$16 sps:$4 sm:$0xff]  }
 0x8c1   :  { %v4384_v17 = vpop.eup %4383 }
 0x8c2   :  { %v3099_v56 = vadd.f32 1.0, %v4384_v17  ;;  %v6397_v17 = vld [vmem:[#allocation15 + $0xc8] ss:$16 sps:$4 sm:$0xff]  }
 0x8c3   :  { %v4386_v49 = vpop.eup %4385 }
 0x8c4   :  { %4391 = vrcp.f32 %v3099_v56  ;;  %v3105_v26 = vadd.f32 1.0, %v4386_v49  ;;  %v4388_v7 = vpop.eup %4387  ;;  %v6400_v56 = vld [vmem:[#allocation15 + $0xa4] ss:$16 sps:$4 sm:$0xff]   ;;  %v6403_v49 = vld [vmem:[#allocation15 + $0xac] ss:$16 sps:$4 sm:$0xff]  }
 0x8c5   :  { %v4390_v51 = vpop.eup %4389 }
 0x8c6   :  { %4393 = vrcp.f32 %v3105_v26  ;;  %v3112_v20 = vadd.f32 1.0, %v4390_v51  ;;  %v6409_v51 = vld [vmem:[#allocation15 + $0xa8] ss:$16 sps:$4 sm:$0xff]  }
 0x8c8   :  { %4395 = vrcp.f32 %v3112_v20  ;;  %v6422_v20 = vld [vmem:[#allocation15 + $0x88] ss:$16 sps:$4 sm:$0xff]  }
 0x8c9   :  { %7329 = vst [vmem:[#allocation67_spill] sm:$0xff] %v6422_v20 }
 0x8d1   :  { %v4392_v50 = vpop.eup %4391 }
 0x8d2   :  { %v3116_v63 = vmul.f32 %v4392_v50, %v4388_v7  ;;  %v6406_v7 = vld [vmem:[#allocation15 + $0xa0] ss:$16 sps:$4 sm:$0xff]   ;;  %v6412_v50 = vld [vmem:[#allocation15 + $0x84] ss:$16 sps:$4 sm:$0xff]  }
 0x8d3   :  { %v4394_v43 = vpop.eup %4393 }
 0x8d4   :  { %v3115_v14 = vmul.f32 %v4394_v43, %v6180_v31  ;;  %v6383_v31 = vld [vmem:[#allocation15 + $0xe8] ss:$16 sps:$4 sm:$0xff]   ;;  %v6419_v43 = vld [vmem:[#allocation15 + $0x80] ss:$16 sps:$4 sm:$0xff]  }
 0x8d5   :  { %v4396_v35 = vpop.eup %4395 }
 0x8d6   :  { %v6372_v16 = vadd.f32 %v3116_v63, %v3115_v14  ;;  %v6415_v63 = vld [vmem:[#allocation15 + $0x8c] ss:$16 sps:$4 sm:$0xff]   ;;  %v6425_v14 = vld [vmem:[#allocation15 + $0x64] ss:$16 sps:$4 sm:$0xff]  }
 0x8d7   :  { %7330 = vst [vmem:[#allocation69_spill] sm:$0xff] %v6425_v14 }
 0x8d8   :  { %4397 = vtanh.f32 %v6372_v16 }
 0x8d9   :  { %4399 = vpow2.f32 %v3927_v25  ;;  %v6431_v25 = vld [vmem:[#allocation15 + $0x60] ss:$16 sps:$4 sm:$0xff]  }
 0x8da   :  { %4401 = vtanh.f32 %v6367_v8  ;;  %7332 = vst [vmem:[#allocation68_spill] sm:$0xff] %v6431_v25 }
 0x8e5   :  { %v4398_v55 = vpop.eup %4397 }
 0x8e6   :  { %v3119_v33 = vmul.f32 %v4398_v55, %v4396_v35  ;;  %v4400_v48 = vpop.eup %4399  ;;  %v6434_v35 = vld [vmem:[#allocation15 + $0x68] ss:$16 sps:$4 sm:$0xff]   ;;  %v6437_v55 = vld [vmem:[#allocation15 + $0x44] ss:$16 sps:$4 sm:$0xff]  }
 0x8e7   :  { %v2996_v26 = vadd.f32 1.0, %v4400_v48  ;;  %7333 = vst [vmem:[#allocation88_spill] sm:$0xff] %v6434_v35  ;;  %7334 = vst [vmem:[#allocation89_spill] sm:$0xff] %v6437_v55  ;;  %v6443_v48 = vld [vmem:[#allocation15 + $0x40] ss:$16 sps:$4 sm:$0xff]  }
 0x8e8   :  { %v6376_v9 = vpack.c.bf16 %v3119_v33, %v3119_v33  ;;  %v6440_v33 = vld [vmem:[#allocation15 + $0x4c] ss:$16 sps:$4 sm:$0xff]   ;;  %7336 = vst [vmem:[#allocation91_spill] sm:$0xff] %v6443_v48 }
 0x8e9   :  { %4403 = vrcp.f32 %v2996_v26  ;;  %7335 = vst [vmem:[#allocation90_spill] sm:$0xff] %v6440_v33  ;;  %v6446_v26 = vld [vmem:[#allocation15 + $0x48] ss:$16 sps:$4 sm:$0xff]  }
 0x8ea   :  { %3154 = vmatmul.mubr.bf16.vlgmr.msra.gmra.mxu0 %v6376_v9  ;;  %3195 = vmatmul.mubr.bf16.vlgmr.msra.gmra.mxu1 %v6376_v9  ;;  %7337 = vst [vmem:[#allocation92_spill] sm:$0xff] %v6446_v26 }
 0x8eb   :  { %3204 = vmatpush1.bf16.msra.mxu0 %v6380_v22  ;;  %3245 = vmatpush1.bf16.msra.mxu1 %v6383_v31 }
 0x8ec   :  { %3205 = vmatprep.subr.bf16.mxu0 %v6386_v39  ;;  %3246 = vmatprep.subr.bf16.mxu1 %v6389_v32 }
 0x8ed   :  { %3235 = vmatprep.mubr.bf16.mxu0 %v6985_v53  ;;  %3276 = vmatprep.mubr.bf16.mxu1 %v6985_v53 }
 0x8ef   :  { %3206 = vmatpush1.bf16.msra.mxu0 %v6394_v18  ;;  %3247 = vmatpush1.bf16.msra.mxu1 %v6397_v17 }
 0x8f0   :  { %3207 = vmatprep.subr.bf16.mxu0 %v6400_v56  ;;  %3248 = vmatprep.subr.bf16.mxu1 %v6403_v49 }
 0x8f3   :  { %3208 = vmatpush1.bf16.msra.mxu0 %v6406_v7  ;;  %3249 = vmatpush1.bf16.msra.mxu1 %v6409_v51 }
 0x8f4   :  { %3209 = vmatprep.subr.bf16.mxu0 %v6412_v50  ;;  %3250 = vmatprep.subr.bf16.mxu1 %v6415_v63 }
 0x8f7   :  { %3210 = vmatpush1.bf16.msra.mxu0 %v6419_v43  ;;  %3251 = vmatpush1.bf16.msra.mxu1 %v6422_v20  ;;  %v6470_v20 = vld [vmem:[#allocation15 + $0x8] ss:$16 sps:$4 sm:$0xff]  }
 0x8f8   :  { %3211 = vmatprep.subr.bf16.mxu0 %v6425_v14  ;;  %3252 = vmatprep.subr.bf16.mxu1 %v6428_v10  ;;  %v6455_v14 = vld [vmem:[#allocation15 + $0x20] ss:$16 sps:$4 sm:$0xff]  }
 0x8f9   :  { %7340 = vst [vmem:[#allocation61_spill] sm:$0xff] %v6455_v14 }
 0x8fb   :  { %3212 = vmatpush1.bf16.msra.mxu0 %v6431_v25  ;;  %3253 = vmatpush1.bf16.msra.mxu1 %v6434_v35  ;;  %v6449_v25 = vld [vmem:[#allocation15 + $0x24] ss:$16 sps:$4 sm:$0xff]   ;;  %v6452_v35 = vld [vmem:[#allocation15 + $0x2c] ss:$16 sps:$4 sm:$0xff]  }
 0x8fc   :  { %3213 = vmatprep.subr.bf16.mxu0 %v6437_v55  ;;  %3254 = vmatprep.subr.bf16.mxu1 %v6440_v33  ;;  %7338 = vst [vmem:[#allocation93_spill] sm:$0xff] %v6449_v25  ;;  %7339 = vst [vmem:[#allocation59_spill] sm:$0xff] %v6452_v35  ;;  %v4402_v55 = vpop.eup %4401  ;;  %v6458_v33 = vld [vmem:[#allocation15 + $0x28] ss:$16 sps:$4 sm:$0xff]  }
 0x8fd   :  { %v4404_v10 = vpop.eup %4403 }
 0x8ff   :  { %3214 = vmatpush1.bf16.msra.mxu0 %v6443_v48  ;;  %3255 = vmatpush1.bf16.msra.mxu1 %v6446_v26  ;;  %v6461_v48 = vld [vmem:[#allocation15 + $0x4] ss:$16 sps:$4 sm:$0xff]   ;;  %v6464_v26 = vld [vmem:[#allocation15 + $0xc] ss:$16 sps:$4 sm:$0xff]  }
 0x900   :  { %3215 = vmatprep.subr.bf16.mxu0 %v6449_v25  ;;  %3256 = vmatprep.subr.bf16.mxu1 %v6452_v35  ;;  %v3003_v25 = vmul.f32 %v4404_v10, %v4402_v55  ;;  %v6467_v35 = vld [vmem:[#allocation15] ss:$16 sps:$4 sm:$0xff]  }
 0x903   :  { %3216 = vmatpush1.bf16.msra.mxu0 %v6455_v14  ;;  %3257 = vmatpush1.bf16.msra.mxu1 %v6458_v33  ;;  %v3004_v14 = vpack.c.bf16 %v3003_v25, %v3003_v25 }
 0x904   :  { %3217 = vmatprep.subr.bf16.mxu0 %v6461_v48  ;;  %3258 = vmatprep.subr.bf16.mxu1 %v6464_v26 }
 0x907   :  { %3218 = vmatpush1.bf16.msra.mxu0 %v6467_v35  ;;  %3259 = vmatpush1.bf16.msra.mxu1 %v6470_v20 }
 0x908   :  { %3319 = vmatprep.subr.bf16.mxu0 %v6033_v30  ;;  %3360 = vmatprep.subr.bf16.mxu1 %v6036_v44  ;;  %v7341_v30 = vld [vmem:[#allocation66_spill] sm:$0xff]  ;;  %v7342_v44 = vld [vmem:[#allocation64_spill] sm:$0xff] }
 0x90a   :  { %3236 = vmatmul.mubr.bf16.vlgmr.msra.gmra.mxu0 %v3004_v14  ;;  %3277 = vmatmul.mubr.bf16.vlgmr.msra.gmra.mxu1 %v3004_v14 }
 0x90b   :  { %3320 = vmatpush1.bf16.msra.mxu0 %v6039_v0  ;;  %3361 = vmatpush1.bf16.msra.mxu1 %v6042_v47  ;;  %v7343_v0 = vld [vmem:[#allocation50_spill] sm:$0xff]  ;;  %v7344_v47 = vld [vmem:[#allocation53_spill] sm:$0xff] }
 0x90c   :  { %3321 = vmatprep.subr.bf16.mxu0 %v7267_v61  ;;  %3362 = vmatprep.subr.bf16.mxu1 %v7268_v54  ;;  %v7347_v61 = vld [vmem:[#allocation80_spill] sm:$0xff]  ;;  %v7348_v54 = vld [vmem:[#allocation81_spill] sm:$0xff] }
 0x90d   :  { %3351 = vmatprep.mubr.bf16.mxu0 %v6985_v53  ;;  %3392 = vmatprep.mubr.bf16.mxu1 %v6985_v53 }
 0x90f   :  { %3322 = vmatpush1.bf16.msra.mxu0 %v7269_v21  ;;  %3363 = vmatpush1.bf16.msra.mxu1 %v7270_v19  ;;  %v7349_v21 = vld [vmem:[#allocation82_spill] sm:$0xff]  ;;  %v7350_v19 = vld [vmem:[#allocation83_spill] sm:$0xff] }
 0x910   :  { %3323 = vmatprep.subr.bf16.mxu0 %v7271_v3  ;;  %3364 = vmatprep.subr.bf16.mxu1 %v7272_v62  ;;  %v7351_v3 = vld [vmem:[#allocation84_spill] sm:$0xff]  ;;  %v7352_v62 = vld [vmem:[#allocation85_spill] sm:$0xff] }
 0x913   :  { %3324 = vmatpush1.bf16.msra.mxu0 %v7273_v15  ;;  %3365 = vmatpush1.bf16.msra.mxu1 %v7274_v6  ;;  %v7353_v15 = vld [vmem:[#allocation86_spill] sm:$0xff]  ;;  %v7354_v6 = vld [vmem:[#allocation87_spill] sm:$0xff] }
 0x914   :  { %3325 = vmatprep.subr.bf16.mxu0 %v7275_v13  ;;  %3366 = vmatprep.subr.bf16.mxu1 %v7276_v41  ;;  %v7355_v13 = vld [vmem:[#allocation46_spill] sm:$0xff]  ;;  %v7356_v41 = vld [vmem:[#allocation47_spill] sm:$0xff] }
 0x917   :  { %3326 = vmatpush1.bf16.msra.mxu0 %v7277_v12  ;;  %3367 = vmatpush1.bf16.msra.mxu1 %v7278_v34  ;;  %v7357_v12 = vld [vmem:[#allocation48_spill] sm:$0xff] }
 0x918   :  { %3327 = vmatprep.subr.bf16.mxu0 %v7279_v36  ;;  %3368 = vmatprep.subr.bf16.mxu1 %v7280_v60  ;;  %v7358_v34 = vld [vmem:[#allocation24_spill] sm:$0xff]  ;;  %v7359_v36 = vld [vmem:[#allocation55_spill] sm:$0xff]  ;;  %v7360_v60 = vld [vmem:[#allocation57_spill] sm:$0xff] }
 0x91b   :  { %3328 = vmatpush1.bf16.msra.mxu0 %v7281_v57  ;;  %3369 = vmatpush1.bf16.msra.mxu1 %v7282_v52  ;;  %v7361_v57 = vld [vmem:[#allocation58_spill] sm:$0xff]  ;;  %v7362_v52 = vld [vmem:[#allocation56_spill] sm:$0xff] }
 0x91c   :  { %3329 = vmatprep.subr.bf16.mxu0 %v7283_v5  ;;  %3370 = vmatprep.subr.bf16.mxu1 %v7284_v59  ;;  %v7363_v5 = vld [vmem:[#allocation27_spill] sm:$0xff]  ;;  %v7364_v59 = vld [vmem:[#allocation28_spill] sm:$0xff] }
 0x91f   :  { %3330 = vmatpush1.bf16.msra.mxu0 %v7285_v28  ;;  %3371 = vmatpush1.bf16.msra.mxu1 %v7286_v29  ;;  %v7365_v28 = vld [vmem:[#allocation29_spill] sm:$0xff]  ;;  %v7366_v29 = vld [vmem:[#allocation30_spill] sm:$0xff] }
 0x920   :  { %3331 = vmatprep.subr.bf16.mxu0 %v7287_v23  ;;  %3372 = vmatprep.subr.bf16.mxu1 %v7288_v40  ;;  %v7367_v23 = vld [vmem:[#allocation31_spill] sm:$0xff]  ;;  %v7368_v40 = vld [vmem:[#allocation49_spill] sm:$0xff] }
 0x923   :  { %3332 = vmatpush1.bf16.msra.mxu0 %v6113_v37  ;;  %3373 = vmatpush1.bf16.msra.mxu1 %v6116_v2  ;;  %v7345_v37 = vld [vmem:[#allocation51_spill] sm:$0xff] }
 0x924   :  { %3333 = vmatprep.subr.bf16.mxu0 %v7289_v27  ;;  %3374 = vmatprep.subr.bf16.mxu1 %v7290_v11  ;;  %v7346_v2 = vld [vmem:[#allocation79_spill] sm:$0xff]  ;;  %v7369_v27 = vld [vmem:[#allocation54_spill] sm:$0xff]  ;;  %v7370_v11 = vld [vmem:[#allocation52_spill] sm:$0xff] }
 0x927   :  { %3334 = vmatpush1.bf16.msra.mxu0 %v7291_v58  ;;  %3375 = vmatpush1.bf16.msra.mxu1 %v7292_v24 }
 0x928   :  { %3430 = vmatprep.subr.bf16.mxu0 %v6255_v42  ;;  %3471 = vmatprep.subr.bf16.mxu1 %v6258_v4 }
 0x92a   :  { %3352 = vmatmul.mubr.bf16.vlgmr.msra.gmra.mxu0 %v6376_v9  ;;  %3393 = vmatmul.mubr.bf16.vlgmr.msra.gmra.mxu1 %v6376_v9 }
 0x92b   :  { %3431 = vmatpush1.bf16.msra.mxu0 %v6263_v1  ;;  %3472 = vmatpush1.bf16.msra.mxu1 %v6266_v45 }
 0x92c   :  { %3432 = vmatprep.subr.bf16.mxu0 %v7341_v30  ;;  %3473 = vmatprep.subr.bf16.mxu1 %v7342_v44 }
 0x92d   :  { %3462 = vmatprep.mubr.bf16.mxu0 %v6985_v53  ;;  %3503 = vmatprep.mubr.bf16.mxu1 %v6985_v53 }
 0x92f   :  { %3433 = vmatpush1.bf16.msra.mxu0 %v7343_v0  ;;  %3474 = vmatpush1.bf16.msra.mxu1 %v7344_v47 }
 0x930   :  { %3434 = vmatprep.subr.bf16.mxu0 %v7345_v37  ;;  %3475 = vmatprep.subr.bf16.mxu1 %v7346_v2 }
 0x933   :  { %3435 = vmatpush1.bf16.msra.mxu0 %v7347_v61  ;;  %3476 = vmatpush1.bf16.msra.mxu1 %v7348_v54 }
 0x934   :  { %3436 = vmatprep.subr.bf16.mxu0 %v7349_v21  ;;  %3477 = vmatprep.subr.bf16.mxu1 %v7350_v19  ;;  %v7371_v19 = vld [vmem:[#allocation25_spill] sm:$0xff] }
 0x937   :  { %3437 = vmatpush1.bf16.msra.mxu0 %v7351_v3  ;;  %3478 = vmatpush1.bf16.msra.mxu1 %v7352_v62 }
 0x938   :  { %3438 = vmatprep.subr.bf16.mxu0 %v7353_v15  ;;  %3479 = vmatprep.subr.bf16.mxu1 %v7354_v6 }
 0x93b   :  { %3439 = vmatpush1.bf16.msra.mxu0 %v7355_v13  ;;  %3480 = vmatpush1.bf16.msra.mxu1 %v7356_v41  ;;  %v7372_v13 = vld [vmem:[#allocation26_spill] sm:$0xff] }
 0x93c   :  { %3440 = vmatprep.subr.bf16.mxu0 %v7357_v12  ;;  %3481 = vmatprep.subr.bf16.mxu1 %v7358_v34 }
 0x93f   :  { %3441 = vmatpush1.bf16.msra.mxu0 %v7359_v36  ;;  %3482 = vmatpush1.bf16.msra.mxu1 %v7360_v60 }
 0x940   :  { %3442 = vmatprep.subr.bf16.mxu0 %v7361_v57  ;;  %3483 = vmatprep.subr.bf16.mxu1 %v7362_v52 }
 0x943   :  { %3443 = vmatpush1.bf16.msra.mxu0 %v7363_v5  ;;  %3484 = vmatpush1.bf16.msra.mxu1 %v7364_v59  ;;  %v7373_v5 = vld [vmem:[#allocation75_spill] sm:$0xff] }
 0x944   :  { %3444 = vmatprep.subr.bf16.mxu0 %v7365_v28  ;;  %3485 = vmatprep.subr.bf16.mxu1 %v7366_v29 }
 0x947   :  { %3445 = vmatpush1.bf16.msra.mxu0 %v7367_v23  ;;  %3486 = vmatpush1.bf16.msra.mxu1 %v7368_v40 }
 0x948   :  { %3512 = vmatprep.subr.bf16.mxu0 %v7369_v27  ;;  %3553 = vmatprep.subr.bf16.mxu1 %v7370_v11  ;;  %v7374_v27 = vld [vmem:[#allocation77_spill] sm:$0xff] }
 0x9aa   :  { %v3155_v58 = vpop.f32.mrf.mxu0  ;;  %v3196_v24 = vpop.f32.mrf.mxu1 }
 0x9ac   :  { %v3157_v42 = vpop.f32.mrf.mxu0  ;;  %v3198_v4 = vpop.f32.mrf.mxu1 }
 0x9ae   :  { %v3159_v1 = vpop.f32.mrf.mxu0  ;;  %v3200_v45 = vpop.f32.mrf.mxu1 }
 0x9b0   :  { %v3160_v9 = vpop.f32.mrf.mxu0  ;;  %v3201_v14 = vpop.f32.mrf.mxu1 }
 0x9ca   :  { %v3237_v10 = vpop.f32.mrf.mxu0  ;;  %v3278_v25 = vpop.f32.mrf.mxu1 }
 0x9cb   :  { %v3238_v55 = vadd.f32 %v3237_v10, %v3155_v58  ;;  %v3279_v30 = vadd.f32 %v3278_v25, %v3196_v24 }
 0x9cc   :  { %v3239_v44 = vpop.f32.mrf.mxu0  ;;  %v3280_v0 = vpop.f32.mrf.mxu1 }
 0x9cd   :  { %v3285_v47 = vadd.f32 %v3238_v55, %v7090_v38  ;;  %v3240_v37 = vadd.f32 %v3239_v44, %v3157_v42  ;;  %v3281_v2 = vadd.f32 %v3280_v0, %v3198_v4  ;;  %v3287_v41 = vadd.f32 %v3279_v30, %v7372_v13  ;;  %v7375_v55 = vld [vmem:[#allocation78_spill] sm:$0xff]  ;;  %v7376_v44 = vld [vmem:[#allocation76_spill] sm:$0xff] }
 0x9ce   :  { %v3241_v61 = vpop.f32.mrf.mxu0  ;;  %v3282_v54 = vpop.f32.mrf.mxu1 }
 0x9cf   :  { %v3931_v21 = vmul.f32 -1.442695, %v3285_v47  ;;  %v3286_v3 = vadd.f32 %v3240_v37, %v7371_v19 }
 0x9d0   :  { %v3242_v62 = vpop.f32.mrf.mxu0  ;;  %v3283_v15 = vpop.f32.mrf.mxu1 }
 0x9d1   :  { %4405 = vpow2.f32 %v3931_v21  ;;  %v3932_v6 = vmul.f32 -1.442695, %v3286_v3 }
 0x9d3   :  { %4407 = vpow2.f32 %v3932_v6 }
 0x9d4   :  { %4409 = vtanh.f32 %v3287_v41 }
 0x9de   :  { %v4406_v12 = vpop.eup %4405 }
 0x9df   :  { %v3292_v34 = vadd.f32 1.0, %v4406_v12 }
 0x9e0   :  { %v4408_v36 = vpop.eup %4407 }
 0x9e1   :  { %4411 = vrcp.f32 %v3292_v34  ;;  %v3298_v60 = vadd.f32 1.0, %v4408_v36  ;;  %v4410_v23 = vpop.eup %4409  ;;  %v3288_v36 = vadd.f32 %v3281_v2, %v5426_v46  ;;  %v7388_v2 = vld [vmem:[#allocation61_spill] sm:$0xff] }
 0x9e3   :  { %4413 = vrcp.f32 %v3298_v60  ;;  %v3933_v60 = vmul.f32 -1.442695, %v3288_v36 }
 0x9ea   :  { %v3353_v57 = vpop.f32.mrf.mxu0  ;;  %v3394_v52 = vpop.f32.mrf.mxu1 }
 0x9eb   :  { %v3401_v59 = vadd.f32 %v3353_v57, %v7373_v5  ;;  %v3403_v0 = vadd.f32 %v3394_v52, %v7376_v44 }
 0x9ec   :  { %v3355_v28 = vpop.f32.mrf.mxu0  ;;  %v3396_v29 = vpop.f32.mrf.mxu1 }
 0x9ed   :  { %v3934_v40 = vmul.f32 -1.442695, %v3401_v59  ;;  %v3402_v11 = vadd.f32 %v3355_v28, %v7374_v27  ;;  %v3404_v30 = vadd.f32 %v3396_v29, %v7375_v55  ;;  %v4190_v27 = vld [vmem:[#allocation16 + $0x30] sm:$0xff]  }
 0x9ee   :  { %v4412_v58 = vpop.eup %4411  ;;  %v3357_v24 = vpop.f32.mrf.mxu0 }
 0x9ef   :  { %v3398_v42 = vpop.f32.mrf.mxu1  ;;  %v3309_v4 = vmul.f32 %v4412_v58, %v4410_v23  ;;  %4415 = vpow2.f32 %v3934_v40  ;;  %v3935_v1 = vmul.f32 -1.442695, %v3402_v11  ;;  %v3936_v47 = vmul.f32 -1.442695, %v3404_v30  ;;  %v4189_v23 = vld [vmem:[#allocation16 + $0x38] sm:$0xff]   ;;  %v4196_v11 = vld [vmem:[#allocation16] sm:$0xff]  }
 0x9f0   :  { %v4414_v45 = vpop.eup %4413  ;;  %v3358_v9 = vpop.f32.mrf.mxu0  ;;  %v4807_v40 = vmov 0.0  }
 0x9f1   :  { %v3399_v14 = vpop.f32.mrf.mxu1  ;;  %v3308_v10 = vmul.f32 %v4414_v45, %v6367_v8  ;;  %4417 = vpow2.f32 %v3935_v1 }
 0x9f2   :  { %4419 = vtanh.f32 %v3403_v0 }
 0x9f3   :  { %v6551_v25 = vadd.f32 %v3309_v4, %v3308_v10  ;;  %4421 = vpow2.f32 %v3936_v47 }
 0x9fc   :  { %v4416_v37 = vpop.eup %4415 }
 0x9fd   :  { %v3408_v61 = vadd.f32 1.0, %v4416_v37 }
 0x9fe   :  { %v4418_v54 = vpop.eup %4417 }
 0x9ff   :  { %4423 = vrcp.f32 %v3408_v61  ;;  %v3414_v21 = vadd.f32 1.0, %v4418_v54  ;;  %v4420_v3 = vpop.eup %4419 }
 0xa00   :  { %v4422_v62 = vpop.eup %4421 }
 0xa01   :  { %4425 = vrcp.f32 %v3414_v21  ;;  %v3421_v41 = vadd.f32 1.0, %v4422_v62 }
 0xa03   :  { %4427 = vrcp.f32 %v3421_v41 }
 0xa0c   :  { %v4424_v15 = vpop.eup %4423 }
 0xa0d   :  { %v3425_v8 = vmul.f32 %v4424_v15, %v4420_v3 }
 0xa0e   :  { %v4426_v6 = vpop.eup %4425 }
 0xa0f   :  { %v3424_v12 = vmul.f32 %v4426_v6, %v6372_v16 }
 0xa10   :  { %v4428_v57 = vpop.eup %4427 }
 0xa11   :  { %v3426_v34 = vadd.f32 %v3425_v8, %v3424_v12 }
 0xa13   :  { %4429 = vtanh.f32 %v3426_v34 }
 0xa14   :  { %4431 = vpow2.f32 %v3933_v60 }
 0xa15   :  { %4433 = vtanh.f32 %v6551_v25 }
 0xa20   :  { %v4430_v52 = vpop.eup %4429 }
 0xa21   :  { %v3428_v5 = vmul.f32 %v4430_v52, %v4428_v57  ;;  %v4432_v16 = vpop.eup %4431 }
 0xa23   :  { %v3429_v59 = vpack.c.bf16 %v3428_v5, %v3428_v5 }
 0xa25   :  { %3463 = vmatmul.mubr.bf16.vlgmr.msra.gmra.mxu0 %v3429_v59  ;;  %3504 = vmatmul.mubr.bf16.vlgmr.msra.gmra.mxu1 %v3429_v59 }
 0xa26   :  { %3513 = vmatpush1.bf16.msra.mxu0 %v6380_v22  ;;  %3554 = vmatpush1.bf16.msra.mxu1 %v6383_v31  ;;  %v3305_v22 = vadd.f32 1.0, %v4432_v16  ;;  %v7378_v31 = vld [vmem:[#allocation69_spill] sm:$0xff] }
 0xa27   :  { %3514 = vmatprep.subr.bf16.mxu0 %v6386_v39  ;;  %3555 = vmatprep.subr.bf16.mxu1 %v6389_v32  ;;  %v7379_v39 = vld [vmem:[#allocation70_spill] sm:$0xff]  ;;  %v7380_v32 = vld [vmem:[#allocation68_spill] sm:$0xff] }
 0xa28   :  { %3544 = vmatprep.mubr.bf16.mxu0 %v6985_v53  ;;  %3585 = vmatprep.mubr.bf16.mxu1 %v6985_v53  ;;  %4435 = vrcp.f32 %v3305_v22  ;;  %v7377_v53 = vld [vmem:[#allocation67_spill] sm:$0xff] }
 0xa2a   :  { %3515 = vmatpush1.bf16.msra.mxu0 %v6394_v18  ;;  %3556 = vmatpush1.bf16.msra.mxu1 %v6397_v17  ;;  %v7381_v18 = vld [vmem:[#allocation88_spill] sm:$0xff]  ;;  %v7382_v17 = vld [vmem:[#allocation89_spill] sm:$0xff] }
 0xa2b   :  { %3516 = vmatprep.subr.bf16.mxu0 %v6400_v56  ;;  %3557 = vmatprep.subr.bf16.mxu1 %v6403_v49  ;;  %v7383_v56 = vld [vmem:[#allocation90_spill] sm:$0xff]  ;;  %v7384_v49 = vld [vmem:[#allocation91_spill] sm:$0xff] }
 0xa2e   :  { %3517 = vmatpush1.bf16.msra.mxu0 %v6406_v7  ;;  %3558 = vmatpush1.bf16.msra.mxu1 %v6409_v51  ;;  %v7385_v7 = vld [vmem:[#allocation92_spill] sm:$0xff]  ;;  %v7386_v51 = vld [vmem:[#allocation93_spill] sm:$0xff] }
 0xa2f   :  { %3518 = vmatprep.subr.bf16.mxu0 %v6412_v50  ;;  %3559 = vmatprep.subr.bf16.mxu1 %v6415_v63  ;;  %v7387_v50 = vld [vmem:[#allocation59_spill] sm:$0xff]  ;;  %v4434_v63 = vpop.eup %4433 }
 0xa32   :  { %3519 = vmatpush1.bf16.msra.mxu0 %v6419_v43  ;;  %3560 = vmatpush1.bf16.msra.mxu1 %v7377_v53 }
 0xa33   :  { %3520 = vmatprep.subr.bf16.mxu0 %v7378_v31  ;;  %3561 = vmatprep.subr.bf16.mxu1 %v7379_v39 }
 0xa35   :  { %v4436_v43 = vpop.eup %4435 }
 0xa36   :  { %3521 = vmatpush1.bf16.msra.mxu0 %v7380_v32  ;;  %3562 = vmatpush1.bf16.msra.mxu1 %v7381_v18  ;;  %v3312_v28 = vmul.f32 %v4436_v43, %v4434_v63 }
 0xa37   :  { %3522 = vmatprep.subr.bf16.mxu0 %v7382_v17  ;;  %3563 = vmatprep.subr.bf16.mxu1 %v7383_v56  ;;  %v3940_v17 = vld [vmem:[%s6609_s8] ss:$0 sm:$0xff] }
 0xa38   :  { %v3313_v29 = vpack.c.bf16 %v3312_v28, %v3312_v28 }
 0xa3a   :  { %3523 = vmatpush1.bf16.msra.mxu0 %v7384_v49  ;;  %3564 = vmatpush1.bf16.msra.mxu1 %v7385_v7 }
 0xa3b   :  { %3524 = vmatprep.subr.bf16.mxu0 %v7386_v51  ;;  %3565 = vmatprep.subr.bf16.mxu1 %v7387_v50 }
 0xa3e   :  { %3525 = vmatpush1.bf16.msra.mxu0 %v7388_v2  ;;  %3566 = vmatpush1.bf16.msra.mxu1 %v6458_v33  ;;  %v4191_v33 = vld [vmem:[#allocation16 + $0x28] sm:$0xff]  }
 0xa3f   :  { %3526 = vmatprep.subr.bf16.mxu0 %v6461_v48  ;;  %3567 = vmatprep.subr.bf16.mxu1 %v6464_v26  ;;  %v4192_v48 = vld [vmem:[#allocation16 + $0x20] sm:$0xff]   ;;  %v4193_v26 = vld [vmem:[#allocation16 + $0x18] sm:$0xff]  }
 0xa42   :  { %3527 = vmatpush1.bf16.msra.mxu0 %v6467_v35  ;;  %3568 = vmatpush1.bf16.msra.mxu1 %v6470_v20  ;;  %v4194_v20 = vld [vmem:[#allocation16 + $0x10] sm:$0xff]   ;;  %v4195_v35 = vld [vmem:[#allocation16 + $0x8] sm:$0xff]  }
 0xa43   :  { %3958 = vmatprep.subr.bf16.mxu0 %v4807_v40 }
 0xa45   :  { %3545 = vmatmul.mubr.bf16.vlgmr.msra.gmra.mxu0 %v3313_v29  ;;  %3586 = vmatmul.mubr.bf16.vlgmr.msra.gmra.mxu1 %v3313_v29 }
 0xa46   :  { %3959 = vmatpush3.bf16.msra.mxu0 %v4189_v23  ;;  %3974 = vmatprep.mubr.msk.bf16.mxu0 %vm4808_vm0, %v4807_v40 }
 0xa47   :  { %3960 = vmatprep.subr.bf16.mxu0 %v4807_v40 }
 0xa4a   :  { %3961 = vmatpush3.bf16.msra.mxu0 %v4190_v27 }
 0xa4b   :  { %3962 = vmatprep.subr.bf16.mxu0 %v4807_v40 }
 0xa4e   :  { %3963 = vmatpush3.bf16.msra.mxu0 %v4191_v33 }
 0xa4f   :  { %3964 = vmatprep.subr.bf16.mxu0 %v4807_v40 }
 0xa52   :  { %3965 = vmatpush3.bf16.msra.mxu0 %v4192_v48 }
 0xa53   :  { %3966 = vmatprep.subr.bf16.mxu0 %v4807_v40 }
 0xa56   :  { %3967 = vmatpush3.bf16.msra.mxu0 %v4193_v26 }
 0xa57   :  { %3968 = vmatprep.subr.bf16.mxu0 %v4807_v40 }
 0xa5a   :  { %3969 = vmatpush3.bf16.msra.mxu0 %v4194_v20 }
 0xa5b   :  { %3970 = vmatprep.subr.bf16.mxu0 %v4807_v40 }
 0xa5e   :  { %3971 = vmatpush3.bf16.msra.mxu0 %v4195_v35 }
 0xa5f   :  { %3972 = vmatprep.subr.bf16.mxu0 %v4807_v40 }
 0xa62   :  { %3973 = vmatpush3.bf16.msra.mxu0 %v4196_v11 }
 0xae5   :  { %v3464_v58 = vpop.f32.mrf.mxu0  ;;  %v3505_v24 = vpop.f32.mrf.mxu1 }
 0xae7   :  { %v3466_v42 = vpop.f32.mrf.mxu0  ;;  %v3507_v4 = vpop.f32.mrf.mxu1 }
 0xae9   :  { %v3468_v1 = vpop.f32.mrf.mxu0  ;;  %v3509_v45 = vpop.f32.mrf.mxu1 }
 0xaeb   :  { %v3469_v9 = vpop.f32.mrf.mxu0  ;;  %v3510_v14 = vpop.f32.mrf.mxu1 }
 0xb05   :  { %v3546_v10 = vpop.f32.mrf.mxu0  ;;  %v3587_v55 = vpop.f32.mrf.mxu1 }
 0xb06   :  { %v3547_v30 = vadd.f32 %v3546_v10, %v3464_v58  ;;  %v3588_v12 = vadd.f32 %v3587_v55, %v3505_v24 }
 0xb07   :  { %v3548_v44 = vpop.f32.mrf.mxu0  ;;  %v3589_v0 = vpop.f32.mrf.mxu1 }
 0xb08   :  { %v3594_v47 = vadd.f32 %v3547_v30, %v7090_v38  ;;  %v3549_v37 = vadd.f32 %v3548_v44, %v3466_v42  ;;  %v3590_v6 = vadd.f32 %v3589_v0, %v3507_v4  ;;  %v3596_v60 = vadd.f32 %v3588_v12, %v7372_v13 }
 0xb09   :  { %v3550_v61 = vpop.f32.mrf.mxu0  ;;  %v3591_v54 = vpop.f32.mrf.mxu1 }
 0xb0a   :  { %v3937_v21 = vmul.f32 -1.442695, %v3594_v47  ;;  %v3595_v3 = vadd.f32 %v3549_v37, %v7371_v19  ;;  %v3597_v41 = vadd.f32 %v3590_v6, %v5426_v46 }
 0xb0b   :  { %v3551_v62 = vpop.f32.mrf.mxu0  ;;  %v3592_v15 = vpop.f32.mrf.mxu1 }
 0xb0c   :  { %4437 = vpow2.f32 %v3937_v21  ;;  %v3938_v8 = vmul.f32 -1.442695, %v3595_v3  ;;  %v3939_v34 = vmul.f32 -1.442695, %v3597_v41 }
 0xb0e   :  { %4439 = vpow2.f32 %v3938_v8 }
 0xb0f   :  { %4441 = vpow2.f32 %v3939_v34 }
 0xb19   :  { %v4438_v36 = vpop.eup %4437 }
 0xb1a   :  { %v3601_v38 = vadd.f32 1.0, %v4438_v36 }
 0xb1b   :  { %v4440_v57 = vpop.eup %4439 }
 0xb1c   :  { %4443 = vrcp.f32 %v3601_v38  ;;  %v3607_v52 = vadd.f32 1.0, %v4440_v57  ;;  %v4442_v19 = vpop.eup %4441 }
 0xb1d   :  { %4445 = vtanh.f32 %v3596_v60  ;;  %v3614_v22 = vadd.f32 1.0, %v4442_v19 }
 0xb1e   :  { %4447 = vrcp.f32 %v3607_v52 }
 0xb1f   :  { %4449 = vrcp.f32 %v3614_v22 }
 0xb29   :  { %v4444_v5 = vpop.eup %4443 }
 0xb2a   :  { %v4446_v59 = vpop.eup %4445 }
 0xb2b   :  { %v4448_v16 = vpop.eup %4447  ;;  %v3618_v53 = vmul.f32 %v4446_v59, %v4444_v5 }
 0xb2c   :  { %v3617_v46 = vmul.f32 %v4448_v16, %v6551_v25  ;;  %v4450_v39 = vpop.eup %4449 }
 0xb2e   :  { %v3619_v31 = vadd.f32 %v3618_v53, %v3617_v46 }
 0xb30   :  { %4451 = vtanh.f32 %v3619_v31 }
 0xb3d   :  { %v4452_v13 = vpop.eup %4451 }
 0xb3e   :  { %v3621_v32 = vmul.f32 %v4452_v13, %v4450_v39 }
 0xb40   :  { %v3629_v18 = vpack.c.bf16 %v3621_v32, %v3621_v32 }
 0xb42   :  { %3975 = vmatmul.mubr.bf16.vlgmr.msra.gmra.mxu0 %v3629_v18 }
 0xc02   :  { %v3735_v56 = vpop.f32.mrf.mxu0 }
 0xc03   :  { %v3736_v49 = vadd.f32 %v3940_v17, %v3735_v56 }
 0xc04   :  { %v3976_v7 = vpop.f32.mrf.mxu0 }
 0xc05   :  { %3741 = vst [vmem:[#allocation18] sm:$0xff] %v3736_v49 }
 0xc06   :  { %v3738_v25 = vpop.f32.mrf.mxu0 }
 0xc07   :  { %4776 = shalt.err (!%p4773_p6)
}
 0xc08   :  { %3751 = dma.vmem_to_hbm [thread:$0]  %s3749_s21, 128, %s6610_s9, [#allocation9]   ;;  %v3977_v51 = vpop.f32.mrf.mxu0 }
 0xc09   :  { %4793 = dma.done.wait [#allocation9], 128  }
 0xc0a   :  { %4794 = vsyncadd [#allocation9], 4294967168 }
 0xc0b   :  { %3755 = vsyncpa [#allocation8], 1 }
 0xc0c   :  { %3756 = vsyncpa [#allocation11], 1 }
 0xc0d   :  { %3757 = vsyncpa [#allocation14], 1 }
 0xc0e   :  { %3758 = vsyncpa [#allocation17], 1 }
 0xc0f   :  { %3759 = vsyncpa [#allocation9], 1 }

</bundles_post_ra>
